<compile_context>
chip_gen: v7x
topology: tpu7x:2x2x1
jax: 0.10.0
libtpu: 0.0.40
codegen_flags: <defaults>
</compile_context>

<pallas_src>
import functools
import math

import numpy as np
import jax
import jax.numpy as jnp
from jax import lax
from jax.experimental import pallas as pl
from jax.experimental.pallas import tpu as pltpu


def _round_up(x, n):
    return ((x + n - 1) // n) * n


def _eps_kernel(*refs, n_lead, n_trail, n_wide):
    """One (tile_p, K*S) patch block -> transposed (OUT_pad, tile_p) block."""
    if n_trail:
        patches_ref, selL_ref, selT_ref, core2_ref, eredT_ref, out_ref = refs
    else:
        patches_ref, selL_ref, core2_ref, eredT_ref, out_ref = refs
        selT_ref = None

    pt = patches_ref[...]                                        # (TP, K*S)

    # Leading Kronecker factor (width S**FL, small): per-factor 0/1 selection
    # matmuls on the MXU, narrow product chain on the VPU.
    featL = jnp.dot(pt, selL_ref[0], preferred_element_type=jnp.float32)
    for k in range(1, n_lead):
        featL = featL * jnp.dot(pt, selL_ref[k],
                                preferred_element_type=jnp.float32)

    # Contract with the core: (trailing feature x out) is folded into the lane
    # dimension (width n_wide, multiple of 128) -> lane-dense MXU output.
    c2 = core2_ref[...]
    acc = jnp.dot(featL.astype(c2.dtype), c2,
                  preferred_element_type=jnp.float32)

    if n_trail:
        # Single concatenated selection matmul for ALL trailing factors (one
        # MXU weight load, one read of `pt`), then a fused chain of lane-dense
        # products; slices are 128-lane aligned since n_wide % 128 == 0.
        t_all = jnp.dot(pt, selT_ref[...], preferred_element_type=jnp.float32)
        for t in range(n_trail):
            acc = acc * t_all[:, t * n_wide:(t + 1) * n_wide]

    # Reduce the S**m trailing-feature groups down to OUT with one more MXU
    # matmul, emitting the TRANSPOSED (OUT_pad, TP) block so the store and the
    # HBM writeback are lane-dense (TP lanes) rather than OUT-lane masked.
    out_ref[...] = lax.dot_general(
        eredT_ref[...], acc,
        dimension_numbers=(((1,), (1,)), ((), ())),
        preferred_element_type=jnp.float32)


def _build_constants(K, S, OUT, n_lead, n_trail, n_wide, out_pad):
    """0/1 selection matrices (digit gather runs on the MXU) plus the
    transposed group-sum reduction matrix."""
    KS = K * S
    feat_l = S ** n_lead
    n = (S ** n_trail) * OUT

    selL = np.zeros((n_lead, KS, feat_l), np.float32)
    for k in range(n_lead):
        stride = S ** (n_lead - 1 - k)
        for a in range(feat_l):
            selL[k, k * S + (a // stride) % S, a] = 1.0

    selT = None
    if n_trail:
        selT = np.zeros((KS, n_trail * n_wide), np.float32)
        for t in range(n_trail):
            k = n_lead + t
            stride = S ** (K - 1 - k)
            for j in range(n):
                selT[k * S + ((j // OUT) // stride) % S, t * n_wide + j] = 1.0

    eredT = np.zeros((out_pad, n_wide), np.float32)
    for j in range(n):
        eredT[j % OUT, j] = 1.0

    return selL, selT, eredT


def eps_forward(core, x, *, tile_p=1024, use_bf16=False):
    """Forward pass of dctn.eps.EPS.

    core: shape (S,)*K + (OUT,) with K = kernel_size**2 * C
    x:    shape (C, B, H, W, S)
    returns (B, H-ks+1, W-ks+1, OUT) float32.

    use_bf16: feed the MXU bf16 operands (patches / selection matrices / core)
    with f32 accumulation -- fewer MXU passes and half the HBM traffic of the
    duplicated patches array on v6e/v7x, at bf16 input-rounding accuracy.
    """
    C, B, H, W, S = x.shape
    K = core.ndim - 1
    ks = math.isqrt(K // C)
    assert ks * ks * C == K and core.shape[:-1] == (S,) * K
    OUT = core.shape[-1]
    nH, nW = H - ks + 1, W - ks + 1
    P = B * nH * nW

    compute_dtype = jnp.bfloat16 if use_bf16 else jnp.float32

    # "align": shifted valid-conv windows, ordered (channel, dh, dw).
    # TODO(synk): for memory-bound configs, build the ks*ks*C windows in-kernel
    # from row slabs of x instead of materializing this K-times-duplicated
    # patches array in HBM.
    aligned = [x[c, :, dh:dh + nH, dw:dw + nW, :]
               for c in range(C) for dh in range(ks) for dw in range(ks)]
    patches = (jnp.stack(aligned, axis=3).astype(compute_dtype)
               .reshape(P, K * S))

    # Split K = FL (leading) + m (trailing) so the folded width N = S**m * OUT
    # is lane-dense (>=128); the minimal m also maximizes S**FL, i.e. the MXU
    # contraction depth of the core matmul (the real core FLOPs).
    m = 0
    while m < K - 1 and (S ** m) * OUT < 128:
        m += 1
    FL = K - m
    FEAT_L = S ** FL
    N = (S ** m) * OUT
    N_pad = _round_up(N, 128)      # zero-padded: slices stay 128-lane aligned
    OUT_pad = _round_up(OUT, 8)    # sublane-full transposed output block
    # TODO(synk): for very large cores (S**FL big), add an 'arbitrary' grid
    # axis chunking the S**FL contraction dim with a VMEM f32 accumulator
    # (and pipeline_mode=pl.Buffered(1) on the grid-invariant constants) so
    # the resident core2 block stays within v7x's 64 MiB VMEM.

    selL_np, selT_np, eredT_np = _build_constants(
        K, S, OUT, FL, m, N_pad, OUT_pad)
    selL = jnp.asarray(selL_np, dtype=compute_dtype)   # 0/1: exact in bf16
    eredT = jnp.asarray(eredT_np)                      # keep final reduce f32

    core2 = core.reshape(FEAT_L, N)
    if N_pad != N:
        core2 = jnp.pad(core2, ((0, 0), (0, N_pad - N)))
    core2 = core2.astype(compute_dtype)

    # No padding of P: ragged cdiv grid lets Pallas mask the boundary block,
    # saving a full extra HBM copy of the patches array.
    tile_p = max(128, min(_round_up(tile_p, 128), _round_up(P, 128)))
    grid = (pl.cdiv(P, tile_p),)

    in_specs = [pl.BlockSpec((tile_p, K * S), lambda i: (i, 0)),
                pl.BlockSpec(selL.shape, lambda i: (0, 0, 0))]
    inputs = [patches, selL]
    if m:   # skip the trailing-selection constant entirely when OUT >= 128
        selT = jnp.asarray(selT_np, dtype=compute_dtype)
        in_specs.append(pl.BlockSpec(selT.shape, lambda i: (0, 0)))
        inputs.append(selT)
    in_specs += [pl.BlockSpec((FEAT_L, N_pad), lambda i: (0, 0)),
                 pl.BlockSpec((OUT_pad, N_pad), lambda i: (0, 0))]
    inputs += [core2, eredT]

    elt = 2 if use_bf16 else 4
    const_bytes = ((selL.size + (selT_np.size if m else 0) + core2.size) * elt
                   + eredT.size * 4)
    # Rough per-step VMEM footprint (double-buffered blocks + live slabs),
    # clamped to [default scoped limit, v7x physical VMEM].
    vmem_est = (2 * tile_p * K * S * elt + 2 * OUT_pad * tile_p * 4
                + 2 * const_bytes + (m + 2) * tile_p * N_pad * 4 + (4 << 20))
    vmem_limit = int(min(max(vmem_est, 32 << 20), 64 << 20))

    flops_per_row = (2 * K * S * (FL * FEAT_L + m * N_pad)   # selection matmuls
                     + 2 * FEAT_L * N_pad                    # core matmul
                     + 2 * N_pad * OUT_pad                   # group-sum reduce
                     + (FL - 1) * FEAT_L + m * N_pad)        # elementwise prods
    cost = pl.CostEstimate(
        flops=int(P * flops_per_row),
        transcendentals=0,
        bytes_accessed=int(patches.size * elt + OUT_pad * P * 4 + const_bytes))

    out_t = pl.pallas_call(
        functools.partial(_eps_kernel, n_lead=FL, n_trail=m, n_wide=N_pad),
        out_shape=jax.ShapeDtypeStruct((OUT_pad, P), jnp.float32),
        grid=grid,
        in_specs=in_specs,
        out_specs=pl.BlockSpec((OUT_pad, tile_p), lambda i: (0, i)),
        compiler_params=pltpu.CompilerParams(
            dimension_semantics=("parallel",),
            vmem_limit_bytes=vmem_limit),
        cost_estimate=cost,
    )(*inputs)

    # (OUT_pad, P) -> (B, nH, nW, OUT); the small transpose is wrapper glue.
    return out_t[:OUT].T.reshape(B, nH, nW, OUT)


if __name__ == "__main__":
    # Small shapes consistent with the module.
    kernel_size, in_num_channels, in_size, out_size = 2, 2, 2, 4
    B, H, W = 2, 17, 17

    key = jax.random.PRNGKey(0)
    k_core, k_x = jax.random.split(key)

    K = kernel_size * kernel_size * in_num_channels
    # make_eps_unit_theoretical_output_std: std = total_in_dim_size ** -0.5
    std = float(in_size) ** (-0.5 * K)
    core = std * jax.random.normal(
        k_core, (in_size,) * K + (out_size,), dtype=jnp.float32)

    x = jax.random.normal(
        k_x, (in_num_channels, B, H, W, in_size), dtype=jnp.float32)

    out = jax.block_until_ready(eps_forward(core, x))

    # Pure-JAX reference mirroring dctn.eps.eps's contraction.
    nH, nW = H - kernel_size + 1, W - kernel_size + 1
    aligned = [x[c, :, dh:dh + nH, dw:dw + nW, :]
               for c in range(in_num_channels)
               for dh in range(kernel_size)
               for dw in range(kernel_size)]
    feat = None
    for v in aligned:
        feat = v if feat is None else (
            feat[..., :, None] * v[..., None, :]).reshape(B, nH, nW, -1)
    ref = feat @ core.reshape(-1, out_size)

    assert out.shape == (B, nH, nW, out_size)
    err = float(jnp.max(jnp.abs(out - ref)))
    assert jnp.allclose(out, ref, atol=1e-4, rtol=1e-4), err

    # bf16-fed MXU path (v6e/v7x): 0/1 selection matrices are exact in bf16,
    # patches/core are rounded; check with a loose relative Frobenius error.
    out_bf16 = jax.block_until_ready(eps_forward(core, x, use_bf16=True))
    rel = float(jnp.linalg.norm(out_bf16 - ref) / jnp.linalg.norm(ref))
    assert rel < 5e-2, rel

    print("KERNEL_OK")
</pallas_src>

<mosaic_0001>
module attributes {stable_mosaic.version = 11 : i64} {
  func.func @_eps_kernel(%arg0: i32, %arg1: memref<512x16xf32, #tpu.memory_space<vmem>>, %arg2: memref<3x16x8xf32, #tpu.memory_space<vmem>>, %arg3: memref<16x640xf32, #tpu.memory_space<vmem>>, %arg4: memref<8x128xf32, #tpu.memory_space<vmem>>, %arg5: memref<8x128xf32, #tpu.memory_space<vmem>>, %arg6: memref<8x512xf32, #tpu.memory_space<vmem>>) attributes {dimension_semantics = [#tpu.dimension_semantics<parallel>], iteration_bounds = array<i64: 1>, scalar_prefetch = 0 : i64, scratch_operands = 0 : i64, tpu.core_type = #tpu.core_type<tc>, window_params = [{transform_indices = @transform_0, window_bounds = array<i64: 512, 16>}, {pipeline_mode = #tpu.pipeline_mode<synchronous>, transform_indices = @transform_1, window_bounds = array<i64: 3, 16, 8>}, {pipeline_mode = #tpu.pipeline_mode<synchronous>, transform_indices = @transform_2, window_bounds = array<i64: 16, 640>}, {pipeline_mode = #tpu.pipeline_mode<synchronous>, transform_indices = @transform_3, window_bounds = array<i64: 8, 128>}, {pipeline_mode = #tpu.pipeline_mode<synchronous>, transform_indices = @transform_4, window_bounds = array<i64: 8, 128>}, {transform_indices = @transform_5, window_bounds = array<i64: 8, 512>}]} {
    %c0 = arith.constant 0 : index
    %c0_0 = arith.constant 0 : index
    %0 = vector.load %arg1[%c0, %c0_0] : memref<512x16xf32, #tpu.memory_space<vmem>>, vector<512x16xf32>
    %c0_1 = arith.constant 0 : index
    %c0_2 = arith.constant 0 : index
    %c0_3 = arith.constant 0 : index
    %1 = vector.load %arg2[%c0_1, %c0_2, %c0_3] : memref<3x16x8xf32, #tpu.memory_space<vmem>>, vector<1x16x8xf32>
    %2 = vector.shape_cast %1 : vector<1x16x8xf32> to vector<16x8xf32>
    %cst = arith.constant dense<0.000000e+00> : vector<512x8xf32>
    %3 = tpu.matmul %0, %2, %cst {dimension_numbers = #tpu.dot_dimension_numbers<[1], [0], [0], [1], [0, 0, 1, 1], [], []>} : vector<512x16xf32>, vector<16x8xf32>, vector<512x8xf32> -> vector<512x8xf32>
    %c1 = arith.constant 1 : index
    %c0_4 = arith.constant 0 : index
    %c0_5 = arith.constant 0 : index
    %4 = vector.load %arg2[%c1, %c0_4, %c0_5] : memref<3x16x8xf32, #tpu.memory_space<vmem>>, vector<1x16x8xf32>
    %5 = vector.shape_cast %4 : vector<1x16x8xf32> to vector<16x8xf32>
    %cst_6 = arith.constant dense<0.000000e+00> : vector<512x8xf32>
    %6 = tpu.matmul %0, %5, %cst_6 {dimension_numbers = #tpu.dot_dimension_numbers<[1], [0], [0], [1], [0, 0, 1, 1], [], []>} : vector<512x16xf32>, vector<16x8xf32>, vector<512x8xf32> -> vector<512x8xf32>
    %7 = arith.mulf %3, %6 : vector<512x8xf32>
    %c2 = arith.constant 2 : index
    %c0_7 = arith.constant 0 : index
    %c0_8 = arith.constant 0 : index
    %8 = vector.load %arg2[%c2, %c0_7, %c0_8] : memref<3x16x8xf32, #tpu.memory_space<vmem>>, vector<1x16x8xf32>
    %9 = vector.shape_cast %8 : vector<1x16x8xf32> to vector<16x8xf32>
    %cst_9 = arith.constant dense<0.000000e+00> : vector<512x8xf32>
    %10 = tpu.matmul %0, %9, %cst_9 {dimension_numbers = #tpu.dot_dimension_numbers<[1], [0], [0], [1], [0, 0, 1, 1], [], []>} : vector<512x16xf32>, vector<16x8xf32>, vector<512x8xf32> -> vector<512x8xf32>
    %11 = arith.mulf %7, %10 : vector<512x8xf32>
    %c0_10 = arith.constant 0 : index
    %c0_11 = arith.constant 0 : index
    %12 = vector.load %arg4[%c0_10, %c0_11] : memref<8x128xf32, #tpu.memory_space<vmem>>, vector<8x128xf32>
    %cst_12 = arith.constant dense<0.000000e+00> : vector<512x128xf32>
    %13 = tpu.matmul %11, %12, %cst_12 {dimension_numbers = #tpu.dot_dimension_numbers<[1], [0], [0], [1], [0, 0, 1, 1], [], []>} : vector<512x8xf32>, vector<8x128xf32>, vector<512x128xf32> -> vector<512x128xf32>
    %c0_13 = arith.constant 0 : index
    %c0_14 = arith.constant 0 : index
    %14 = vector.load %arg3[%c0_13, %c0_14] : memref<16x640xf32, #tpu.memory_space<vmem>>, vector<16x640xf32>
    %cst_15 = arith.constant dense<0.000000e+00> : vector<512x640xf32>
    %15 = tpu.matmul %0, %14, %cst_15 {dimension_numbers = #tpu.dot_dimension_numbers<[1], [0], [0], [1], [0, 0, 1, 1], [], []>} : vector<512x16xf32>, vector<16x640xf32>, vector<512x640xf32> -> vector<512x640xf32>
    %16 = vector.extract_strided_slice %15 {offsets = [0, 0], sizes = [512, 128], strides = [1, 1]} : vector<512x640xf32> to vector<512x128xf32>
    %17 = arith.mulf %13, %16 : vector<512x128xf32>
    %18 = vector.extract_strided_slice %15 {offsets = [0, 128], sizes = [512, 128], strides = [1, 1]} : vector<512x640xf32> to vector<512x128xf32>
    %19 = arith.mulf %17, %18 : vector<512x128xf32>
    %20 = vector.extract_strided_slice %15 {offsets = [0, 256], sizes = [512, 128], strides = [1, 1]} : vector<512x640xf32> to vector<512x128xf32>
    %21 = arith.mulf %19, %20 : vector<512x128xf32>
    %22 = vector.extract_strided_slice %15 {offsets = [0, 384], sizes = [512, 128], strides = [1, 1]} : vector<512x640xf32> to vector<512x128xf32>
    %23 = arith.mulf %21, %22 : vector<512x128xf32>
    %24 = vector.extract_strided_slice %15 {offsets = [0, 512], sizes = [512, 128], strides = [1, 1]} : vector<512x640xf32> to vector<512x128xf32>
    %25 = arith.mulf %23, %24 : vector<512x128xf32>
    %c0_16 = arith.constant 0 : index
    %c0_17 = arith.constant 0 : index
    %26 = vector.load %arg5[%c0_16, %c0_17] : memref<8x128xf32, #tpu.memory_space<vmem>>, vector<8x128xf32>
    %cst_18 = arith.constant dense<0.000000e+00> : vector<8x512xf32>
    %27 = tpu.matmul %26, %25, %cst_18 {dimension_numbers = #tpu.dot_dimension_numbers<[1], [1], [0], [0], [0, 0, 1, 0], [], []>} : vector<8x128xf32>, vector<512x128xf32>, vector<8x512xf32> -> vector<8x512xf32>
    %c0_19 = arith.constant 0 : index
    %c0_20 = arith.constant 0 : index
    %28 = vector.load %arg6[%c0_19, %c0_20] : memref<8x512xf32, #tpu.memory_space<vmem>>, vector<8x512xf32>
    tpu.vector_store %arg6[%c0_19, %c0_20], %27 {strides = array<i32>} : memref<8x512xf32, #tpu.memory_space<vmem>>, vector<8x512xf32>,
    return
  }
  func.func @transform_0(%arg0: i32) -> (i32, i32) {
    %c0_i32 = arith.constant 0 : i32
    %c0_i32_0 = arith.constant 0 : i32
    return %arg0, %c0_i32 : i32, i32
  }
  func.func @transform_1(%arg0: i32) -> (i32, i32, i32) {
    %c0_i32 = arith.constant 0 : i32
    %c0_i32_0 = arith.constant 0 : i32
    %c0_i32_1 = arith.constant 0 : i32
    %c0_i32_2 = arith.constant 0 : i32
    return %c0_i32, %c0_i32_0, %c0_i32_1 : i32, i32, i32
  }
  func.func @transform_2(%arg0: i32) -> (i32, i32) {
    %c0_i32 = arith.constant 0 : i32
    %c0_i32_0 = arith.constant 0 : i32
    %c0_i32_1 = arith.constant 0 : i32
    return %c0_i32, %c0_i32_0 : i32, i32
  }
  func.func @transform_3(%arg0: i32) -> (i32, i32) {
    %c0_i32 = arith.constant 0 : i32
    %c0_i32_0 = arith.constant 0 : i32
    %c0_i32_1 = arith.constant 0 : i32
    return %c0_i32, %c0_i32_0 : i32, i32
  }
  func.func @transform_4(%arg0: i32) -> (i32, i32) {
    %c0_i32 = arith.constant 0 : i32
    %c0_i32_0 = arith.constant 0 : i32
    %c0_i32_1 = arith.constant 0 : i32
    return %c0_i32, %c0_i32_0 : i32, i32
  }
  func.func @transform_5(%arg0: i32) -> (i32, i32) {
    %c0_i32 = arith.constant 0 : i32
    %c0_i32_0 = arith.constant 0 : i32
    return %c0_i32, %arg0 : i32, i32
  }
}

</mosaic_0001>

<bundles_post_ra>
// kernel: tpu_custom_call.1
= control target key start
LH: loop header
LB: loop body
LE: loop exit
PB: predicated region body
PF: predicated region fallthrough
CT: control target
= control target key end

     0   :  { %vm87_vm0 = vcmask 130048   ;;  %s8038_s0 = inlined_call_operand.vmem [shape: f32[512,16], index: 0, kind: input, shape index: {}]   ;;  %s8039_s1 = inlined_call_operand.vmem [shape: f32[3,16,8], index: 1, kind: input, shape index: {}]   ;;  %s8040_s2 = inlined_call_operand.vmem [shape: f32[16,640], index: 2, kind: input, shape index: {}]   ;;  %s8041_s3 = inlined_call_operand.vmem [shape: f32[8,128], index: 3, kind: input, shape index: {}]   ;;  %s8042_s4 = inlined_call_operand.vmem [shape: f32[8,128], index: 4, kind: input, shape index: {}]   ;;  %s8043_s5 = inlined_call_operand.hbm [shape: f32[8,512], index: 5, kind: output, shape index: {}]  }
   0x1   :  { %v85_v0 = vld [vmem:[%s8039_s1] sm:$0xff]  ;;  %v86_v1 = vld [vmem:[%s8039_s1 + $0x8] sm:$0xff]  ;;  %v5499_v4 = vld [vmem:[%s8038_s0 + $0x190] sm:$0xff] }
   0x2   :  { %v5492_v2 = vld [vmem:[%s8038_s0] sm:$0xff]  ;;  %v5269_v3 = vpack.c.bf16 %v86_v1, %v85_v0  ;;  %4850 = vmatprep.mubr.msk.f32.mxu1 %vm87_vm0, %v5499_v4  ;;  %v5506_v5 = vld [vmem:[%s8038_s0 + $0x8] sm:$0xff]  ;;  %v5511_v6 = vld [vmem:[%s8038_s0 + $0x198] sm:$0xff] }
   0x3   :  { %4775 = vmatprep.mubr.msk.f32.mxu0 %vm87_vm0, %v5492_v2  ;;  %v5516_v7 = vld [vmem:[%s8038_s0 + $0x10] sm:$0xff]  ;;  %v5521_v8 = vld [vmem:[%s8038_s0 + $0x1a0] sm:$0xff]  ;;  %v5534_v9 = vld [vmem:[%s8038_s0 + $0x18] sm:$0xff] }
   0x4   :  { %5270 = vmatprep.subr.bf16.mxu0 %v5269_v3  ;;  %5357 = vmatprep.subr.bf16.mxu1 %v5269_v3  ;;  %v5539_v10 = vld [vmem:[%s8038_s0 + $0x1a8] sm:$0xff]  ;;  %v5544_v11 = vld [vmem:[%s8038_s0 + $0x20] sm:$0xff]  ;;  %v5549_v12 = vld [vmem:[%s8038_s0 + $0x1b0] sm:$0xff] }
   0x5   :  { %5272 = vmatpush3.bf16.msra.mxu0 %v5269_v3  ;;  %5358 = vmatpush3.bf16.msra.mxu1 %v5269_v3  ;;  %v3986_v13 = vld [vmem:[%s8039_s1 + $0x10] sm:$0xff]  ;;  %v3987_v14 = vld [vmem:[%s8039_s1 + $0x18] sm:$0xff]  ;;  %v5568_v16 = vld [vmem:[%s8038_s0 + $0x28] sm:$0xff] }
   0x6   :  { %v5273_v15 = vpack.c.bf16 %v3987_v14, %v3986_v13  ;;  %v5573_v17 = vld [vmem:[%s8038_s0 + $0x1b8] sm:$0xff]  ;;  %v5578_v18 = vld [vmem:[%s8038_s0 + $0x30] sm:$0xff]  ;;  %v5583_v19 = vld [vmem:[%s8038_s0 + $0x1c0] sm:$0xff] }
   0x7   :  { %v5596_v20 = vld [vmem:[%s8038_s0 + $0x38] sm:$0xff]  ;;  %v5601_v21 = vld [vmem:[%s8038_s0 + $0x1c8] sm:$0xff]  ;;  %v5606_v22 = vld [vmem:[%s8038_s0 + $0x40] sm:$0xff] }
   0x8   :  { %4776 = vmatmul.mubr.msk.f32.vlgmr.msra.gmra.mrb[0].mxu0 %vm87_vm0, %v5506_v5  ;;  %4851 = vmatmul.mubr.msk.f32.vlgmr.msra.gmra.mrb[0].mxu1 %vm87_vm0, %v5511_v6  ;;  %v5611_v23 = vld [vmem:[%s8038_s0 + $0x1d0] sm:$0xff]  ;;  %v5624_v24 = vld [vmem:[%s8038_s0 + $0x48] sm:$0xff]  ;;  %v5629_v25 = vld [vmem:[%s8038_s0 + $0x1d8] sm:$0xff] }
   0x9   :  { %4778 = vmatprep.mubr.msk.f32.mxu0 %vm87_vm0, %v5516_v7  ;;  %4853 = vmatprep.mubr.msk.f32.mxu1 %vm87_vm0, %v5521_v8  ;;  %v5634_v26 = vld [vmem:[%s8038_s0 + $0x50] sm:$0xff]  ;;  %v5639_v27 = vld [vmem:[%s8038_s0 + $0x1e0] sm:$0xff]  ;;  %v4053_v29 = vld [vmem:[%s8039_s1 + $0x28] sm:$0xff] }
   0xa   :  { %5274 = vmatprep.subr.bf16.mxu1 %v5273_v15  ;;  %v4052_v28 = vld [vmem:[%s8039_s1 + $0x20] sm:$0xff] }
   0xb   :  { %5276 = vmatpush3.bf16.msra.mxu1 %v5273_v15 }
   0xc   :  { %4779 = vmatmul.mubr.msk.f32.gmra.mrb[2].mxu0 %vm87_vm0, %v5534_v9  ;;  %4854 = vmatmul.mubr.msk.f32.gmra.mrb[2].mxu1 %vm87_vm0, %v5539_v10 }
   0xd   :  { %4781 = vmatprep.mubr.msk.f32.mxu0 %vm87_vm0, %v5544_v11  ;;  %4856 = vmatprep.mubr.msk.f32.mxu1 %vm87_vm0, %v5549_v12 }
  0x10   :  { %4782 = vmatmul.mubr.msk.f32.gmra.mrb[4].mxu0 %vm87_vm0, %v5568_v16  ;;  %4857 = vmatmul.mubr.msk.f32.gmra.mrb[4].mxu1 %vm87_vm0, %v5573_v17 }
  0x11   :  { %4784 = vmatprep.mubr.msk.f32.mxu0 %vm87_vm0, %v5578_v18  ;;  %4859 = vmatprep.mubr.msk.f32.mxu1 %vm87_vm0, %v5583_v19 }
  0x14   :  { %4785 = vmatmul.mubr.msk.f32.gmra.mrb[6].mxu0 %vm87_vm0, %v5596_v20  ;;  %4860 = vmatmul.mubr.msk.f32.gmra.mrb[6].mxu1 %vm87_vm0, %v5601_v21 }
  0x15   :  { %4787 = vmatprep.mubr.msk.f32.mxu0 %vm87_vm0, %v5606_v22  ;;  %4862 = vmatprep.mubr.msk.f32.mxu1 %vm87_vm0, %v5611_v23 }
  0x18   :  { %4788 = vmatmul.mubr.msk.f32.gmra.mrb[8].mxu0 %vm87_vm0, %v5624_v24  ;;  %4863 = vmatmul.mubr.msk.f32.gmra.mrb[8].mxu1 %vm87_vm0, %v5629_v25 }
  0x19   :  { %10 = vsyncpa [#allocation3], 0  ;;  %4790 = vmatprep.mubr.msk.f32.mxu0 %vm87_vm0, %v5634_v26  ;;  %4865 = vmatprep.mubr.msk.f32.mxu1 %vm87_vm0, %v5639_v27  ;;  %v5658_v30 = vld [vmem:[%s8038_s0 + $0x58] sm:$0xff]  ;;  %v5663_v31 = vld [vmem:[%s8038_s0 + $0x1e8] sm:$0xff]  ;;  %v5277_v32 = vpack.c.bf16 %v4053_v29, %v4052_v28  ;;  %vm1570_vm1 = vcmask 64512  }
  0x1a   :  { %v5668_v33 = vld [vmem:[%s8038_s0 + $0x60] sm:$0xff]  ;;  %v5673_v34 = vld [vmem:[%s8038_s0 + $0x1f0] sm:$0xff]  ;;  %v5686_v35 = vld [vmem:[%s8038_s0 + $0x68] sm:$0xff] }
  0x1b   :  { %5278 = vmatprep.subr.bf16.mxu0 %v5277_v32  ;;  %v5691_v36 = vld [vmem:[%s8038_s0 + $0x1f8] sm:$0xff]  ;;  %v5696_v37 = vld [vmem:[%s8038_s0 + $0x70] sm:$0xff]  ;;  %v5714_v39 = vld [vmem:[%s8038_s0 + $0x80] sm:$0xff] }
  0x1c   :  { %4791 = vmatmul.mubr.msk.f32.gmra.mrb[10].mxu0 %vm87_vm0, %v5658_v30  ;;  %4866 = vmatmul.mubr.msk.f32.gmra.mrb[10].mxu1 %vm87_vm0, %v5663_v31  ;;  %v5709_v38 = vld [vmem:[%s8038_s0 + $0x78] sm:$0xff]  ;;  %v5727_v40 = vld [vmem:[%s8038_s0 + $0x88] sm:$0xff]  ;;  %v5732_v41 = vld [vmem:[%s8038_s0 + $0x90] sm:$0xff] }
  0x1d   :  { %4793 = vmatprep.mubr.msk.f32.mxu0 %vm87_vm0, %v5668_v33  ;;  %4868 = vmatprep.mubr.msk.f32.mxu1 %vm87_vm0, %v5673_v34  ;;  %v5745_v42 = vld [vmem:[%s8038_s0 + $0x98] sm:$0xff]  ;;  %v5750_v43 = vld [vmem:[%s8038_s0 + $0xa0] sm:$0xff]  ;;  %v5763_v44 = vld [vmem:[%s8038_s0 + $0xa8] sm:$0xff] }
  0x1e   :  { %5280 = vmatpush3.bf16.msra.mxu0 %v5277_v32  ;;  %v5768_v45 = vld [vmem:[%s8038_s0 + $0xb0] sm:$0xff]  ;;  %v5781_v46 = vld [vmem:[%s8038_s0 + $0xb8] sm:$0xff]  ;;  %v5786_v47 = vld [vmem:[%s8038_s0 + $0xc0] sm:$0xff] }
  0x1f   :  { %v5799_v48 = vld [vmem:[%s8038_s0 + $0xc8] sm:$0xff]  ;;  %v5804_v49 = vld [vmem:[%s8038_s0 + $0xd0] sm:$0xff]  ;;  %v5817_v50 = vld [vmem:[%s8038_s0 + $0xd8] sm:$0xff] }
  0x20   :  { %4794 = vmatmul.mubr.msk.f32.gmra.mrb[12].mxu0 %vm87_vm0, %v5686_v35  ;;  %4869 = vmatmul.mubr.msk.f32.gmra.mrb[12].mxu1 %vm87_vm0, %v5691_v36  ;;  %v5822_v51 = vld [vmem:[%s8038_s0 + $0xe0] sm:$0xff]  ;;  %v5835_v52 = vld [vmem:[%s8038_s0 + $0xe8] sm:$0xff]  ;;  %v5840_v53 = vld [vmem:[%s8038_s0 + $0xf0] sm:$0xff] }
  0x21   :  { %4796 = vmatprep.mubr.msk.f32.mxu0 %vm87_vm0, %v5696_v37  ;;  %4875 = vmatprep.mubr.msk.f32.mxu1 %vm87_vm0, %v5492_v2  ;;  %8092 = vst [vmem:[#allocation5_spill] sm:$0xff] %v5840_v53  ;;  %v5853_v54 = vld [vmem:[%s8038_s0 + $0xf8] sm:$0xff]  ;;  %v5858_v55 = vld [vmem:[%s8038_s0 + $0x100] sm:$0xff]  ;;  %v5871_v56 = vld [vmem:[%s8038_s0 + $0x108] sm:$0xff] }
  0x22   :  { %8093 = vst [vmem:[#allocation6_spill] sm:$0xff] %v5853_v54  ;;  %8094 = vst [vmem:[#allocation7_spill] sm:$0xff] %v5858_v55  ;;  %v5876_v57 = vld [vmem:[%s8038_s0 + $0x110] sm:$0xff]  ;;  %v5889_v58 = vld [vmem:[%s8038_s0 + $0x118] sm:$0xff] }
  0x23   :  { %8095 = vst [vmem:[#allocation8_spill] sm:$0xff] %v5871_v56  ;;  %8096 = vst [vmem:[#allocation9_spill] sm:$0xff] %v5876_v57  ;;  %v5894_v59 = vld [vmem:[%s8038_s0 + $0x120] sm:$0xff]  ;;  %v5907_v60 = vld [vmem:[%s8038_s0 + $0x128] sm:$0xff] }
  0x24   :  { %4797 = vmatmul.mubr.msk.f32.gmra.mrb[14].mxu0 %vm87_vm0, %v5709_v38  ;;  %4876 = vmatmul.mubr.msk.f32.vlgmr.msra.gmra.mrb[14].mxu1 %vm87_vm0, %v5506_v5  ;;  %v5912_v61 = vld [vmem:[%s8038_s0 + $0x130] sm:$0xff]  ;;  %v5925_v62 = vld [vmem:[%s8038_s0 + $0x138] sm:$0xff]  ;;  %v5930_v63 = vld [vmem:[%s8038_s0 + $0x140] sm:$0xff] }
  0x25   :  { %4799 = vmatprep.mubr.msk.f32.mxu0 %vm87_vm0, %v5714_v39  ;;  %4878 = vmatprep.mubr.msk.f32.mxu1 %vm87_vm0, %v5516_v7  ;;  %v5943_v0 = vld [vmem:[%s8038_s0 + $0x148] sm:$0xff]  ;;  %v5948_v1 = vld [vmem:[%s8038_s0 + $0x150] sm:$0xff]  ;;  %v5961_v3 = vld [vmem:[%s8038_s0 + $0x158] sm:$0xff] }
  0x26   :  { %v5966_v13 = vld [vmem:[%s8038_s0 + $0x160] sm:$0xff]  ;;  %v5979_v14 = vld [vmem:[%s8038_s0 + $0x168] sm:$0xff]  ;;  %v5984_v15 = vld [vmem:[%s8038_s0 + $0x170] sm:$0xff] }
  0x27   :  { %v5997_v28 = vld [vmem:[%s8038_s0 + $0x178] sm:$0xff]  ;;  %v6002_v29 = vld [vmem:[%s8038_s0 + $0x180] sm:$0xff]  ;;  %v6015_v32 = vld [vmem:[%s8038_s0 + $0x188] sm:$0xff] }
  0x28   :  { %4800 = vmatmul.mubr.msk.f32.gmra.mrb[16].mxu0 %vm87_vm0, %v5727_v40  ;;  %4879 = vmatmul.mubr.msk.f32.gmra.mrb[16].mxu1 %vm87_vm0, %v5534_v9 }
  0x29   :  { %4802 = vmatprep.mubr.msk.f32.mxu0 %vm87_vm0, %v5732_v41  ;;  %4881 = vmatprep.mubr.msk.f32.mxu1 %vm87_vm0, %v5544_v11 }
  0x2c   :  { %4803 = vmatmul.mubr.msk.f32.gmra.mrb[18].mxu0 %vm87_vm0, %v5745_v42  ;;  %4882 = vmatmul.mubr.msk.f32.gmra.mrb[18].mxu1 %vm87_vm0, %v5568_v16 }
  0x2d   :  { %4805 = vmatprep.mubr.msk.f32.mxu0 %vm87_vm0, %v5750_v43  ;;  %4884 = vmatprep.mubr.msk.f32.mxu1 %vm87_vm0, %v5578_v18 }
  0x30   :  { %4806 = vmatmul.mubr.msk.f32.gmra.mrb[20].mxu0 %vm87_vm0, %v5763_v44  ;;  %4885 = vmatmul.mubr.msk.f32.gmra.mrb[20].mxu1 %vm87_vm0, %v5596_v20 }
  0x31   :  { %4808 = vmatprep.mubr.msk.f32.mxu0 %vm87_vm0, %v5768_v45  ;;  %4887 = vmatprep.mubr.msk.f32.mxu1 %vm87_vm0, %v5606_v22 }
  0x34   :  { %4809 = vmatmul.mubr.msk.f32.gmra.mrb[22].mxu0 %vm87_vm0, %v5781_v46  ;;  %4888 = vmatmul.mubr.msk.f32.gmra.mrb[22].mxu1 %vm87_vm0, %v5624_v24 }
  0x35   :  { %4811 = vmatprep.mubr.msk.f32.mxu0 %vm87_vm0, %v5786_v47  ;;  %4890 = vmatprep.mubr.msk.f32.mxu1 %vm87_vm0, %v5634_v26 }
  0x38   :  { %4812 = vmatmul.mubr.msk.f32.gmra.mrb[24].mxu0 %vm87_vm0, %v5799_v48  ;;  %4891 = vmatmul.mubr.msk.f32.gmra.mrb[24].mxu1 %vm87_vm0, %v5658_v30 }
  0x39   :  { %4814 = vmatprep.mubr.msk.f32.mxu0 %vm87_vm0, %v5804_v49  ;;  %4893 = vmatprep.mubr.msk.f32.mxu1 %vm87_vm0, %v5668_v33 }
  0x3c   :  { %4815 = vmatmul.mubr.msk.f32.gmra.mrb[26].mxu0 %vm87_vm0, %v5817_v50  ;;  %4894 = vmatmul.mubr.msk.f32.gmra.mrb[26].mxu1 %vm87_vm0, %v5686_v35 }
  0x3d   :  { %4817 = vmatprep.mubr.msk.f32.mxu0 %vm87_vm0, %v5822_v51  ;;  %4896 = vmatprep.mubr.msk.f32.mxu1 %vm87_vm0, %v5696_v37 }
  0x40   :  { %4818 = vmatmul.mubr.msk.f32.gmra.mrb[28].mxu0 %vm87_vm0, %v5835_v52  ;;  %4897 = vmatmul.mubr.msk.f32.gmra.mrb[28].mxu1 %vm87_vm0, %v5709_v38 }
  0x41   :  { %4820 = vmatprep.mubr.msk.f32.mxu0 %vm87_vm0, %v5840_v53  ;;  %4899 = vmatprep.mubr.msk.f32.mxu1 %vm87_vm0, %v5714_v39 }
  0x44   :  { %4821 = vmatmul.mubr.msk.f32.gmra.mrb[30].mxu0 %vm87_vm0, %v5853_v54  ;;  %4900 = vmatmul.mubr.msk.f32.gmra.mrb[30].mxu1 %vm87_vm0, %v5727_v40 }
  0x45   :  { %4823 = vmatprep.mubr.msk.f32.mxu0 %vm87_vm0, %v5858_v55  ;;  %4902 = vmatprep.mubr.msk.f32.mxu1 %vm87_vm0, %v5732_v41 }
  0x48   :  { %4824 = vmatmul.mubr.msk.f32.gmra.mrb[32].mxu0 %vm87_vm0, %v5871_v56  ;;  %4903 = vmatmul.mubr.msk.f32.gmra.mrb[32].mxu1 %vm87_vm0, %v5745_v42 }
  0x49   :  { %4826 = vmatprep.mubr.msk.f32.mxu0 %vm87_vm0, %v5876_v57  ;;  %4905 = vmatprep.mubr.msk.f32.mxu1 %vm87_vm0, %v5750_v43 }
  0x4c   :  { %4827 = vmatmul.mubr.msk.f32.gmra.mrb[34].mxu0 %vm87_vm0, %v5889_v58  ;;  %4906 = vmatmul.mubr.msk.f32.gmra.mrb[34].mxu1 %vm87_vm0, %v5763_v44 }
  0x4d   :  { %4829 = vmatprep.mubr.msk.f32.mxu0 %vm87_vm0, %v5894_v59  ;;  %4908 = vmatprep.mubr.msk.f32.mxu1 %vm87_vm0, %v5768_v45 }
  0x50   :  { %4830 = vmatmul.mubr.msk.f32.gmra.mrb[36].mxu0 %vm87_vm0, %v5907_v60  ;;  %4909 = vmatmul.mubr.msk.f32.gmra.mrb[36].mxu1 %vm87_vm0, %v5781_v46 }
  0x51   :  { %4832 = vmatprep.mubr.msk.f32.mxu0 %vm87_vm0, %v5912_v61  ;;  %4911 = vmatprep.mubr.msk.f32.mxu1 %vm87_vm0, %v5786_v47 }
  0x54   :  { %4833 = vmatmul.mubr.msk.f32.gmra.mrb[38].mxu0 %vm87_vm0, %v5925_v62  ;;  %4912 = vmatmul.mubr.msk.f32.gmra.mrb[38].mxu1 %vm87_vm0, %v5799_v48 }
  0x55   :  { %4835 = vmatprep.mubr.msk.f32.mxu0 %vm87_vm0, %v5930_v63  ;;  %4914 = vmatprep.mubr.msk.f32.mxu1 %vm87_vm0, %v5804_v49 }
  0x58   :  { %4836 = vmatmul.mubr.msk.f32.gmra.mrb[40].mxu0 %vm87_vm0, %v5943_v0  ;;  %4915 = vmatmul.mubr.msk.f32.gmra.mrb[40].mxu1 %vm87_vm0, %v5817_v50 }
  0x59   :  { %4838 = vmatprep.mubr.msk.f32.mxu0 %vm87_vm0, %v5948_v1  ;;  %4917 = vmatprep.mubr.msk.f32.mxu1 %vm87_vm0, %v5822_v51 }
  0x5c   :  { %4839 = vmatmul.mubr.msk.f32.gmra.mrb[42].mxu0 %vm87_vm0, %v5961_v3  ;;  %4918 = vmatmul.mubr.msk.f32.gmra.mrb[42].mxu1 %vm87_vm0, %v5835_v52 }
  0x5d   :  { %4841 = vmatprep.mubr.msk.f32.mxu0 %vm87_vm0, %v5966_v13  ;;  %4920 = vmatprep.mubr.msk.f32.mxu1 %vm87_vm0, %v5840_v53  ;;  %v2148_v53 = vld [vmem:[%s8040_s2] sm:$0xff] }
  0x60   :  { %4842 = vmatmul.mubr.msk.f32.gmra.mrb[44].mxu0 %vm87_vm0, %v5979_v14  ;;  %4921 = vmatmul.mubr.msk.f32.gmra.mrb[44].mxu1 %vm87_vm0, %v5853_v54  ;;  %v2154_v54 = vld [vmem:[%s8040_s2 + $0x30] sm:$0xff] }
  0x61   :  { %4844 = vmatprep.mubr.msk.f32.mxu0 %vm87_vm0, %v5984_v15  ;;  %4923 = vmatprep.mubr.msk.f32.mxu1 %vm87_vm0, %v5858_v55  ;;  %v2149_v55 = vld [vmem:[%s8040_s2 + $0x8] sm:$0xff] }
  0x64   :  { %4845 = vmatmul.mubr.msk.f32.gmra.mrb[46].mxu0 %vm87_vm0, %v5997_v28  ;;  %4924 = vmatmul.mubr.msk.f32.gmra.mrb[46].mxu1 %vm87_vm0, %v5871_v56  ;;  %v5281_v56 = vpack.c.bf16 %v2154_v54, %v2149_v55  ;;  %v8098_v55 = vld [vmem:[#allocation6_spill] sm:$0xff] }
  0x65   :  { %4847 = vmatprep.mubr.msk.f32.mxu0 %vm87_vm0, %v6002_v29  ;;  %4926 = vmatprep.mubr.msk.f32.mxu1 %vm87_vm0, %v5876_v57  ;;  %v2153_v57 = vld [vmem:[%s8040_s2 + $0x28] sm:$0xff] }
  0x66   :  { %5282 = vmatprep.subr.bf16.mxu0 %v5281_v56  ;;  %v5283_v54 = vpack.c.bf16 %v2153_v57, %v2148_v53  ;;  %v8097_v53 = vld [vmem:[#allocation5_spill] sm:$0xff]  ;;  %v8099_v56 = vld [vmem:[#allocation7_spill] sm:$0xff]  ;;  %v8100_v57 = vld [vmem:[#allocation8_spill] sm:$0xff] }
  0x68   :  { %4848 = vmatmul.mubr.msk.f32.gmra.mrb[48].mxu0 %vm87_vm0, %v6015_v32  ;;  %4927 = vmatmul.mubr.msk.f32.gmra.mrb[48].mxu1 %vm87_vm0, %v5889_v58 }
  0x69   :  { %4929 = vmatprep.mubr.msk.f32.mxu1 %vm87_vm0, %v5894_v59  ;;  %4975 = vmatprep.mubr.msk.f32.mxu0 %vm87_vm0, %v5492_v2 }
  0x6c   :  { %4930 = vmatmul.mubr.msk.f32.gmra.mrb[50].mxu1 %vm87_vm0, %v5907_v60  ;;  %4976 = vmatmul.mubr.msk.f32.vlgmr.msra.gmra.mrb[50].mxu0 %vm87_vm0, %v5506_v5 }
  0x6d   :  { %4932 = vmatprep.mubr.msk.f32.mxu1 %vm87_vm0, %v5912_v61  ;;  %4978 = vmatprep.mubr.msk.f32.mxu0 %vm87_vm0, %v5516_v7 }
  0x6e   :  { %5284 = vmatpush1.bf16.msra.mxu0 %v5283_v54  ;;  %v8101_v54 = vld [vmem:[#allocation9_spill] sm:$0xff] }
  0x70   :  { %4933 = vmatmul.mubr.msk.f32.gmra.mrb[52].mxu1 %vm87_vm0, %v5925_v62  ;;  %4979 = vmatmul.mubr.msk.f32.gmra.mrb[52].mxu0 %vm87_vm0, %v5534_v9 }
  0x71   :  { %4935 = vmatprep.mubr.msk.f32.mxu1 %vm87_vm0, %v5930_v63  ;;  %4981 = vmatprep.mubr.msk.f32.mxu0 %vm87_vm0, %v5544_v11 }
  0x74   :  { %4936 = vmatmul.mubr.msk.f32.gmra.mrb[54].mxu1 %vm87_vm0, %v5943_v0  ;;  %4982 = vmatmul.mubr.msk.f32.gmra.mrb[54].mxu0 %vm87_vm0, %v5568_v16 }
  0x75   :  { %4938 = vmatprep.mubr.msk.f32.mxu1 %vm87_vm0, %v5948_v1  ;;  %4984 = vmatprep.mubr.msk.f32.mxu0 %vm87_vm0, %v5578_v18 }
  0x78   :  { %4939 = vmatmul.mubr.msk.f32.gmra.mrb[56].mxu1 %vm87_vm0, %v5961_v3  ;;  %4985 = vmatmul.mubr.msk.f32.gmra.mrb[56].mxu0 %vm87_vm0, %v5596_v20 }
  0x79   :  { %4941 = vmatprep.mubr.msk.f32.mxu1 %vm87_vm0, %v5966_v13  ;;  %4987 = vmatprep.mubr.msk.f32.mxu0 %vm87_vm0, %v5606_v22 }
  0x7c   :  { %4942 = vmatmul.mubr.msk.f32.gmra.mrb[58].mxu1 %vm87_vm0, %v5979_v14  ;;  %4988 = vmatmul.mubr.msk.f32.gmra.mrb[58].mxu0 %vm87_vm0, %v5624_v24 }
  0x7d   :  { %4944 = vmatprep.mubr.msk.f32.mxu1 %vm87_vm0, %v5984_v15  ;;  %4990 = vmatprep.mubr.msk.f32.mxu0 %vm87_vm0, %v5634_v26 }
  0x80   :  { %4945 = vmatmul.mubr.msk.f32.gmra.mrb[60].mxu1 %vm87_vm0, %v5997_v28  ;;  %4991 = vmatmul.mubr.msk.f32.gmra.mrb[60].mxu0 %vm87_vm0, %v5658_v30 }
  0x81   :  { %4947 = vmatprep.mubr.msk.f32.mxu1 %vm87_vm0, %v6002_v29  ;;  %4993 = vmatprep.mubr.msk.f32.mxu0 %vm87_vm0, %v5668_v33 }
  0x84   :  { %4948 = vmatmul.mubr.msk.f32.gmra.mrb[62].mxu1 %vm87_vm0, %v6015_v32  ;;  %4994 = vmatmul.mubr.msk.f32.gmra.mrb[62].mxu0 %vm87_vm0, %v5686_v35 }
  0x85   :  { %4950 = vmatprep.mubr.msk.f32.mxu1 %vm87_vm0, %v5499_v4  ;;  %4996 = vmatprep.mubr.msk.f32.mxu0 %vm87_vm0, %v5696_v37 }
  0x88   :  { %4951 = vmatmul.mubr.msk.f32.gmra.mrb[64].mxu1 %vm87_vm0, %v5511_v6  ;;  %4997 = vmatmul.mubr.msk.f32.gmra.mrb[64].mxu0 %vm87_vm0, %v5709_v38 }
  0x89   :  { %4953 = vmatprep.mubr.msk.f32.mxu1 %vm87_vm0, %v5521_v8  ;;  %4999 = vmatprep.mubr.msk.f32.mxu0 %vm87_vm0, %v5714_v39 }
  0x8c   :  { %4954 = vmatmul.mubr.msk.f32.gmra.mrb[66].mxu1 %vm87_vm0, %v5539_v10  ;;  %5000 = vmatmul.mubr.msk.f32.gmra.mrb[66].mxu0 %vm87_vm0, %v5727_v40 }
  0x8d   :  { %4956 = vmatprep.mubr.msk.f32.mxu1 %vm87_vm0, %v5549_v12  ;;  %5002 = vmatprep.mubr.msk.f32.mxu0 %vm87_vm0, %v5732_v41 }
  0x90   :  { %4957 = vmatmul.mubr.msk.f32.gmra.mrb[68].mxu1 %vm87_vm0, %v5573_v17  ;;  %5003 = vmatmul.mubr.msk.f32.gmra.mrb[68].mxu0 %vm87_vm0, %v5745_v42 }
  0x91   :  { %4959 = vmatprep.mubr.msk.f32.mxu1 %vm87_vm0, %v5583_v19  ;;  %5005 = vmatprep.mubr.msk.f32.mxu0 %vm87_vm0, %v5750_v43 }
  0x94   :  { %4960 = vmatmul.mubr.msk.f32.gmra.mrb[70].mxu1 %vm87_vm0, %v5601_v21  ;;  %5006 = vmatmul.mubr.msk.f32.gmra.mrb[70].mxu0 %vm87_vm0, %v5763_v44 }
  0x95   :  { %4962 = vmatprep.mubr.msk.f32.mxu1 %vm87_vm0, %v5611_v23  ;;  %5008 = vmatprep.mubr.msk.f32.mxu0 %vm87_vm0, %v5768_v45 }
  0x98   :  { %4963 = vmatmul.mubr.msk.f32.gmra.mrb[72].mxu1 %vm87_vm0, %v5629_v25  ;;  %5009 = vmatmul.mubr.msk.f32.gmra.mrb[72].mxu0 %vm87_vm0, %v5781_v46 }
  0x99   :  { %4965 = vmatprep.mubr.msk.f32.mxu1 %vm87_vm0, %v5639_v27  ;;  %5011 = vmatprep.mubr.msk.f32.mxu0 %vm87_vm0, %v5786_v47 }
  0x9c   :  { %4966 = vmatmul.mubr.msk.f32.gmra.mrb[74].mxu1 %vm87_vm0, %v5663_v31  ;;  %5012 = vmatmul.mubr.msk.f32.gmra.mrb[74].mxu0 %vm87_vm0, %v5799_v48 }
  0x9d   :  { %4968 = vmatprep.mubr.msk.f32.mxu1 %vm87_vm0, %v5673_v34  ;;  %5014 = vmatprep.mubr.msk.f32.mxu0 %vm87_vm0, %v5804_v49 }
  0xa0   :  { %4969 = vmatmul.mubr.msk.f32.gmra.mrb[76].mxu1 %vm87_vm0, %v5691_v36  ;;  %5015 = vmatmul.mubr.msk.f32.gmra.mrb[76].mxu0 %vm87_vm0, %v5817_v50 }
  0xa1   :  { %5017 = vmatprep.mubr.msk.f32.mxu0 %vm87_vm0, %v5822_v51 }
  0xa4   :  { %5018 = vmatmul.mubr.msk.f32.gmra.mrb[78].mxu0 %vm87_vm0, %v5835_v52 }
  0xa5   :  { %5020 = vmatprep.mubr.msk.f32.mxu0 %vm87_vm0, %v8097_v53 }
  0xa8   :  { %5021 = vmatmul.mubr.msk.f32.gmra.mrb[80].mxu0 %vm87_vm0, %v8098_v55 }
  0xa9   :  { %5023 = vmatprep.mubr.msk.f32.mxu0 %vm87_vm0, %v8099_v56 }
  0xac   :  { %5024 = vmatmul.mubr.msk.f32.gmra.mrb[82].mxu0 %vm87_vm0, %v8100_v57 }
  0xad   :  { %5026 = vmatprep.mubr.msk.f32.mxu0 %vm87_vm0, %v8101_v54 }
  0xb0   :  { %5027 = vmatmul.mubr.msk.f32.gmra.mrb[84].mxu0 %vm87_vm0, %v5889_v58  ;;  %v1569_v58 = vld [vmem:[%s8041_s3] sm:$0xff] }
  0xb1   :  { %5029 = vmatprep.mubr.msk.f32.mxu0 %vm87_vm0, %v5894_v59  ;;  %5071 = vmatprep.subr.mxu1 %v1569_v58 }
  0xb2   :  { %5072 = vmatpush3.msra.mxu1 %v1569_v58 }
  0xb4   :  { %5030 = vmatmul.mubr.msk.f32.gmra.mrb[86].mxu0 %vm87_vm0, %v5907_v60 }
  0xb5   :  { %5032 = vmatprep.mubr.msk.f32.mxu0 %vm87_vm0, %v5912_v61 }
  0xb8   :  { %5033 = vmatmul.mubr.msk.f32.gmra.mrb[88].mxu0 %vm87_vm0, %v5925_v62 }
  0xb9   :  { %5035 = vmatprep.mubr.msk.f32.mxu0 %vm87_vm0, %v5930_v63 }
  0xbc   :  { %5036 = vmatmul.mubr.msk.f32.gmra.mrb[90].mxu0 %vm87_vm0, %v5943_v0  ;;  %v8054_v0 = vmov 0.0  }
  0xbd   :  { %5038 = vmatprep.mubr.msk.f32.mxu0 %vm87_vm0, %v5948_v1 }
  0xc0   :  { %5039 = vmatmul.mubr.msk.f32.gmra.mrb[92].mxu0 %vm87_vm0, %v5961_v3 }
  0xc1   :  { %5041 = vmatprep.mubr.msk.f32.mxu0 %vm87_vm0, %v5966_v13 }
  0xc4   :  { %5042 = vmatmul.mubr.msk.f32.gmra.mrb[94].mxu0 %vm87_vm0, %v5979_v14 }
  0xc5   :  { %5044 = vmatprep.mubr.msk.f32.mxu0 %vm87_vm0, %v5984_v15 }
  0xc8   :  { %5045 = vmatmul.mubr.msk.f32.gmra.mrb[96].mxu0 %vm87_vm0, %v5997_v28 }
  0xc9   :  { %5047 = vmatprep.mubr.msk.f32.mxu0 %vm87_vm0, %v6002_v29 }
  0xcc   :  { %5048 = vmatmul.mubr.msk.f32.gmra.mrb[98].mxu0 %vm87_vm0, %v6015_v32 }
  0xcd   :  { %5050 = vmatprep.mubr.msk.f32.mxu0 %vm87_vm0, %v5499_v4 }
  0xd0   :  { %5051 = vmatmul.mubr.msk.f32.gmra.mrb[100].mxu0 %vm87_vm0, %v5511_v6 }
  0xd1   :  { %5053 = vmatprep.mubr.msk.f32.mxu0 %vm87_vm0, %v5521_v8 }
  0xd4   :  { %5054 = vmatmul.mubr.msk.f32.gmra.mrb[102].mxu0 %vm87_vm0, %v5539_v10 }
  0xd5   :  { %5056 = vmatprep.mubr.msk.f32.mxu0 %vm87_vm0, %v5549_v12 }
  0xd8   :  { %5057 = vmatmul.mubr.msk.f32.gmra.mrb[104].mxu0 %vm87_vm0, %v5573_v17 }
  0xd9   :  { %5059 = vmatprep.mubr.msk.f32.mxu0 %vm87_vm0, %v5583_v19 }
  0xdb   :  { %v4777_v59 = vpop.f32.mrb[0].mxu0  ;;  %v6206_v4 = vpop.f32.mrb[0].mxu1 }
  0xdc   :  { %v346_v60 = vpop.f32.mrb[1].mxu0  ;;  %5060 = vmatmul.mubr.msk.f32.gmra.mrb[106].mxu0 %vm87_vm0, %v5601_v21  ;;  %v6210_v6 = vpop.f32.mrb[1].mxu1 }
  0xdd   :  { %5062 = vmatprep.mubr.msk.f32.mxu0 %vm87_vm0, %v5611_v23 }
  0xdf   :  { %v4780_v8 = vpop.f32.mrb[2].mxu0  ;;  %v6214_v10 = vpop.f32.mrb[2].mxu1 }
  0xe0   :  { %v356_v12 = vpop.f32.mrb[3].mxu0  ;;  %5063 = vmatmul.mubr.msk.f32.gmra.mrb[108].mxu0 %vm87_vm0, %v5629_v25  ;;  %v6218_v17 = vpop.f32.mrb[3].mxu1 }
  0xe1   :  { %8102 = vst [vmem:[#allocation10_spill] sm:$0xff] %v6218_v17  ;;  %5065 = vmatprep.mubr.msk.f32.mxu0 %vm87_vm0, %v5639_v27 }
  0xe3   :  { %v4783_v19 = vpop.f32.mrb[4].mxu0  ;;  %v6222_v61 = vpop.f32.mrb[4].mxu1 }
  0xe4   :  { %8103 = vst [vmem:[#allocation11_spill] sm:$0xff] %v6222_v61  ;;  %v366_v21 = vpop.f32.mrb[5].mxu0  ;;  %5066 = vmatmul.mubr.msk.f32.gmra.mrb[110].mxu0 %vm87_vm0, %v5663_v31  ;;  %v6226_v23 = vpop.f32.mrb[5].mxu1 }
  0xe5   :  { %8104 = vst [vmem:[#allocation12_spill] sm:$0xff] %v6226_v23  ;;  %5068 = vmatprep.mubr.msk.f32.mxu0 %vm87_vm0, %v5673_v34 }
  0xe7   :  { %v4786_v62 = vpop.f32.mrb[6].mxu0  ;;  %v6230_v63 = vpop.f32.mrb[6].mxu1 }
  0xe8   :  { %8105 = vst [vmem:[#allocation13_spill] sm:$0xff] %v6230_v63  ;;  %v376_v25 = vpop.f32.mrb[7].mxu0  ;;  %5069 = vmatmul.mubr.msk.f32.gmra.mrb[112].mxu0 %vm87_vm0, %v5691_v36  ;;  %v6234_v27 = vpop.f32.mrb[7].mxu1 }
  0xe9   :  { %8106 = vst [vmem:[#allocation14_spill] sm:$0xff] %v6234_v27  ;;  %2222 = vmatprep.mubr.f32.mxu0 %v8054_v0 }
  0xeb   :  { %v4789_v1 = vpop.f32.mrb[8].mxu0  ;;  %v6237_v3 = vpop.f32.mrb[8].mxu1 }
  0xec   :  { %8107 = vst [vmem:[#allocation15_spill] sm:$0xff] %v6237_v3  ;;  %v386_v31 = vpop.f32.mrb[9].mxu0  ;;  %4182 = vmatmul.mubr.msk.f32.vlgmr.msra.gmra.mrb[114].mxu0 %vm87_vm0, %v5492_v2  ;;  %v6241_v34 = vpop.f32.mrb[9].mxu1 }
  0xed   :  { %8108 = vst [vmem:[#allocation16_spill] sm:$0xff] %v6241_v34  ;;  %2228 = vmatprep.mubr.f32.mxu0 %v8054_v0 }
  0xef   :  { %v4792_v13 = vpop.f32.mrb[10].mxu0  ;;  %v6244_v14 = vpop.f32.mrb[10].mxu1 }
  0xf0   :  { %8109 = vst [vmem:[#allocation17_spill] sm:$0xff] %v6244_v14  ;;  %v396_v36 = vpop.f32.mrb[11].mxu0  ;;  %4183 = vmatmul.mubr.msk.f32.gmra.mrb[116].mxu0 %vm87_vm0, %v5506_v5  ;;  %v6248_v15 = vpop.f32.mrb[11].mxu1 }
  0xf1   :  { %8110 = vst [vmem:[#allocation18_spill] sm:$0xff] %v6248_v15  ;;  %2234 = vmatprep.mubr.f32.mxu0 %v8054_v0 }
  0xf3   :  { %v4795_v28 = vpop.f32.mrb[12].mxu0  ;;  %v6251_v29 = vpop.f32.mrb[12].mxu1 }
  0xf4   :  { %8111 = vst [vmem:[#allocation19_spill] sm:$0xff] %v6251_v29  ;;  %v406_v32 = vpop.f32.mrb[13].mxu0  ;;  %4184 = vmatmul.mubr.msk.f32.gmra.mrb[118].mxu0 %vm87_vm0, %v5516_v7  ;;  %v6255_v2 = vpop.f32.mrb[13].mxu1 }
  0xf5   :  { %8112 = vst [vmem:[#allocation20_spill] sm:$0xff] %v6255_v2  ;;  %2240 = vmatprep.mubr.f32.mxu0 %v8054_v0 }
  0xf7   :  { %v4798_v58 = vpop.f32.mrb[14].mxu0  ;;  %v4877_v54 = vpop.f32.mrb[14].mxu1 }
  0xf8   :  { %v416_v57 = vpop.f32.mrb[15].mxu0  ;;  %v734_v14 = vpop.f32.mrb[15].mxu1  ;;  %4185 = vmatmul.mubr.msk.f32.gmra.mrb[120].mxu0 %vm87_vm0, %v5534_v9  ;;  %v6260_v5 = vmul.f32 %v4877_v54, %v4777_v59 }
  0xf9   :  { %2246 = vmatprep.mubr.f32.mxu0 %v8054_v0  ;;  %v6263_v29 = vmul.f32 %v734_v14, %v346_v60 }
  0xfb   :  { %v4801_v15 = vpop.f32.mrb[16].mxu0  ;;  %v4880_v34 = vpop.f32.mrb[16].mxu1 }
  0xfc   :  { %v426_v7 = vpop.f32.mrb[17].mxu0  ;;  %v744_v56 = vpop.f32.mrb[17].mxu1  ;;  %4186 = vmatmul.mubr.msk.f32.gmra.mrb[122].mxu0 %vm87_vm0, %v5544_v11  ;;  %v6267_v2 = vmul.f32 %v4880_v34, %v4780_v8 }
  0xfd   :  { %2252 = vmatprep.mubr.f32.mxu0 %v8054_v0  ;;  %v6270_v3 = vmul.f32 %v744_v56, %v356_v12 }
  0xff   :  { %v4804_v9 = vpop.f32.mrb[18].mxu0  ;;  %v4883_v54 = vpop.f32.mrb[18].mxu1 }
 0x100   :  { %v6272_v59 = vmul.f32 %v4883_v54, %v4783_v19  ;;  %v436_v27 = vpop.f32.mrb[19].mxu0  ;;  %v754_v60 = vpop.f32.mrb[19].mxu1  ;;  %4187 = vmatmul.mubr.msk.f32.gmra.mrb[124].mxu0 %vm87_vm0, %v5568_v16 }
 0x101   :  { %v6276_v14 = vmul.f32 %v754_v60, %v366_v21  ;;  %2258 = vmatprep.mubr.f32.mxu0 %v8054_v0 }
 0x103   :  { %v4807_v11 = vpop.f32.mrb[20].mxu0  ;;  %v4886_v8 = vpop.f32.mrb[20].mxu1 }
 0x104   :  { %v6279_v34 = vmul.f32 %v4886_v8, %v4786_v62  ;;  %v446_v55 = vpop.f32.mrb[21].mxu0  ;;  %v764_v56 = vpop.f32.mrb[21].mxu1  ;;  %4188 = vmatmul.mubr.msk.f32.gmra.mrb[126].mxu0 %vm87_vm0, %v5578_v18 }
 0x105   :  { %v6283_v12 = vmul.f32 %v764_v56, %v376_v25  ;;  %2264 = vmatprep.mubr.f32.mxu0 %v8054_v0 }
 0x107   :  { %v4810_v19 = vpop.f32.mrb[22].mxu0  ;;  %v4889_v54 = vpop.f32.mrb[22].mxu1 }
 0x108   :  { %v6286_v16 = vmul.f32 %v4889_v54, %v4789_v1  ;;  %v456_v21 = vpop.f32.mrb[23].mxu0  ;;  %v774_v60 = vpop.f32.mrb[23].mxu1  ;;  %4189 = vmatmul.mubr.msk.f32.gmra.mrb[128].mxu0 %vm87_vm0, %v5596_v20 }
 0x109   :  { %v6290_v62 = vmul.f32 %v774_v60, %v386_v31  ;;  %2270 = vmatprep.mubr.f32.mxu0 %v8054_v0 }
 0x10b   :  { %v4813_v8 = vpop.f32.mrb[24].mxu0  ;;  %v4892_v63 = vpop.f32.mrb[24].mxu1 }
 0x10c   :  { %v6293_v18 = vmul.f32 %v4892_v63, %v4792_v13  ;;  %v466_v25 = vpop.f32.mrb[25].mxu0  ;;  %v784_v56 = vpop.f32.mrb[25].mxu1  ;;  %4190 = vmatmul.mubr.msk.f32.gmra.mrb[130].mxu0 %vm87_vm0, %v5606_v22 }
 0x10d   :  { %v6297_v1 = vmul.f32 %v784_v56, %v396_v36  ;;  %2276 = vmatprep.mubr.f32.mxu0 %v8054_v0 }
 0x10f   :  { %v4816_v54 = vpop.f32.mrb[26].mxu0  ;;  %v4895_v23 = vpop.f32.mrb[26].mxu1 }
 0x110   :  { %v6300_v20 = vmul.f32 %v4895_v23, %v4795_v28  ;;  %v476_v31 = vpop.f32.mrb[27].mxu0  ;;  %v794_v60 = vpop.f32.mrb[27].mxu1  ;;  %4191 = vmatmul.mubr.msk.f32.gmra.mrb[132].mxu0 %vm87_vm0, %v5624_v24 }
 0x111   :  { %v6304_v63 = vmul.f32 %v794_v60, %v406_v32  ;;  %2282 = vmatprep.mubr.f32.mxu0 %v8054_v0 }
 0x113   :  { %v4819_v13 = vpop.f32.mrb[28].mxu0  ;;  %v4898_v53 = vpop.f32.mrb[28].mxu1 }
 0x114   :  { %v6307_v22 = vmul.f32 %v4898_v53, %v4798_v58  ;;  %v6309_v36 = vpop.f32.mrb[29].mxu0  ;;  %v804_v56 = vpop.f32.mrb[29].mxu1  ;;  %4192 = vmatmul.mubr.msk.f32.gmra.mrb[134].mxu0 %vm87_vm0, %v5634_v26 }
 0x115   :  { %v6313_v23 = vmul.f32 %v804_v56, %v416_v57  ;;  %2288 = vmatprep.mubr.f32.mxu0 %v8054_v0 }
 0x117   :  { %v6316_v28 = vpop.f32.mrb[30].mxu0  ;;  %v4901_v24 = vpop.f32.mrb[30].mxu1 }
 0x118   :  { %v6318_v32 = vmul.f32 %v4901_v24, %v4801_v15  ;;  %v6320_v60 = vpop.f32.mrb[31].mxu0  ;;  %v814_v61 = vpop.f32.mrb[31].mxu1  ;;  %4193 = vmatmul.mubr.msk.f32.gmra.mrb[136].mxu0 %vm87_vm0, %v5658_v30 }
 0x119   :  { %v6324_v53 = vmul.f32 %v814_v61, %v426_v7  ;;  %2294 = vmatprep.mubr.f32.mxu0 %v8054_v0 }
 0x11b   :  { %8113 = vst [vmem:[#allocation21_spill] sm:$0xff] %v6324_v53  ;;  %v6327_v26 = vpop.f32.mrb[32].mxu0  ;;  %v4904_v57 = vpop.f32.mrb[32].mxu1 }
 0x11c   :  { %v6329_v58 = vmul.f32 %v4904_v57, %v4804_v9  ;;  %v6331_v56 = vpop.f32.mrb[33].mxu0  ;;  %v824_v17 = vpop.f32.mrb[33].mxu1  ;;  %4194 = vmatmul.mubr.msk.f32.gmra.mrb[138].mxu0 %vm87_vm0, %v5668_v33 }
 0x11d   :  { %v6335_v15 = vmul.f32 %v824_v17, %v436_v27  ;;  %2300 = vmatprep.mubr.f32.mxu0 %v8054_v0 }
 0x11f   :  { %8114 = vst [vmem:[#allocation22_spill] sm:$0xff] %v6335_v15  ;;  %v6338_v30 = vpop.f32.mrb[34].mxu0  ;;  %v4907_v61 = vpop.f32.mrb[34].mxu1 }
 0x120   :  { %v6340_v7 = vmul.f32 %v4907_v61, %v4807_v11  ;;  %v6342_v24 = vpop.f32.mrb[35].mxu0  ;;  %v834_v53 = vpop.f32.mrb[35].mxu1  ;;  %4195 = vmatmul.mubr.msk.f32.gmra.mrb[140].mxu0 %vm87_vm0, %v5686_v35 }
 0x121   :  { %v6346_v9 = vmul.f32 %v834_v53, %v446_v55  ;;  %2306 = vmatprep.mubr.f32.mxu0 %v8054_v0 }
 0x123   :  { %8115 = vst [vmem:[#allocation23_spill] sm:$0xff] %v6346_v9  ;;  %v6349_v33 = vpop.f32.mrb[36].mxu0  ;;  %v4910_v17 = vpop.f32.mrb[36].mxu1 }
 0x124   :  { %v6351_v27 = vmul.f32 %v4910_v17, %v4810_v19  ;;  %v6353_v57 = vpop.f32.mrb[37].mxu0  ;;  %v844_v15 = vpop.f32.mrb[37].mxu1  ;;  %4196 = vmatmul.mubr.msk.f32.gmra.mrb[142].mxu0 %vm87_vm0, %v5696_v37 }
 0x125   :  { %v6357_v11 = vmul.f32 %v844_v15, %v456_v21  ;;  %2312 = vmatprep.mubr.f32.mxu0 %v8054_v0 }
 0x127   :  { %8116 = vst [vmem:[#allocation24_spill] sm:$0xff] %v6357_v11  ;;  %v6360_v35 = vpop.f32.mrb[38].mxu0  ;;  %v4913_v55 = vpop.f32.mrb[38].mxu1 }
 0x128   :  { %v6362_v53 = vmul.f32 %v4913_v55, %v4813_v8  ;;  %v6364_v61 = vpop.f32.mrb[39].mxu0  ;;  %v854_v9 = vpop.f32.mrb[39].mxu1  ;;  %4197 = vmatmul.mubr.msk.f32.gmra.mrb[144].mxu0 %vm87_vm0, %v5709_v38  ;;  %v2152_v8 = vld [vmem:[%s8040_s2 + $0x20] sm:$0xff]  ;;  %v2157_v38 = vld [vmem:[%s8040_s2 + $0x48] sm:$0xff] }
 0x129   :  { %v6368_v19 = vmul.f32 %v854_v9, %v466_v25  ;;  %2318 = vmatprep.mubr.f32.mxu0 %v8054_v0 }
 0x12b   :  { %8117 = vst [vmem:[#allocation25_spill] sm:$0xff] %v6368_v19  ;;  %v6371_v37 = vpop.f32.mrb[40].mxu0  ;;  %v4916_v21 = vpop.f32.mrb[40].mxu1 }
 0x12c   :  { %v6373_v15 = vmul.f32 %v4916_v21, %v4816_v54  ;;  %v6375_v17 = vpop.f32.mrb[41].mxu0  ;;  %v864_v11 = vpop.f32.mrb[41].mxu1  ;;  %4198 = vmatmul.mubr.msk.f32.gmra.mrb[146].mxu0 %vm87_vm0, %v5714_v39  ;;  %v5289_v54 = vpack.c.bf16 %v2157_v38, %v2152_v8 }
 0x12d   :  { %v6385_v25 = vmul.f32 %v864_v11, %v476_v31  ;;  %2324 = vmatprep.mubr.f32.mxu0 %v8054_v0 }
 0x12e   :  { %8118 = vst [vmem:[#allocation26_spill] sm:$0xff] %v6373_v15  ;;  %5290 = vmatprep.subr.bf16.mxu0 %v5289_v54 }
 0x12f   :  { %v6388_v9 = vpop.f32.mrb[42].mxu0  ;;  %v4919_v55 = vpop.f32.mrb[42].mxu1  ;;  %5292 = vmatpush3.bf16.msra.mxu0 %v5289_v54 }
 0x130   :  { %v6390_v21 = vmul.f32 %v4919_v55, %v4819_v13  ;;  %v6392_v39 = vpop.f32.mrb[43].mxu0  ;;  %v874_v15 = vpop.f32.mrb[43].mxu1  ;;  %4199 = vmatmul.mubr.msk.f32.gmra.mrb[148].mxu0 %vm87_vm0, %v5727_v40 }
 0x131   :  { %v6397_v19 = vmul.f32 %v874_v15, %v6309_v36  ;;  %2330 = vmatprep.mubr.f32.mxu0 %v8054_v0 }
 0x133   :  { %v6400_v31 = vpop.f32.mrb[44].mxu0  ;;  %v4922_v11 = vpop.f32.mrb[44].mxu1 }
 0x134   :  { %v6403_v8 = vmul.f32 %v4922_v11, %v6316_v28  ;;  %v6405_v13 = vpop.f32.mrb[45].mxu0  ;;  %v884_v38 = vpop.f32.mrb[45].mxu1  ;;  %4200 = vmatmul.mubr.msk.f32.gmra.mrb[150].mxu0 %vm87_vm0, %v5732_v41 }
 0x135   :  { %v6410_v40 = vmul.f32 %v884_v38, %v6320_v60  ;;  %2336 = vmatprep.mubr.f32.mxu0 %v8054_v0 }
 0x136   :  { %8119 = vst [vmem:[#allocation27_spill] sm:$0xff] %v6403_v8 }
 0x137   :  { %8120 = vst [vmem:[#allocation28_spill] sm:$0xff] %v6410_v40  ;;  %v6413_v36 = vpop.f32.mrb[46].mxu0  ;;  %v4925_v15 = vpop.f32.mrb[46].mxu1 }
 0x138   :  { %v6416_v54 = vmul.f32 %v4925_v15, %v6327_v26  ;;  %v6418_v55 = vpop.f32.mrb[47].mxu0  ;;  %v894_v28 = vpop.f32.mrb[47].mxu1  ;;  %4201 = vmatmul.mubr.msk.f32.gmra.mrb[152].mxu0 %vm87_vm0, %v5745_v42  ;;  %v2151_v42 = vld [vmem:[%s8040_s2 + $0x18] sm:$0xff] }
 0x139   :  { %v6423_v11 = vmul.f32 %v894_v28, %v6331_v56  ;;  %2342 = vmatprep.mubr.f32.mxu0 %v8054_v0  ;;  %v2156_v56 = vld [vmem:[%s8040_s2 + $0x40] sm:$0xff]  ;;  %v2150_v28 = vld [vmem:[%s8040_s2 + $0x10] sm:$0xff] }
 0x13a   :  { %8121 = vst [vmem:[#allocation29_spill] sm:$0xff] %v6416_v54 }
 0x13b   :  { %8122 = vst [vmem:[#allocation30_spill] sm:$0xff] %v6423_v11  ;;  %v6426_v41 = vpop.f32.mrb[48].mxu0  ;;  %v4928_v60 = vpop.f32.mrb[48].mxu1  ;;  %v8125_v11 = vmov 0.0  }
 0x13c   :  { %v6429_v38 = vmul.f32 %v4928_v60, %v6338_v30  ;;  %v6431_v40 = vpop.f32.mrb[49].mxu0  ;;  %v904_v26 = vpop.f32.mrb[49].mxu1  ;;  %4202 = vmatmul.mubr.msk.f32.gmra.mrb[154].mxu0 %vm87_vm0, %v5750_v43  ;;  %v5285_v30 = vpack.c.bf16 %v2156_v56, %v2151_v42  ;;  %v2155_v43 = vld [vmem:[%s8040_s2 + $0x38] sm:$0xff] }
 0x13d   :  { %v6436_v15 = vmul.f32 %v904_v26, %v6342_v24  ;;  %2348 = vmatprep.mubr.f32.mxu0 %v8054_v0  ;;  %v5287_v54 = vpack.c.bf16 %v2155_v43, %v2150_v28 }
 0x13e   :  { %8123 = vst [vmem:[#allocation31_spill] sm:$0xff] %v6429_v38  ;;  %5286 = vmatprep.subr.bf16.mxu1 %v5285_v30 }
 0x13f   :  { %8124 = vst [vmem:[#allocation32_spill] sm:$0xff] %v6436_v15  ;;  %v4931_v24 = vpop.f32.mrb[50].mxu1  ;;  %v4977_v60 = vpop.f32.mrb[50].mxu0 }
 0x140   :  { %v6452_v26 = vmul.f32 %v4931_v24, %v6349_v33  ;;  %v1506_v0 = vmul.f32 %v4977_v60, %v6260_v5  ;;  %v914_v15 = vpop.f32.mrb[51].mxu1  ;;  %v1186_v38 = vpop.f32.mrb[51].mxu0  ;;  %4203 = vmatmul.mubr.msk.f32.gmra.mrb[156].mxu0 %vm87_vm0, %v5763_v44 }
 0x141   :  { %v6458_v42 = vmul.f32 %v914_v15, %v6353_v57  ;;  %v1505_v56 = vmul.f32 %v1186_v38, %v6263_v29  ;;  %2354 = vmatprep.mubr.f32.mxu0 %v8125_v11 }
 0x143   :  { %v4934_v8 = vpop.f32.mrb[52].mxu1  ;;  %v4980_v33 = vpop.f32.mrb[52].mxu0  ;;  %5073 = vmatprep.mubr.msk.f32.mxu1 %vm1570_vm1, %v1505_v56 }
 0x144   :  { %v6464_v5 = vmul.f32 %v4934_v8, %v6360_v35  ;;  %v1508_v24 = vmul.f32 %v4980_v33, %v6267_v2  ;;  %v924_v44 = vpop.f32.mrb[53].mxu1  ;;  %v1196_v60 = vpop.f32.mrb[53].mxu0  ;;  %5074 = vmatmul.mubr.msk.f32.vlgmr.msra.gmra.mrb[78].mxu1 %vm1570_vm1, %v1506_v0  ;;  %4204 = vmatmul.mubr.msk.f32.gmra.mrb[158].mxu0 %vm87_vm0, %v5768_v45 }
 0x145   :  { %v6471_v29 = vmul.f32 %v924_v44, %v6364_v61  ;;  %v1507_v57 = vmul.f32 %v1196_v60, %v6270_v3  ;;  %2360 = vmatprep.mubr.f32.mxu0 %v8125_v11  ;;  %5288 = vmatpush1.bf16.msra.mxu1 %v5287_v54 }
 0x147   :  { %v4937_v38 = vpop.f32.mrb[54].mxu1  ;;  %v4983_v35 = vpop.f32.mrb[54].mxu0  ;;  %5076 = vmatprep.mubr.msk.f32.mxu1 %vm1570_vm1, %v1507_v57 }
 0x148   :  { %v6477_v2 = vmul.f32 %v4937_v38, %v6371_v37  ;;  %v1510_v0 = vmul.f32 %v4983_v35, %v6272_v59  ;;  %v934_v8 = vpop.f32.mrb[55].mxu1  ;;  %v1206_v15 = vpop.f32.mrb[55].mxu0  ;;  %5077 = vmatmul.mubr.msk.f32.gmra.mrb[80].mxu1 %vm1570_vm1, %v1508_v24  ;;  %4205 = vmatmul.mubr.msk.f32.gmra.mrb[160].mxu0 %vm87_vm0, %v5781_v46 }
 0x149   :  { %v6484_v45 = vmul.f32 %v934_v8, %v6375_v17  ;;  %v1509_v3 = vmul.f32 %v1206_v15, %v6276_v14  ;;  %2366 = vmatprep.mubr.f32.mxu0 %v8125_v11 }
 0x14b   :  { %v4940_v61 = vpop.f32.mrb[56].mxu1  ;;  %v4986_v54 = vpop.f32.mrb[56].mxu0  ;;  %5079 = vmatprep.mubr.msk.f32.mxu1 %vm1570_vm1, %v1509_v3 }
 0x14c   :  { %v6490_v59 = vmul.f32 %v4940_v61, %v6388_v9  ;;  %v1512_v37 = vmul.f32 %v4986_v54, %v6279_v34  ;;  %v944_v30 = vpop.f32.mrb[57].mxu1  ;;  %v1216_v28 = vpop.f32.mrb[57].mxu0  ;;  %5080 = vmatmul.mubr.msk.f32.gmra.mrb[82].mxu1 %vm1570_vm1, %v1510_v0  ;;  %4206 = vmatmul.mubr.msk.f32.gmra.mrb[162].mxu0 %vm87_vm0, %v5786_v47 }
 0x14d   :  { %v6497_v46 = vmul.f32 %v944_v30, %v6392_v39  ;;  %v1511_v14 = vmul.f32 %v1216_v28, %v6283_v12  ;;  %2372 = vmatprep.mubr.f32.mxu0 %v8125_v11 }
 0x14f   :  { %v4943_v17 = vpop.f32.mrb[58].mxu1  ;;  %v4989_v43 = vpop.f32.mrb[58].mxu0  ;;  %5082 = vmatprep.mubr.msk.f32.mxu1 %vm1570_vm1, %v1511_v14 }
 0x150   :  { %v6503_v34 = vmul.f32 %v4943_v17, %v6400_v31  ;;  %v1514_v9 = vmul.f32 %v4989_v43, %v6286_v16  ;;  %v954_v56 = vpop.f32.mrb[59].mxu1  ;;  %v1226_v33 = vpop.f32.mrb[59].mxu0  ;;  %5083 = vmatmul.mubr.msk.f32.gmra.mrb[84].mxu1 %vm1570_vm1, %v1512_v37  ;;  %4207 = vmatmul.mubr.msk.f32.gmra.mrb[164].mxu0 %vm87_vm0, %v5799_v48 }
 0x151   :  { %v6510_v47 = vmul.f32 %v954_v56, %v6405_v13  ;;  %v1513_v12 = vmul.f32 %v1226_v33, %v6290_v62  ;;  %2378 = vmatprep.mubr.f32.mxu0 %v8125_v11  ;;  %v8131_v33 = vld [vmem:[#allocation22_spill] sm:$0xff] }
 0x153   :  { %v4946_v39 = vpop.f32.mrb[60].mxu1  ;;  %v4992_v24 = vpop.f32.mrb[60].mxu0  ;;  %5085 = vmatprep.mubr.msk.f32.mxu1 %vm1570_vm1, %v1513_v12 }
 0x154   :  { %v6516_v16 = vmul.f32 %v4946_v39, %v6413_v36  ;;  %v1516_v31 = vmul.f32 %v4992_v24, %v6293_v18  ;;  %v964_v44 = vpop.f32.mrb[61].mxu1  ;;  %v1236_v60 = vpop.f32.mrb[61].mxu0  ;;  %5086 = vmatmul.mubr.msk.f32.gmra.mrb[86].mxu1 %vm1570_vm1, %v1514_v9  ;;  %4208 = vmatmul.mubr.msk.f32.gmra.mrb[166].mxu0 %vm87_vm0, %v5804_v49  ;;  %v8130_v9 = vld [vmem:[#allocation12_spill] sm:$0xff] }
 0x155   :  { %v6523_v48 = vmul.f32 %v964_v44, %v6418_v55  ;;  %v1515_v62 = vmul.f32 %v1236_v60, %v6297_v1  ;;  %2384 = vmatprep.mubr.f32.mxu0 %v8125_v11 }
 0x157   :  { %v4949_v13 = vpop.f32.mrb[62].mxu1  ;;  %v4995_v57 = vpop.f32.mrb[62].mxu0  ;;  %5088 = vmatprep.mubr.msk.f32.mxu1 %vm1570_vm1, %v1515_v62 }
 0x158   :  { %v6529_v18 = vmul.f32 %v4949_v13, %v6426_v41  ;;  %v1518_v36 = vmul.f32 %v4995_v57, %v6300_v20  ;;  %v974_v38 = vpop.f32.mrb[63].mxu1  ;;  %v1246_v35 = vpop.f32.mrb[63].mxu0  ;;  %5089 = vmatmul.mubr.msk.f32.gmra.mrb[88].mxu1 %vm1570_vm1, %v1516_v31  ;;  %4209 = vmatmul.mubr.msk.f32.gmra.mrb[168].mxu0 %vm87_vm0, %v5817_v50  ;;  %v8132_v31 = vld [vmem:[#allocation13_spill] sm:$0xff]  ;;  %v8133_v13 = vld [vmem:[#allocation6_spill] sm:$0xff] }
 0x159   :  { %v6536_v49 = vmul.f32 %v974_v38, %v6431_v40  ;;  %v1517_v1 = vmul.f32 %v1246_v35, %v6304_v63  ;;  %2390 = vmatprep.mubr.f32.mxu0 %v8125_v11  ;;  %v8134_v57 = vld [vmem:[#allocation14_spill] sm:$0xff]  ;;  %v8135_v38 = vld [vmem:[#allocation23_spill] sm:$0xff] }
 0x15b   :  { %v4952_v55 = vpop.f32.mrb[64].mxu1  ;;  %v4998_v0 = vpop.f32.mrb[64].mxu0  ;;  %5091 = vmatprep.mubr.msk.f32.mxu1 %vm1570_vm1, %v1517_v1 }
 0x15c   :  { %v6542_v20 = vmul.f32 %v4952_v55, %v6206_v4  ;;  %v1520_v41 = vmul.f32 %v4998_v0, %v6307_v22  ;;  %v984_v8 = vpop.f32.mrb[65].mxu1  ;;  %v1256_v15 = vpop.f32.mrb[65].mxu0  ;;  %5092 = vmatmul.mubr.msk.f32.gmra.mrb[90].mxu1 %vm1570_vm1, %v1518_v36  ;;  %4210 = vmatmul.mubr.msk.f32.gmra.mrb[170].mxu0 %vm87_vm0, %v5822_v51  ;;  %v8126_v51 = vld [vmem:[#allocation10_spill] sm:$0xff]  ;;  %v8136_v0 = vld [vmem:[#allocation15_spill] sm:$0xff] }
 0x15d   :  { %v6549_v50 = vmul.f32 %v984_v8, %v6210_v6  ;;  %v1519_v63 = vmul.f32 %v1256_v15, %v6313_v23  ;;  %2396 = vmatprep.mubr.f32.mxu0 %v8125_v11  ;;  %v8127_v23 = vld [vmem:[#allocation21_spill] sm:$0xff] }
 0x15f   :  { %v4955_v40 = vpop.f32.mrb[66].mxu1  ;;  %v5001_v3 = vpop.f32.mrb[66].mxu0  ;;  %5094 = vmatprep.mubr.msk.f32.mxu1 %vm1570_vm1, %v1519_v63  ;;  %v8137_v63 = vld [vmem:[#allocation7_spill] sm:$0xff] }
 0x160   :  { %v6555_v4 = vmul.f32 %v4955_v40, %v6214_v10  ;;  %v1522_v22 = vmul.f32 %v5001_v3, %v6318_v32  ;;  %v994_v61 = vpop.f32.mrb[67].mxu1  ;;  %v1266_v54 = vpop.f32.mrb[67].mxu0  ;;  %5095 = vmatmul.mubr.msk.f32.gmra.mrb[92].mxu1 %vm1570_vm1, %v1520_v41  ;;  %4211 = vmatmul.mubr.msk.f32.gmra.mrb[172].mxu0 %vm87_vm0, %v5835_v52  ;;  %v8128_v10 = vld [vmem:[#allocation11_spill] sm:$0xff]  ;;  %v8129_v52 = vld [vmem:[#allocation5_spill] sm:$0xff]  ;;  %v8138_v40 = vld [vmem:[#allocation16_spill] sm:$0xff] }
 0x161   :  { %v6562_v6 = vmul.f32 %v994_v61, %v8126_v51  ;;  %v1521_v37 = vmul.f32 %v1266_v54, %v8127_v23  ;;  %2402 = vmatprep.mubr.f32.mxu0 %v8125_v11  ;;  %v8140_v23 = vld [vmem:[#allocation17_spill] sm:$0xff] }
 0x163   :  { %v4958_v30 = vpop.f32.mrb[68].mxu1  ;;  %v5004_v28 = vpop.f32.mrb[68].mxu0  ;;  %5097 = vmatprep.mubr.msk.f32.mxu1 %vm1570_vm1, %v1521_v37 }
 0x164   :  { %v6568_v32 = vmul.f32 %v4958_v30, %v8128_v10  ;;  %v1524_v14 = vmul.f32 %v5004_v28, %v6329_v58  ;;  %v1004_v17 = vpop.f32.mrb[69].mxu1  ;;  %v1276_v43 = vpop.f32.mrb[69].mxu0  ;;  %5098 = vmatmul.mubr.msk.f32.gmra.mrb[94].mxu1 %vm1570_vm1, %v1522_v22  ;;  %4212 = vmatmul.mubr.msk.f32.gmra.mrb[174].mxu0 %vm87_vm0, %v8129_v52  ;;  %v8139_v22 = vld [vmem:[#allocation24_spill] sm:$0xff] }
 0x165   :  { %v6575_v56 = vmul.f32 %v1004_v17, %v8130_v9  ;;  %v1523_v12 = vmul.f32 %v1276_v43, %v8131_v33  ;;  %2408 = vmatprep.mubr.f32.mxu0 %v8125_v11  ;;  %v8141_v10 = vld [vmem:[#allocation8_spill] sm:$0xff]  ;;  %v8143_v43 = vld [vmem:[#allocation25_spill] sm:$0xff] }
 0x167   :  { %v4961_v39 = vpop.f32.mrb[70].mxu1  ;;  %v5007_v24 = vpop.f32.mrb[70].mxu0  ;;  %5100 = vmatprep.mubr.msk.f32.mxu1 %vm1570_vm1, %v1523_v12  ;;  %v8144_v12 = vld [vmem:[#allocation19_spill] sm:$0xff] }
 0x168   :  { %v6581_v58 = vmul.f32 %v4961_v39, %v8132_v31  ;;  %v1526_v44 = vmul.f32 %v5007_v24, %v6340_v7  ;;  %v1014_v60 = vpop.f32.mrb[71].mxu1  ;;  %v1286_v62 = vpop.f32.mrb[71].mxu0  ;;  %5101 = vmatmul.mubr.msk.f32.gmra.mrb[96].mxu1 %vm1570_vm1, %v1524_v14  ;;  %4213 = vmatmul.mubr.msk.f32.gmra.mrb[176].mxu0 %vm87_vm0, %v8133_v13  ;;  %v8142_v14 = vld [vmem:[#allocation18_spill] sm:$0xff] }
 0x169   :  { %v6588_v36 = vmul.f32 %v1014_v60, %v8134_v57  ;;  %v1525_v35 = vmul.f32 %v1286_v62, %v8135_v38  ;;  %2414 = vmatprep.mubr.f32.mxu0 %v8125_v11  ;;  %v8145_v39 = vld [vmem:[#allocation26_spill] sm:$0xff]  ;;  %v8146_v60 = vld [vmem:[#allocation9_spill] sm:$0xff]  ;;  %v8147_v62 = vld [vmem:[#allocation20_spill] sm:$0xff] }
 0x16b   :  { %v4964_v1 = vpop.f32.mrb[72].mxu1  ;;  %v5010_v55 = vpop.f32.mrb[72].mxu0  ;;  %5103 = vmatprep.mubr.msk.f32.mxu1 %vm1570_vm1, %v1525_v35 }
 0x16c   :  { %v6594_v7 = vmul.f32 %v4964_v1, %v8136_v0  ;;  %v1528_v41 = vmul.f32 %v5010_v55, %v6351_v27  ;;  %v1024_v8 = vpop.f32.mrb[73].mxu1  ;;  %v1296_v15 = vpop.f32.mrb[73].mxu0  ;;  %5104 = vmatmul.mubr.msk.f32.gmra.mrb[98].mxu1 %vm1570_vm1, %v1526_v44  ;;  %4214 = vmatmul.mubr.msk.f32.gmra.mrb[178].mxu0 %vm87_vm0, %v8137_v63  ;;  %v6637_v55 = vld [vmem:[%s8038_s0 + $0x118] sm:$0xff] }
 0x16d   :  { %v6601_v3 = vmul.f32 %v1024_v8, %v8138_v40  ;;  %v1527_v61 = vmul.f32 %v1296_v15, %v8139_v22  ;;  %2420 = vmatprep.mubr.f32.mxu0 %v8125_v11  ;;  %v6649_v15 = vld [vmem:[%s8038_s0 + $0x120] sm:$0xff]  ;;  %v8149_v63 = vld [vmem:[#allocation28_spill] sm:$0xff] }
 0x16e   :  { %v8150_v22 = vld [vmem:[#allocation29_spill] sm:$0xff] }
 0x16f   :  { %v4967_v54 = vpop.f32.mrb[74].mxu1  ;;  %v5013_v51 = vpop.f32.mrb[74].mxu0  ;;  %5106 = vmatprep.mubr.msk.f32.mxu1 %vm1570_vm1, %v1527_v61 }
 0x170   :  { %v6607_v27 = vmul.f32 %v4967_v54, %v8140_v23  ;;  %v1530_v37 = vmul.f32 %v5013_v51, %v6362_v53  ;;  %v1034_v30 = vpop.f32.mrb[75].mxu1  ;;  %v1306_v28 = vpop.f32.mrb[75].mxu0  ;;  %5107 = vmatmul.mubr.msk.f32.gmra.mrb[100].mxu1 %vm1570_vm1, %v1528_v41  ;;  %4215 = vmatmul.mubr.msk.f32.gmra.mrb[180].mxu0 %vm87_vm0, %v8141_v10  ;;  %v8148_v41 = vld [vmem:[#allocation27_spill] sm:$0xff]  ;;  %v6661_v51 = vld [vmem:[%s8038_s0 + $0x128] sm:$0xff] }
 0x171   :  { %v6614_v17 = vmul.f32 %v1034_v30, %v8142_v14  ;;  %v1529_v52 = vmul.f32 %v1306_v28, %v8143_v43  ;;  %2426 = vmatprep.mubr.f32.mxu0 %v8125_v11  ;;  %v8151_v23 = vld [vmem:[#allocation30_spill] sm:$0xff]  ;;  %v8152_v28 = vld [vmem:[#allocation31_spill] sm:$0xff] }
 0x172   :  { %v6673_v43 = vld [vmem:[%s8038_s0 + $0x130] sm:$0xff] }
 0x173   :  { %v4970_v9 = vpop.f32.mrb[76].mxu1  ;;  %v5016_v33 = vpop.f32.mrb[76].mxu0  ;;  %5109 = vmatprep.mubr.msk.f32.mxu1 %vm1570_vm1, %v1529_v52  ;;  %v8153_v52 = vld [vmem:[#allocation32_spill] sm:$0xff] }
 0x174   :  { %v6620_v53 = vmul.f32 %v4970_v9, %v8144_v12  ;;  %v1532_v24 = vmul.f32 %v5016_v33, %v8145_v39  ;;  %v1044_v31 = vpop.f32.mrb[77].mxu1  ;;  %v1316_v44 = vpop.f32.mrb[77].mxu0  ;;  %5110 = vmatmul.mubr.msk.f32.gmra.mrb[102].mxu1 %vm1570_vm1, %v1530_v37  ;;  %4216 = vmatmul.mubr.msk.f32.gmra.mrb[182].mxu0 %vm87_vm0, %v8146_v60 }
 0x175   :  { %v6627_v13 = vmul.f32 %v1044_v31, %v8147_v62  ;;  %v1531_v57 = vmul.f32 %v1316_v44, %v6385_v25  ;;  %2432 = vmatprep.mubr.f32.mxu0 %v8125_v11  ;;  %v6697_v62 = vld [vmem:[%s8038_s0 + $0x140] sm:$0xff] }
 0x177   :  { %v5019_v38 = vpop.f32.mrb[78].mxu0  ;;  %5112 = vmatprep.mubr.msk.f32.mxu1 %vm1570_vm1, %v1531_v57 }
 0x178   :  { %v1534_v35 = vmul.f32 %v5019_v38, %v6390_v21  ;;  %v1326_v1 = vpop.f32.mrb[79].mxu0  ;;  %5113 = vmatmul.mubr.msk.f32.gmra.mrb[104].mxu1 %vm1570_vm1, %v1532_v24  ;;  %4217 = vmatmul.mubr.msk.f32.gmra.mrb[184].mxu0 %vm87_vm0, %v6637_v55  ;;  %v6685_v24 = vld [vmem:[%s8038_s0 + $0x138] sm:$0xff] }
 0x179   :  { %v1533_v25 = vmul.f32 %v1326_v1, %v6397_v19  ;;  %2438 = vmatprep.mubr.f32.mxu0 %v8125_v11 }
 0x17b   :  { %v5022_v0 = vpop.f32.mrb[80].mxu0  ;;  %5115 = vmatprep.mubr.msk.f32.mxu1 %vm1570_vm1, %v1533_v25 }
 0x17c   :  { %v1536_v21 = vmul.f32 %v5022_v0, %v8148_v41  ;;  %v1336_v8 = vpop.f32.mrb[81].mxu0  ;;  %5116 = vmatmul.mubr.msk.f32.gmra.mrb[106].mxu1 %vm1570_vm1, %v1534_v35  ;;  %4218 = vmatmul.mubr.msk.f32.gmra.mrb[186].mxu0 %vm87_vm0, %v6649_v15  ;;  %v6709_v35 = vld [vmem:[%s8038_s0 + $0x148] sm:$0xff]  ;;  %v6721_v0 = vld [vmem:[%s8038_s0 + $0x150] sm:$0xff] }
 0x17d   :  { %v1535_v19 = vmul.f32 %v1336_v8, %v8149_v63  ;;  %2444 = vmatprep.mubr.f32.mxu0 %v8125_v11  ;;  %v6733_v8 = vld [vmem:[%s8038_s0 + $0x158] sm:$0xff] }
 0x17f   :  { %v5025_v40 = vpop.f32.mrb[82].mxu0  ;;  %5118 = vmatprep.mubr.msk.f32.mxu1 %vm1570_vm1, %v1535_v19 }
 0x180   :  { %v1538_v61 = vmul.f32 %v5025_v40, %v8150_v22  ;;  %v1346_v54 = vpop.f32.mrb[83].mxu0  ;;  %5119 = vmatmul.mubr.msk.f32.gmra.mrb[108].mxu1 %vm1570_vm1, %v1536_v21  ;;  %4219 = vmatmul.mubr.msk.f32.gmra.mrb[188].mxu0 %vm87_vm0, %v6661_v51  ;;  %v6745_v40 = vld [vmem:[%s8038_s0 + $0x160] sm:$0xff] }
 0x181   :  { %v1537_v37 = vmul.f32 %v1346_v54, %v8151_v23  ;;  %2450 = vmatprep.mubr.f32.mxu0 %v8125_v11  ;;  %v6757_v54 = vld [vmem:[%s8038_s0 + $0x168] sm:$0xff] }
 0x182   :  { %8154 = vst [vmem:[#allocation10_spill] sm:$0xff] %v6757_v54 }
 0x183   :  { %v5028_v30 = vpop.f32.mrb[84].mxu0  ;;  %5121 = vmatprep.mubr.msk.f32.mxu1 %vm1570_vm1, %v1537_v37 }
 0x184   :  { %v1540_v10 = vmul.f32 %v5028_v30, %v8152_v28  ;;  %v1356_v14 = vpop.f32.mrb[85].mxu0  ;;  %5122 = vmatmul.mubr.msk.f32.gmra.mrb[110].mxu1 %vm1570_vm1, %v1538_v61  ;;  %4220 = vmatmul.mubr.msk.f32.gmra.mrb[190].mxu0 %vm87_vm0, %v6673_v43  ;;  %v6769_v30 = vld [vmem:[%s8038_s0 + $0x170] sm:$0xff] }
 0x185   :  { %v1539_v9 = vmul.f32 %v1356_v14, %v8153_v52  ;;  %2456 = vmatprep.mubr.f32.mxu0 %v8125_v11  ;;  %8155 = vst [vmem:[#allocation21_spill] sm:$0xff] %v6769_v30  ;;  %v6781_v14 = vld [vmem:[%s8038_s0 + $0x178] sm:$0xff] }
 0x186   :  { %8156 = vst [vmem:[#allocation11_spill] sm:$0xff] %v6781_v14 }
 0x187   :  { %v5031_v33 = vpop.f32.mrb[86].mxu0  ;;  %5124 = vmatprep.mubr.msk.f32.mxu1 %vm1570_vm1, %v1539_v9 }
 0x188   :  { %v1542_v12 = vmul.f32 %v5031_v33, %v6452_v26  ;;  %v1366_v39 = vpop.f32.mrb[87].mxu0  ;;  %5125 = vmatmul.mubr.msk.f32.gmra.mrb[112].mxu1 %vm1570_vm1, %v1540_v10  ;;  %4221 = vmatmul.mubr.msk.f32.gmra.mrb[192].mxu0 %vm87_vm0, %v6685_v24  ;;  %v6793_v33 = vld [vmem:[%s8038_s0 + $0x180] sm:$0xff] }
 0x189   :  { %v1541_v31 = vmul.f32 %v1366_v39, %v6458_v42  ;;  %2462 = vmatprep.mubr.f32.mxu0 %v8125_v11  ;;  %8157 = vst [vmem:[#allocation5_spill] sm:$0xff] %v6793_v33 }
 0x18b   :  { %v5034_v44 = vpop.f32.mrb[88].mxu0  ;;  %5127 = vmatprep.mubr.msk.f32.mxu1 %vm1570_vm1, %v1541_v31  ;;  %v6805_v31 = vld [vmem:[%s8038_s0 + $0x188] sm:$0xff] }
 0x18c   :  { %v1544_v26 = vmul.f32 %v5034_v44, %v6464_v5  ;;  %v1376_v60 = vpop.f32.mrb[89].mxu0  ;;  %5128 = vmatmul.mubr.msk.f32.gmra.mrb[114].mxu1 %vm1570_vm1, %v1542_v12  ;;  %4222 = vmatmul.mubr.msk.f32.gmra.mrb[194].mxu0 %vm87_vm0, %v6697_v62  ;;  %8158 = vst [vmem:[#allocation12_spill] sm:$0xff] %v6805_v31 }
 0x18d   :  { %v1543_v42 = vmul.f32 %v1376_v60, %v6471_v29  ;;  %2468 = vmatprep.mubr.f32.mxu0 %v8125_v11  ;;  %v6817_v60 = vld [vmem:[%s8038_s0 + $0x190] sm:$0xff] }
 0x18e   :  { %8159 = vst [vmem:[#allocation22_spill] sm:$0xff] %v6817_v60 }
 0x18f   :  { %v5037_v57 = vpop.f32.mrb[90].mxu0  ;;  %5130 = vmatprep.mubr.msk.f32.mxu1 %vm1570_vm1, %v1543_v42 }
 0x190   :  { %v1546_v5 = vmul.f32 %v5037_v57, %v6477_v2  ;;  %v1386_v38 = vpop.f32.mrb[91].mxu0  ;;  %5131 = vmatmul.mubr.msk.f32.gmra.mrb[116].mxu1 %vm1570_vm1, %v1544_v26  ;;  %4223 = vmatmul.mubr.msk.f32.gmra.mrb[196].mxu0 %vm87_vm0, %v6709_v35 }
 0x191   :  { %v1545_v29 = vmul.f32 %v1386_v38, %v6484_v45  ;;  %2474 = vmatprep.mubr.f32.mxu0 %v8125_v11 }
 0x193   :  { %v5040_v1 = vpop.f32.mrb[92].mxu0  ;;  %5133 = vmatprep.mubr.msk.f32.mxu1 %vm1570_vm1, %v1545_v29 }
 0x194   :  { %v1548_v2 = vmul.f32 %v5040_v1, %v6490_v59  ;;  %v1396_v25 = vpop.f32.mrb[93].mxu0  ;;  %5134 = vmatmul.mubr.msk.f32.gmra.mrb[118].mxu1 %vm1570_vm1, %v1546_v5  ;;  %4224 = vmatmul.mubr.msk.f32.gmra.mrb[198].mxu0 %vm87_vm0, %v6721_v0  ;;  %v6829_v5 = vld [vmem:[%s8038_s0 + $0x198] sm:$0xff]  ;;  %v6841_v1 = vld [vmem:[%s8038_s0 + $0x1a0] sm:$0xff] }
 0x195   :  { %v1547_v45 = vmul.f32 %v1396_v25, %v6497_v46  ;;  %2480 = vmatprep.mubr.f32.mxu0 %v8125_v11  ;;  %8160 = vst [vmem:[#allocation13_spill] sm:$0xff] %v6829_v5  ;;  %8161 = vst [vmem:[#allocation6_spill] sm:$0xff] %v6841_v1  ;;  %v6856_v25 = vld [vmem:[%s8038_s0 + $0x1a8] sm:$0xff] }
 0x196   :  { %8162 = vst [vmem:[#allocation14_spill] sm:$0xff] %v6856_v25 }
 0x197   :  { %v5043_v41 = vpop.f32.mrb[94].mxu0  ;;  %5136 = vmatprep.mubr.msk.f32.mxu1 %vm1570_vm1, %v1547_v45 }
 0x198   :  { %v1550_v59 = vmul.f32 %v5043_v41, %v6503_v34  ;;  %v1406_v21 = vpop.f32.mrb[95].mxu0  ;;  %5137 = vmatmul.mubr.msk.f32.gmra.mrb[120].mxu1 %vm1570_vm1, %v1548_v2  ;;  %4225 = vmatmul.mubr.msk.f32.gmra.mrb[200].mxu0 %vm87_vm0, %v6733_v8  ;;  %v6869_v41 = vld [vmem:[%s8038_s0 + $0x1b0] sm:$0xff] }
 0x199   :  { %v1549_v46 = vmul.f32 %v1406_v21, %v6510_v47  ;;  %2486 = vmatprep.mubr.f32.mxu0 %v8125_v11  ;;  %8163 = vst [vmem:[#allocation23_spill] sm:$0xff] %v6869_v41 }
 0x19b   :  { %v5046_v63 = vpop.f32.mrb[96].mxu0  ;;  %5139 = vmatprep.mubr.msk.f32.mxu1 %vm1570_vm1, %v1549_v46 }
 0x19c   :  { %v1552_v34 = vmul.f32 %v5046_v63, %v6516_v16  ;;  %v1416_v19 = vpop.f32.mrb[97].mxu0  ;;  %5140 = vmatmul.mubr.msk.f32.gmra.mrb[122].mxu1 %vm1570_vm1, %v1550_v59  ;;  %4226 = vmatmul.mubr.msk.f32.gmra.mrb[202].mxu0 %vm87_vm0, %v6745_v40  ;;  %v6876_v59 = vld [vmem:[%s8038_s0] sm:$0xff]  ;;  %v6889_v63 = vld [vmem:[%s8038_s0 + $0x1b8] sm:$0xff] }
 0x19d   :  { %v1551_v47 = vmul.f32 %v1416_v19, %v6523_v48  ;;  %2492 = vmatprep.mubr.f32.mxu0 %v8125_v11  ;;  %8164 = vst [vmem:[#allocation15_spill] sm:$0xff] %v6889_v63 }
 0x19f   :  { %v5049_v22 = vpop.f32.mrb[98].mxu0  ;;  %5142 = vmatprep.mubr.msk.f32.mxu1 %vm1570_vm1, %v1551_v47 }
 0x1a0   :  { %v1554_v16 = vmul.f32 %v5049_v22, %v6529_v18  ;;  %v1426_v61 = vpop.f32.mrb[99].mxu0  ;;  %5143 = vmatmul.mubr.msk.f32.gmra.mrb[124].mxu1 %vm1570_vm1, %v1552_v34  ;;  %4227 = vmatmul.mubr.msk.f32.gmra.mrb[204].mxu0 %vm87_vm0, %v6757_v54  ;;  %v6896_v34 = vld [vmem:[%s8038_s0 + $0x8] sm:$0xff]  ;;  %v6909_v22 = vld [vmem:[%s8038_s0 + $0x1c0] sm:$0xff] }
 0x1a1   :  { %v1553_v48 = vmul.f32 %v1426_v61, %v6536_v49  ;;  %2498 = vmatprep.mubr.f32.mxu0 %v8125_v11  ;;  %8165 = vst [vmem:[#allocation7_spill] sm:$0xff] %v6909_v22 }
 0x1a3   :  { %v5052_v23 = vpop.f32.mrb[100].mxu0  ;;  %5145 = vmatprep.mubr.msk.f32.mxu1 %vm1570_vm1, %v1553_v48 }
 0x1a4   :  { %v1556_v18 = vmul.f32 %v5052_v23, %v6542_v20  ;;  %v1436_v37 = vpop.f32.mrb[101].mxu0  ;;  %5146 = vmatmul.mubr.msk.f32.gmra.mrb[126].mxu1 %vm1570_vm1, %v1554_v16  ;;  %4228 = vmatmul.mubr.msk.f32.gmra.mrb[206].mxu0 %vm87_vm0, %v6769_v30  ;;  %v6916_v16 = vld [vmem:[%s8038_s0 + $0x10] sm:$0xff]  ;;  %v6929_v23 = vld [vmem:[%s8038_s0 + $0x1c8] sm:$0xff]  ;;  %v5413_v30 = vld [vmem:[%s8038_s0 + $0xb8] sm:$0xff] }
 0x1a5   :  { %v1555_v49 = vmul.f32 %v1436_v37, %v6549_v50  ;;  %2504 = vmatprep.mubr.f32.mxu0 %v8125_v11  ;;  %8166 = vst [vmem:[#allocation16_spill] sm:$0xff] %v6929_v23 }
 0x1a7   :  { %v5055_v28 = vpop.f32.mrb[102].mxu0  ;;  %5148 = vmatprep.mubr.msk.f32.mxu1 %vm1570_vm1, %v1555_v49 }
 0x1a8   :  { %v1558_v20 = vmul.f32 %v5055_v28, %v6555_v4  ;;  %v1446_v10 = vpop.f32.mrb[103].mxu0  ;;  %5149 = vmatmul.mubr.msk.f32.gmra.mrb[128].mxu1 %vm1570_vm1, %v1556_v18  ;;  %4229 = vmatmul.mubr.msk.f32.gmra.mrb[208].mxu0 %vm87_vm0, %v6781_v14  ;;  %v6936_v18 = vld [vmem:[%s8038_s0 + $0x18] sm:$0xff]  ;;  %v6949_v28 = vld [vmem:[%s8038_s0 + $0x1d0] sm:$0xff] }
 0x1a9   :  { %v1557_v50 = vmul.f32 %v1446_v10, %v6562_v6  ;;  %2510 = vmatprep.mubr.f32.mxu0 %v8125_v11  ;;  %8167 = vst [vmem:[#allocation24_spill] sm:$0xff] %v6949_v28 }
 0x1ab   :  { %v5058_v52 = vpop.f32.mrb[104].mxu0  ;;  %5151 = vmatprep.mubr.msk.f32.mxu1 %vm1570_vm1, %v1557_v50 }
 0x1ac   :  { %v1560_v4 = vmul.f32 %v5058_v52, %v6568_v32  ;;  %v1456_v9 = vpop.f32.mrb[105].mxu0  ;;  %5152 = vmatmul.mubr.msk.f32.gmra.mrb[130].mxu1 %vm1570_vm1, %v1558_v20  ;;  %4230 = vmatmul.mubr.msk.f32.gmra.mrb[210].mxu0 %vm87_vm0, %v6793_v33  ;;  %v5389_v20 = vld [vmem:[%s8038_s0 + $0x20] sm:$0xff]  ;;  %v6966_v52 = vld [vmem:[%s8038_s0 + $0x1d8] sm:$0xff] }
 0x1ad   :  { %v1559_v6 = vmul.f32 %v1456_v9, %v6575_v56  ;;  %2516 = vmatprep.mubr.f32.mxu0 %v8125_v11  ;;  %8168 = vst [vmem:[#allocation17_spill] sm:$0xff] %v6966_v52 }
 0x1af   :  { %v5061_v12 = vpop.f32.mrb[106].mxu0  ;;  %5154 = vmatprep.mubr.msk.f32.mxu1 %vm1570_vm1, %v1559_v6 }
 0x1b0   :  { %v1562_v32 = vmul.f32 %v5061_v12, %v6581_v58  ;;  %v1466_v39 = vpop.f32.mrb[107].mxu0  ;;  %5155 = vmatmul.mubr.msk.f32.gmra.mrb[132].mxu1 %vm1570_vm1, %v1560_v4  ;;  %4231 = vmatmul.mubr.msk.f32.gmra.mrb[212].mxu0 %vm87_vm0, %v6805_v31  ;;  %v5391_v4 = vld [vmem:[%s8038_s0 + $0x28] sm:$0xff]  ;;  %v6983_v12 = vld [vmem:[%s8038_s0 + $0x1e0] sm:$0xff] }
 0x1b1   :  { %v1561_v56 = vmul.f32 %v1466_v39, %v6588_v36  ;;  %2522 = vmatprep.mubr.f32.mxu0 %v8125_v11  ;;  %8169 = vst [vmem:[#allocation8_spill] sm:$0xff] %v6983_v12 }
 0x1b3   :  { %v5064_v44 = vpop.f32.mrb[108].mxu0  ;;  %5157 = vmatprep.mubr.msk.f32.mxu1 %vm1570_vm1, %v1561_v56 }
 0x1b4   :  { %v1564_v58 = vmul.f32 %v5064_v44, %v6594_v7  ;;  %v1476_v26 = vpop.f32.mrb[109].mxu0  ;;  %5158 = vmatmul.mubr.msk.f32.gmra.mrb[134].mxu1 %vm1570_vm1, %v1562_v32  ;;  %4232 = vmatmul.mubr.msk.f32.gmra.mrb[214].mxu0 %vm87_vm0, %v6817_v60  ;;  %v5393_v32 = vld [vmem:[%s8038_s0 + $0x30] sm:$0xff]  ;;  %v7000_v44 = vld [vmem:[%s8038_s0 + $0x1e8] sm:$0xff] }
 0x1b5   :  { %v1563_v36 = vmul.f32 %v1476_v26, %v6601_v3  ;;  %2528 = vmatprep.mubr.f32.mxu0 %v8125_v11  ;;  %8170 = vst [vmem:[#allocation18_spill] sm:$0xff] %v7000_v44 }
 0x1b7   :  { %v5067_v42 = vpop.f32.mrb[110].mxu0  ;;  %5160 = vmatprep.mubr.msk.f32.mxu1 %vm1570_vm1, %v1563_v36 }
 0x1b8   :  { %v1566_v7 = vmul.f32 %v5067_v42, %v6607_v27  ;;  %v1486_v57 = vpop.f32.mrb[111].mxu0  ;;  %5161 = vmatmul.mubr.msk.f32.gmra.mrb[136].mxu1 %vm1570_vm1, %v1564_v58  ;;  %4233 = vmatmul.mubr.msk.f32.gmra.mrb[216].mxu0 %vm87_vm0, %v6829_v5  ;;  %v5395_v58 = vld [vmem:[%s8038_s0 + $0x38] sm:$0xff]  ;;  %v7017_v42 = vld [vmem:[%s8038_s0 + $0x1f0] sm:$0xff]  ;;  %v5411_v5 = vld [vmem:[%s8038_s0 + $0xa8] sm:$0xff] }
 0x1b9   :  { %v1565_v3 = vmul.f32 %v1486_v57, %v6614_v17  ;;  %2534 = vmatprep.mubr.f32.mxu0 %v8125_v11  ;;  %8171 = vst [vmem:[#allocation25_spill] sm:$0xff] %v7017_v42 }
 0x1bb   :  { %v5070_v38 = vpop.f32.mrb[112].mxu0  ;;  %5163 = vmatprep.mubr.msk.f32.mxu1 %vm1570_vm1, %v1565_v3 }
 0x1bc   :  { %v1568_v27 = vmul.f32 %v5070_v38, %v6620_v53  ;;  %v1496_v29 = vpop.f32.mrb[113].mxu0  ;;  %5164 = vmatmul.mubr.msk.f32.gmra.mrb[138].mxu1 %vm1570_vm1, %v1566_v7  ;;  %4234 = vmatmul.mubr.msk.f32.gmra.mrb[218].mxu0 %vm87_vm0, %v6841_v1  ;;  %v5397_v7 = vld [vmem:[%s8038_s0 + $0x40] sm:$0xff]  ;;  %v7034_v38 = vld [vmem:[%s8038_s0 + $0x1f8] sm:$0xff] }
 0x1bd   :  { %v1567_v17 = vmul.f32 %v1496_v29, %v6627_v13  ;;  %2540 = vmatprep.mubr.f32.mxu0 %v8125_v11  ;;  %8172 = vst [vmem:[#allocation19_spill] sm:$0xff] %v7034_v38 }
 0x1bf   :  { %5166 = vmatprep.mubr.msk.f32.mxu1 %vm1570_vm1, %v1567_v17  ;;  %v6848_v2 = vpop.f32.mrb[114].mxu0 }
 0x1c0   :  { %5167 = vmatmul.mubr.msk.f32.gmra.mrb[140].mxu1 %vm1570_vm1, %v1568_v27  ;;  %v6851_v53 = vpop.f32.mrb[115].mxu0  ;;  %4235 = vmatmul.mubr.msk.f32.gmra.mrb[220].mxu0 %vm87_vm0, %v6856_v25  ;;  %v5399_v27 = vld [vmem:[%s8038_s0 + $0x48] sm:$0xff] }
 0x1c1   :  { %2546 = vmatprep.mubr.f32.mxu0 %v8125_v11  ;;  %2671 = vmatprep.mubr.f32.mxu1 %v8125_v11 }
 0x1c3   :  { %v6862_v13 = vpop.f32.mrb[116].mxu0 }
 0x1c4   :  { %v6864_v45 = vpop.f32.mrb[117].mxu0  ;;  %4236 = vmatmul.mubr.msk.f32.gmra.mrb[222].mxu0 %vm87_vm0, %v6869_v41  ;;  %4246 = vmatmul.mubr.msk.f32.vlgmr.msra.gmra.mrb[142].mxu1 %vm87_vm0, %v6876_v59 }
 0x1c5   :  { %2552 = vmatprep.mubr.f32.mxu0 %v8125_v11  ;;  %2677 = vmatprep.mubr.f32.mxu1 %v8125_v11 }
 0x1c7   :  { %v6882_v21 = vpop.f32.mrb[118].mxu0 }
 0x1c8   :  { %v6884_v46 = vpop.f32.mrb[119].mxu0  ;;  %4237 = vmatmul.mubr.msk.f32.gmra.mrb[224].mxu0 %vm87_vm0, %v6889_v63  ;;  %4247 = vmatmul.mubr.msk.f32.gmra.mrb[144].mxu1 %vm87_vm0, %v6896_v34 }
 0x1c9   :  { %2558 = vmatprep.mubr.f32.mxu0 %v8125_v11  ;;  %2683 = vmatprep.mubr.f32.mxu1 %v8125_v11 }
 0x1cb   :  { %v6902_v19 = vpop.f32.mrb[120].mxu0 }
 0x1cc   :  { %v6904_v47 = vpop.f32.mrb[121].mxu0  ;;  %4238 = vmatmul.mubr.msk.f32.gmra.mrb[226].mxu0 %vm87_vm0, %v6909_v22  ;;  %4248 = vmatmul.mubr.msk.f32.gmra.mrb[146].mxu1 %vm87_vm0, %v6916_v16 }
 0x1cd   :  { %2564 = vmatprep.mubr.f32.mxu0 %v8125_v11  ;;  %2689 = vmatprep.mubr.f32.mxu1 %v8125_v11 }
 0x1cf   :  { %v6922_v61 = vpop.f32.mrb[122].mxu0 }
 0x1d0   :  { %v6924_v48 = vpop.f32.mrb[123].mxu0  ;;  %4239 = vmatmul.mubr.msk.f32.gmra.mrb[228].mxu0 %vm87_vm0, %v6929_v23  ;;  %4249 = vmatmul.mubr.msk.f32.gmra.mrb[148].mxu1 %vm87_vm0, %v6936_v18 }
 0x1d1   :  { %2570 = vmatprep.mubr.f32.mxu0 %v8125_v11  ;;  %2695 = vmatprep.mubr.f32.mxu1 %v8125_v11 }
 0x1d3   :  { %v6942_v37 = vpop.f32.mrb[124].mxu0 }
 0x1d4   :  { %v6944_v49 = vpop.f32.mrb[125].mxu0  ;;  %4240 = vmatmul.mubr.msk.f32.gmra.mrb[230].mxu0 %vm87_vm0, %v6949_v28  ;;  %4250 = vmatmul.mubr.msk.f32.gmra.mrb[150].mxu1 %vm87_vm0, %v5389_v20 }
 0x1d5   :  { %2576 = vmatprep.mubr.f32.mxu0 %v8125_v11  ;;  %2701 = vmatprep.mubr.f32.mxu1 %v8125_v11 }
 0x1d7   :  { %v6959_v10 = vpop.f32.mrb[126].mxu0 }
 0x1d8   :  { %v6961_v50 = vpop.f32.mrb[127].mxu0  ;;  %4241 = vmatmul.mubr.msk.f32.gmra.mrb[232].mxu0 %vm87_vm0, %v6966_v52  ;;  %4251 = vmatmul.mubr.msk.f32.gmra.mrb[152].mxu1 %vm87_vm0, %v5391_v4 }
 0x1d9   :  { %2582 = vmatprep.mubr.f32.mxu0 %v8125_v11  ;;  %2707 = vmatprep.mubr.f32.mxu1 %v8125_v11 }
 0x1db   :  { %v6976_v9 = vpop.f32.mrb[128].mxu0 }
 0x1dc   :  { %v6978_v6 = vpop.f32.mrb[129].mxu0  ;;  %4242 = vmatmul.mubr.msk.f32.gmra.mrb[234].mxu0 %vm87_vm0, %v6983_v12  ;;  %4252 = vmatmul.mubr.msk.f32.gmra.mrb[154].mxu1 %vm87_vm0, %v5393_v32  ;;  %v5402_v12 = vld [vmem:[%s8038_s0 + $0x60] sm:$0xff] }
 0x1dd   :  { %2588 = vmatprep.mubr.f32.mxu0 %v8125_v11  ;;  %2713 = vmatprep.mubr.f32.mxu1 %v8125_v11 }
 0x1df   :  { %v6993_v39 = vpop.f32.mrb[130].mxu0 }
 0x1e0   :  { %v6995_v56 = vpop.f32.mrb[131].mxu0  ;;  %4243 = vmatmul.mubr.msk.f32.gmra.mrb[236].mxu0 %vm87_vm0, %v7000_v44  ;;  %4253 = vmatmul.mubr.msk.f32.gmra.mrb[156].mxu1 %vm87_vm0, %v5395_v58  ;;  %v5401_v44 = vld [vmem:[%s8038_s0 + $0x58] sm:$0xff] }
 0x1e1   :  { %2594 = vmatprep.mubr.f32.mxu0 %v8125_v11  ;;  %2719 = vmatprep.mubr.f32.mxu1 %v8125_v11 }
 0x1e3   :  { %v7010_v26 = vpop.f32.mrb[132].mxu0 }
 0x1e4   :  { %v7012_v36 = vpop.f32.mrb[133].mxu0  ;;  %4244 = vmatmul.mubr.msk.f32.gmra.mrb[238].mxu0 %vm87_vm0, %v7017_v42  ;;  %4254 = vmatmul.mubr.msk.f32.gmra.mrb[158].mxu1 %vm87_vm0, %v5397_v7  ;;  %v5400_v42 = vld [vmem:[%s8038_s0 + $0x50] sm:$0xff] }
 0x1e5   :  { %2600 = vmatprep.mubr.f32.mxu0 %v8125_v11  ;;  %2725 = vmatprep.mubr.f32.mxu1 %v8125_v11 }
 0x1e7   :  { %v7027_v57 = vpop.f32.mrb[134].mxu0 }
 0x1e8   :  { %v7029_v3 = vpop.f32.mrb[135].mxu0  ;;  %4245 = vmatmul.mubr.msk.f32.gmra.mrb[240].mxu0 %vm87_vm0, %v7034_v38  ;;  %4255 = vmatmul.mubr.msk.f32.gmra.mrb[160].mxu1 %vm87_vm0, %v5399_v27 }
 0x1e9   :  { %2731 = vmatprep.mubr.f32.mxu1 %v8125_v11  ;;  %5173 = vmatprep.mubr.msk.f32.mxu0 %vm87_vm0, %v6876_v59 }
 0x1eb   :  { %v7045_v29 = vpop.f32.mrb[136].mxu0 }
 0x1ec   :  { %v7047_v17 = vpop.f32.mrb[137].mxu0  ;;  %4256 = vmatmul.mubr.msk.f32.gmra.mrb[162].mxu1 %vm87_vm0, %v5400_v42  ;;  %5174 = vmatmul.mubr.msk.f32.vlgmr.msra.gmra.mrb[242].mxu0 %vm87_vm0, %v6896_v34 }
 0x1ed   :  { %2737 = vmatprep.mubr.f32.mxu1 %v8125_v11  ;;  %5176 = vmatprep.mubr.msk.f32.mxu0 %vm87_vm0, %v6916_v16 }
 0x1ef   :  { %v7058_v38 = vpop.f32.mrb[138].mxu0 }
 0x1f0   :  { %v7060_v59 = vpop.f32.mrb[139].mxu0  ;;  %4257 = vmatmul.mubr.msk.f32.gmra.mrb[164].mxu1 %vm87_vm0, %v5401_v44  ;;  %5177 = vmatmul.mubr.msk.f32.gmra.mrb[244].mxu0 %vm87_vm0, %v6936_v18 }
 0x1f1   :  { %2743 = vmatprep.mubr.f32.mxu1 %v8125_v11  ;;  %5179 = vmatprep.mubr.msk.f32.mxu0 %vm87_vm0, %v5389_v20  ;;  %v5403_v20 = vld [vmem:[%s8038_s0 + $0x68] sm:$0xff] }
 0x1f3   :  { %v7070_v34 = vpop.f32.mrb[140].mxu0 }
 0x1f4   :  { %v7072_v16 = vpop.f32.mrb[141].mxu0  ;;  %4258 = vmatmul.mubr.msk.f32.gmra.mrb[166].mxu1 %vm87_vm0, %v5402_v12  ;;  %5180 = vmatmul.mubr.msk.f32.gmra.mrb[246].mxu0 %vm87_vm0, %v5391_v4 }
 0x1f5   :  { %2749 = vmatprep.mubr.f32.mxu1 %v8125_v11  ;;  %5182 = vmatprep.mubr.msk.f32.mxu0 %vm87_vm0, %v5393_v32  ;;  %v5404_v32 = vld [vmem:[%s8038_s0 + $0x70] sm:$0xff] }
 0x1f7   :  { %v7081_v18 = vpop.f32.mrb[142].mxu0 }
 0x1f8   :  { %v7083_v52 = vpop.f32.mrb[143].mxu0  ;;  %4259 = vmatmul.mubr.msk.f32.gmra.mrb[168].mxu1 %vm87_vm0, %v5403_v20  ;;  %5183 = vmatmul.mubr.msk.f32.gmra.mrb[248].mxu0 %vm87_vm0, %v5395_v58 }
 0x1f9   :  { %2755 = vmatprep.mubr.f32.mxu1 %v8125_v11  ;;  %5185 = vmatprep.mubr.msk.f32.mxu0 %vm87_vm0, %v5397_v7  ;;  %v5405_v7 = vld [vmem:[%s8038_s0 + $0x78] sm:$0xff] }
 0x1fb   :  { %v7092_v4 = vpop.f32.mrb[144].mxu0 }
 0x1fc   :  { %v7094_v28 = vpop.f32.mrb[145].mxu0  ;;  %4260 = vmatmul.mubr.msk.f32.gmra.mrb[170].mxu1 %vm87_vm0, %v5404_v32  ;;  %5186 = vmatmul.mubr.msk.f32.gmra.mrb[250].mxu0 %vm87_vm0, %v5399_v27 }
 0x1fd   :  { %2761 = vmatprep.mubr.f32.mxu1 %v8125_v11  ;;  %5188 = vmatprep.mubr.msk.f32.mxu0 %vm87_vm0, %v5400_v42  ;;  %v5406_v42 = vld [vmem:[%s8038_s0 + $0x80] sm:$0xff] }
 0x1ff   :  { %v7103_v58 = vpop.f32.mrb[146].mxu0 }
 0x200   :  { %v7105_v23 = vpop.f32.mrb[147].mxu0  ;;  %4261 = vmatmul.mubr.msk.f32.gmra.mrb[172].mxu1 %vm87_vm0, %v5405_v7  ;;  %5189 = vmatmul.mubr.msk.f32.gmra.mrb[252].mxu0 %vm87_vm0, %v5401_v44 }
 0x201   :  { %2767 = vmatprep.mubr.f32.mxu1 %v8125_v11  ;;  %5191 = vmatprep.mubr.msk.f32.mxu0 %vm87_vm0, %v5402_v12  ;;  %v5407_v12 = vld [vmem:[%s8038_s0 + $0x88] sm:$0xff] }
 0x203   :  { %v7114_v27 = vpop.f32.mrb[148].mxu0 }
 0x204   :  { %v7116_v22 = vpop.f32.mrb[149].mxu0  ;;  %4262 = vmatmul.mubr.msk.f32.gmra.mrb[174].mxu1 %vm87_vm0, %v5406_v42  ;;  %5192 = vmatmul.mubr.msk.f32.gmra.mrb[254].mxu0 %vm87_vm0, %v5403_v20 }
 0x205   :  { %2773 = vmatprep.mubr.f32.mxu1 %v8125_v11  ;;  %5194 = vmatprep.mubr.msk.f32.mxu0 %vm87_vm0, %v5404_v32  ;;  %v5408_v32 = vld [vmem:[%s8038_s0 + $0x90] sm:$0xff] }
 0x207   :  { %v7125_v44 = vpop.f32.mrb[150].mxu0 }
 0x208   :  { %v7127_v63 = vpop.f32.mrb[151].mxu0  ;;  %4263 = vmatmul.mubr.msk.f32.gmra.mrb[176].mxu1 %vm87_vm0, %v5407_v12  ;;  %5195 = vmatmul.mubr.msk.f32.gmra.mrb[0].mxu0 %vm87_vm0, %v5405_v7 }
 0x209   :  { %2779 = vmatprep.mubr.f32.mxu1 %v8125_v11  ;;  %5197 = vmatprep.mubr.msk.f32.mxu0 %vm87_vm0, %v5406_v42  ;;  %v5409_v42 = vld [vmem:[%s8038_s0 + $0x98] sm:$0xff] }
 0x20b   :  { %v7136_v20 = vpop.f32.mrb[152].mxu0 }
 0x20c   :  { %v7138_v41 = vpop.f32.mrb[153].mxu0  ;;  %4264 = vmatmul.mubr.msk.f32.gmra.mrb[178].mxu1 %vm87_vm0, %v5408_v32  ;;  %5198 = vmatmul.mubr.msk.f32.gmra.mrb[2].mxu0 %vm87_vm0, %v5407_v12  ;;  %v5410_v12 = vld [vmem:[%s8038_s0 + $0xa0] sm:$0xff] }
 0x20d   :  { %2785 = vmatprep.mubr.f32.mxu1 %v8125_v11  ;;  %5200 = vmatprep.mubr.msk.f32.mxu0 %vm87_vm0, %v5408_v32 }
 0x20f   :  { %v7147_v7 = vpop.f32.mrb[154].mxu0 }
 0x210   :  { %v7149_v25 = vpop.f32.mrb[155].mxu0  ;;  %4265 = vmatmul.mubr.msk.f32.gmra.mrb[180].mxu1 %vm87_vm0, %v5409_v42  ;;  %5201 = vmatmul.mubr.msk.f32.gmra.mrb[4].mxu0 %vm87_vm0, %v5409_v42  ;;  %v5412_v42 = vld [vmem:[%s8038_s0 + $0xb0] sm:$0xff] }
 0x211   :  { %8173 = vst [vmem:[#allocation26_spill] sm:$0xff] %v7149_v25  ;;  %2791 = vmatprep.mubr.f32.mxu1 %v8125_v11  ;;  %5203 = vmatprep.mubr.msk.f32.mxu0 %vm87_vm0, %v5410_v12 }
 0x213   :  { %v7161_v32 = vpop.f32.mrb[156].mxu0 }
 0x214   :  { %v7163_v1 = vpop.f32.mrb[157].mxu0  ;;  %4266 = vmatmul.mubr.msk.f32.gmra.mrb[182].mxu1 %vm87_vm0, %v5410_v12  ;;  %5204 = vmatmul.mubr.msk.f32.gmra.mrb[6].mxu0 %vm87_vm0, %v5411_v5 }
 0x215   :  { %8174 = vst [vmem:[#allocation9_spill] sm:$0xff] %v7163_v1  ;;  %2797 = vmatprep.mubr.f32.mxu1 %v8125_v11  ;;  %5206 = vmatprep.mubr.msk.f32.mxu0 %vm87_vm0, %v5412_v42  ;;  %v5415_v1 = vld [vmem:[%s8038_s0 + $0xc8] sm:$0xff] }
 0x217   :  { %v5075_v60 = vpop.f32.mrb[78].mxu1  ;;  %v7175_v31 = vpop.f32.mrb[158].mxu0 }
 0x218   :  { %8175 = vst [vmem:[#allocation20_spill] sm:$0xff] %v7175_v31  ;;  %v3442_v33 = vmul.f32 %v5075_v60, %v6862_v13  ;;  %v1829_v12 = vpop.f32.mrb[79].mxu1  ;;  %v7178_v14 = vpop.f32.mrb[159].mxu0  ;;  %4267 = vmatmul.mubr.msk.f32.gmra.mrb[184].mxu1 %vm87_vm0, %v5411_v5  ;;  %5207 = vmatmul.mubr.msk.f32.gmra.mrb[8].mxu0 %vm87_vm0, %v5413_v30  ;;  %v5414_v31 = vld [vmem:[%s8038_s0 + $0xc0] sm:$0xff] }
 0x219   :  { %8176 = vst [vmem:[#allocation27_spill] sm:$0xff] %v7178_v14  ;;  %v3441_v54 = vmul.f32 %v6848_v2, %v1829_v12  ;;  %2803 = vmatprep.mubr.f32.mxu1 %v8125_v11  ;;  %5209 = vmatprep.mubr.msk.f32.mxu0 %vm87_vm0, %v5414_v31 }
 0x21a   :  { %v7192_v60 = vmul.f32 %v3442_v33, %v6864_v45 }
 0x21b   :  { %v5078_v5 = vpop.f32.mrb[80].mxu1  ;;  %v7194_v13 = vpop.f32.mrb[160].mxu0  ;;  %v7197_v14 = vmul.f32 %v3441_v54, %v6851_v53  ;;  %v5416_v54 = vld [vmem:[%s8038_s0 + $0xd0] sm:$0xff] }
 0x21c   :  { %8177 = vst [vmem:[#allocation28_spill] sm:$0xff] %v7192_v60  ;;  %v3444_v25 = vmul.f32 %v5078_v5, %v6902_v19  ;;  %v1839_v2 = vpop.f32.mrb[81].mxu1  ;;  %v7200_v12 = vpop.f32.mrb[161].mxu0  ;;  %4268 = vmatmul.mubr.msk.f32.gmra.mrb[186].mxu1 %vm87_vm0, %v5412_v42  ;;  %5210 = vmatmul.mubr.msk.f32.gmra.mrb[10].mxu0 %vm87_vm0, %v5415_v1  ;;  %v5417_v60 = vld [vmem:[%s8038_s0 + $0xd8] sm:$0xff] }
 0x21d   :  { %v3443_v33 = vmul.f32 %v6882_v21, %v1839_v2  ;;  %2809 = vmatprep.mubr.f32.mxu1 %v8125_v11  ;;  %5212 = vmatprep.mubr.msk.f32.mxu0 %vm87_vm0, %v5416_v54 }
 0x21e   :  { %v7214_v53 = vmul.f32 %v3444_v25, %v6904_v47 }
 0x21f   :  { %v5081_v45 = vpop.f32.mrb[82].mxu1  ;;  %v7216_v19 = vpop.f32.mrb[162].mxu0  ;;  %v7219_v42 = vmul.f32 %v3443_v33, %v6884_v46  ;;  %v7234_v46 = vld [vmem:[%s8038_s0 + $0xe0] sm:$0xff] }
 0x220   :  { %8178 = vst [vmem:[#allocation29_spill] sm:$0xff] %v7214_v53  ;;  %v3446_v5 = vmul.f32 %v5081_v45, %v6942_v37  ;;  %v1849_v21 = vpop.f32.mrb[83].mxu1  ;;  %v7222_v2 = vpop.f32.mrb[163].mxu0  ;;  %4269 = vmatmul.mubr.msk.f32.gmra.mrb[188].mxu1 %vm87_vm0, %v5413_v30  ;;  %5213 = vmatmul.mubr.msk.f32.gmra.mrb[12].mxu0 %vm87_vm0, %v5417_v60  ;;  %v7253_v53 = vld [vmem:[%s8038_s0 + $0xe8] sm:$0xff] }
 0x221   :  { %v3445_v25 = vmul.f32 %v6922_v61, %v1849_v21  ;;  %2815 = vmatprep.mubr.f32.mxu1 %v8125_v11  ;;  %5215 = vmatprep.mubr.msk.f32.mxu0 %vm87_vm0, %v7234_v46 }
 0x222   :  { %v7239_v30 = vmul.f32 %v3446_v5, %v6944_v49 }
 0x223   :  { %v5084_v47 = vpop.f32.mrb[84].mxu1  ;;  %v7241_v37 = vpop.f32.mrb[164].mxu0  ;;  %v7244_v33 = vmul.f32 %v3445_v25, %v6924_v48  ;;  %v7262_v48 = vld [vmem:[%s8038_s0 + $0xf0] sm:$0xff] }
 0x224   :  { %8179 = vst [vmem:[#allocation30_spill] sm:$0xff] %v7239_v30  ;;  %v3448_v61 = vmul.f32 %v5084_v47, %v6976_v9  ;;  %v1859_v45 = vpop.f32.mrb[85].mxu1  ;;  %v7247_v21 = vpop.f32.mrb[165].mxu0  ;;  %4270 = vmatmul.mubr.msk.f32.gmra.mrb[190].mxu1 %vm87_vm0, %v5414_v31  ;;  %5216 = vmatmul.mubr.msk.f32.gmra.mrb[14].mxu0 %vm87_vm0, %v7253_v53  ;;  %v7281_v30 = vld [vmem:[%s8038_s0 + $0xf8] sm:$0xff] }
 0x225   :  { %v3447_v49 = vmul.f32 %v6959_v10, %v1859_v45  ;;  %2821 = vmatprep.mubr.f32.mxu1 %v8125_v11  ;;  %5218 = vmatprep.mubr.msk.f32.mxu0 %vm87_vm0, %v7262_v48 }
 0x226   :  { %v7267_v31 = vmul.f32 %v3448_v61, %v6978_v6 }
 0x227   :  { %v5087_v9 = vpop.f32.mrb[86].mxu1  ;;  %v7269_v5 = vpop.f32.mrb[166].mxu0  ;;  %v7272_v25 = vmul.f32 %v3447_v49, %v6961_v50  ;;  %v7290_v50 = vld [vmem:[%s8038_s0 + $0x100] sm:$0xff] }
 0x228   :  { %8180 = vst [vmem:[#allocation31_spill] sm:$0xff] %v7267_v31  ;;  %v3450_v10 = vmul.f32 %v5087_v9, %v7010_v26  ;;  %v1869_v47 = vpop.f32.mrb[87].mxu1  ;;  %v7275_v45 = vpop.f32.mrb[167].mxu0  ;;  %4271 = vmatmul.mubr.msk.f32.gmra.mrb[192].mxu1 %vm87_vm0, %v5415_v1  ;;  %5219 = vmatmul.mubr.msk.f32.gmra.mrb[16].mxu0 %vm87_vm0, %v7281_v30  ;;  %v7309_v31 = vld [vmem:[%s8038_s0 + $0x108] sm:$0xff] }
 0x229   :  { %v3449_v6 = vmul.f32 %v6993_v39, %v1869_v47  ;;  %2827 = vmatprep.mubr.f32.mxu1 %v8125_v11  ;;  %5221 = vmatprep.mubr.msk.f32.mxu0 %vm87_vm0, %v7290_v50 }
 0x22a   :  { %v7295_v1 = vmul.f32 %v3450_v10, %v7012_v36 }
 0x22b   :  { %v5090_v26 = vpop.f32.mrb[88].mxu1  ;;  %v7297_v61 = vpop.f32.mrb[168].mxu0  ;;  %v7300_v49 = vmul.f32 %v3449_v6, %v6995_v56  ;;  %v7318_v56 = vld [vmem:[%s8038_s0 + $0x110] sm:$0xff] }
 0x22c   :  { %8181 = vst [vmem:[#allocation32_spill] sm:$0xff] %v7295_v1  ;;  %v3452_v39 = vmul.f32 %v5090_v26, %v7045_v29  ;;  %v1879_v9 = vpop.f32.mrb[89].mxu1  ;;  %v7303_v47 = vpop.f32.mrb[169].mxu0  ;;  %4272 = vmatmul.mubr.msk.f32.gmra.mrb[194].mxu1 %vm87_vm0, %v5416_v54  ;;  %5222 = vmatmul.mubr.msk.f32.gmra.mrb[18].mxu0 %vm87_vm0, %v7309_v31 }
 0x22d   :  { %v3451_v36 = vmul.f32 %v7027_v57, %v1879_v9  ;;  %2833 = vmatprep.mubr.f32.mxu1 %v8125_v11  ;;  %5224 = vmatprep.mubr.msk.f32.mxu0 %vm87_vm0, %v7318_v56 }
 0x22e   :  { %v7323_v29 = vmul.f32 %v3452_v39, %v7047_v17 }
 0x22f   :  { %v5093_v54 = vpop.f32.mrb[90].mxu1  ;;  %v7325_v10 = vpop.f32.mrb[170].mxu0  ;;  %v7328_v6 = vmul.f32 %v3451_v36, %v7029_v3 }
 0x230   :  { %v3454_v57 = vmul.f32 %v5093_v54, %v7070_v34  ;;  %v1889_v26 = vpop.f32.mrb[91].mxu1  ;;  %v7331_v9 = vpop.f32.mrb[171].mxu0  ;;  %4273 = vmatmul.mubr.msk.f32.gmra.mrb[196].mxu1 %vm87_vm0, %v5417_v60  ;;  %5225 = vmatmul.mubr.msk.f32.gmra.mrb[20].mxu0 %vm87_vm0, %v6637_v55 }
 0x231   :  { %v3453_v1 = vmul.f32 %v7058_v38, %v1889_v26  ;;  %2839 = vmatprep.mubr.f32.mxu1 %v8125_v11  ;;  %5227 = vmatprep.mubr.msk.f32.mxu0 %vm87_vm0, %v6649_v15 }
 0x232   :  { %v7341_v3 = vmul.f32 %v3454_v57, %v7072_v16 }
 0x233   :  { %v5096_v17 = vpop.f32.mrb[92].mxu1  ;;  %v7343_v34 = vpop.f32.mrb[172].mxu0  ;;  %v7346_v39 = vmul.f32 %v3453_v1, %v7060_v59 }
 0x234   :  { %v3456_v60 = vmul.f32 %v5096_v17, %v7092_v4  ;;  %v1899_v36 = vpop.f32.mrb[93].mxu1  ;;  %v7349_v54 = vpop.f32.mrb[173].mxu0  ;;  %4274 = vmatmul.mubr.msk.f32.gmra.mrb[198].mxu1 %vm87_vm0, %v7234_v46  ;;  %5228 = vmatmul.mubr.msk.f32.gmra.mrb[22].mxu0 %vm87_vm0, %v6661_v51 }
 0x235   :  { %v3455_v38 = vmul.f32 %v7081_v18, %v1899_v36  ;;  %2845 = vmatprep.mubr.f32.mxu1 %v8125_v11  ;;  %5230 = vmatprep.mubr.msk.f32.mxu0 %vm87_vm0, %v6673_v43 }
 0x236   :  { %v7360_v59 = vmul.f32 %v3456_v60, %v7094_v28 }
 0x237   :  { %v5099_v16 = vpop.f32.mrb[94].mxu1  ;;  %v7362_v4 = vpop.f32.mrb[174].mxu0  ;;  %v7365_v1 = vmul.f32 %v3455_v38, %v7083_v52 }
 0x238   :  { %v3458_v46 = vmul.f32 %v5099_v16, %v7114_v27  ;;  %v1909_v57 = vpop.f32.mrb[95].mxu1  ;;  %v7368_v26 = vpop.f32.mrb[175].mxu0  ;;  %4275 = vmatmul.mubr.msk.f32.gmra.mrb[200].mxu1 %vm87_vm0, %v7253_v53  ;;  %5231 = vmatmul.mubr.msk.f32.gmra.mrb[24].mxu0 %vm87_vm0, %v6685_v24 }
 0x239   :  { %v3457_v28 = vmul.f32 %v7103_v58, %v1909_v57  ;;  %2851 = vmatprep.mubr.f32.mxu1 %v8125_v11  ;;  %5233 = vmatprep.mubr.msk.f32.mxu0 %vm87_vm0, %v6697_v62 }
 0x23a   :  { %v7379_v52 = vmul.f32 %v3458_v46, %v7116_v22 }
 0x23b   :  { %v5102_v18 = vpop.f32.mrb[96].mxu1  ;;  %v7381_v27 = vpop.f32.mrb[176].mxu0  ;;  %v7384_v17 = vmul.f32 %v3457_v28, %v7105_v23  ;;  %v8184_v28 = vld [vmem:[#allocation26_spill] sm:$0xff] }
 0x23c   :  { %v3460_v53 = vmul.f32 %v5102_v18, %v7136_v20  ;;  %v1919_v60 = vpop.f32.mrb[97].mxu1  ;;  %v7387_v36 = vpop.f32.mrb[177].mxu0  ;;  %4276 = vmatmul.mubr.msk.f32.gmra.mrb[202].mxu1 %vm87_vm0, %v7262_v48  ;;  %5234 = vmatmul.mubr.msk.f32.gmra.mrb[26].mxu0 %vm87_vm0, %v6709_v35 }
 0x23d   :  { %v3459_v22 = vmul.f32 %v7125_v44, %v1919_v60  ;;  %2857 = vmatprep.mubr.f32.mxu1 %v8125_v11  ;;  %5236 = vmatprep.mubr.msk.f32.mxu0 %vm87_vm0, %v6721_v0 }
 0x23e   :  { %v7398_v23 = vmul.f32 %v3460_v53, %v7138_v41 }
 0x23f   :  { %v5105_v58 = vpop.f32.mrb[98].mxu1  ;;  %v7400_v20 = vpop.f32.mrb[178].mxu0  ;;  %v7403_v38 = vmul.f32 %v3459_v22, %v7127_v63  ;;  %v8182_v63 = vld [vmem:[#allocation9_spill] sm:$0xff]  ;;  %v8186_v22 = vld [vmem:[#allocation20_spill] sm:$0xff] }
 0x240   :  { %v3462_v48 = vmul.f32 %v5105_v58, %v7161_v32  ;;  %v1929_v16 = vpop.f32.mrb[99].mxu1  ;;  %v7406_v46 = vpop.f32.mrb[179].mxu0  ;;  %4277 = vmatmul.mubr.msk.f32.gmra.mrb[204].mxu1 %vm87_vm0, %v7281_v30  ;;  %5237 = vmatmul.mubr.msk.f32.gmra.mrb[28].mxu0 %vm87_vm0, %v6733_v8 }
 0x241   :  { %v3461_v41 = vmul.f32 %v7147_v7, %v1929_v16  ;;  %2863 = vmatprep.mubr.f32.mxu1 %v8125_v11  ;;  %5239 = vmatprep.mubr.msk.f32.mxu0 %vm87_vm0, %v6745_v40  ;;  %v8185_v7 = vld [vmem:[#allocation10_spill] sm:$0xff] }
 0x242   :  { %v7417_v44 = vmul.f32 %v3462_v48, %v8182_v63  ;;  %v8187_v48 = vld [vmem:[#allocation21_spill] sm:$0xff]  ;;  %v8189_v63 = vld [vmem:[#allocation27_spill] sm:$0xff] }
 0x243   :  { %v5108_v32 = vpop.f32.mrb[100].mxu1  ;;  %v2422_v57 = vpop.f32.mrb[180].mxu0  ;;  %v7420_v18 = vmul.f32 %v3461_v41, %v8184_v28 }
 0x244   :  { %8183 = vst [vmem:[#allocation9_spill] sm:$0xff] %v7417_v44  ;;  %v3464_v30 = vmul.f32 %v5108_v32, %v7194_v13  ;;  %v1939_v53 = vpop.f32.mrb[101].mxu1  ;;  %v7423_v60 = vpop.f32.mrb[181].mxu0  ;;  %4278 = vmatmul.mubr.msk.f32.gmra.mrb[206].mxu1 %vm87_vm0, %v7290_v50  ;;  %5240 = vmatmul.mubr.msk.f32.gmra.mrb[30].mxu0 %vm87_vm0, %v8185_v7 }
 0x245   :  { %v3463_v58 = vmul.f32 %v8186_v22, %v1939_v53  ;;  %2869 = vmatprep.mubr.f32.mxu1 %v8125_v11  ;;  %5242 = vmatprep.mubr.msk.f32.mxu0 %vm87_vm0, %v8187_v48  ;;  %v8190_v53 = vld [vmem:[#allocation11_spill] sm:$0xff] }
 0x246   :  { %v7434_v16 = vmul.f32 %v3464_v30, %v7200_v12  ;;  %v8191_v30 = vld [vmem:[#allocation5_spill] sm:$0xff] }
 0x247   :  { %v5111_v13 = vpop.f32.mrb[102].mxu1  ;;  %v7436_v41 = vpop.f32.mrb[182].mxu0  ;;  %v7439_v32 = vmul.f32 %v3463_v58, %v8189_v63 }
 0x248   :  { %8188 = vst [vmem:[#allocation26_spill] sm:$0xff] %v7434_v16  ;;  %v3466_v50 = vmul.f32 %v5111_v13, %v7241_v37  ;;  %v1949_v28 = vpop.f32.mrb[103].mxu1  ;;  %v7442_v44 = vpop.f32.mrb[183].mxu0  ;;  %4279 = vmatmul.mubr.msk.f32.gmra.mrb[208].mxu1 %vm87_vm0, %v7309_v31  ;;  %5243 = vmatmul.mubr.msk.f32.gmra.mrb[32].mxu0 %vm87_vm0, %v8190_v53 }
 0x249   :  { %v3465_v12 = vmul.f32 %v7216_v19, %v1949_v28  ;;  %2875 = vmatprep.mubr.f32.mxu1 %v8125_v11  ;;  %5245 = vmatprep.mubr.msk.f32.mxu0 %vm87_vm0, %v8191_v30  ;;  %v8193_v19 = vld [vmem:[#allocation12_spill] sm:$0xff] }
 0x24a   :  { %v7453_v22 = vmul.f32 %v3466_v50, %v7247_v21  ;;  %v8194_v21 = vld [vmem:[#allocation22_spill] sm:$0xff] }
 0x24b   :  { %v5114_v37 = vpop.f32.mrb[104].mxu1  ;;  %v2434_v58 = vpop.f32.mrb[184].mxu0  ;;  %v7456_v13 = vmul.f32 %v3465_v12, %v7222_v2 }
 0x24c   :  { %8192 = vst [vmem:[#allocation10_spill] sm:$0xff] %v7453_v22  ;;  %v3468_v31 = vmul.f32 %v5114_v37, %v7297_v61  ;;  %v1959_v63 = vpop.f32.mrb[105].mxu1  ;;  %v2436_v16 = vpop.f32.mrb[185].mxu0  ;;  %4280 = vmatmul.mubr.msk.f32.gmra.mrb[210].mxu1 %vm87_vm0, %v7318_v56  ;;  %5246 = vmatmul.mubr.msk.f32.gmra.mrb[34].mxu0 %vm87_vm0, %v8193_v19 }
 0x24d   :  { %v3467_v28 = vmul.f32 %v7269_v5, %v1959_v63  ;;  %2881 = vmatprep.mubr.f32.mxu1 %v8125_v11  ;;  %5248 = vmatprep.mubr.msk.f32.mxu0 %vm87_vm0, %v8194_v21  ;;  %v8196_v5 = vld [vmem:[#allocation13_spill] sm:$0xff] }
 0x24e   :  { %v7468_v2 = vmul.f32 %v3468_v31, %v7303_v47  ;;  %v8197_v47 = vld [vmem:[#allocation6_spill] sm:$0xff] }
 0x24f   :  { %v5117_v50 = vpop.f32.mrb[106].mxu1  ;;  %v2440_v61 = vpop.f32.mrb[186].mxu0  ;;  %v7471_v12 = vmul.f32 %v3467_v28, %v7275_v45 }
 0x250   :  { %8195 = vst [vmem:[#allocation20_spill] sm:$0xff] %v7468_v2  ;;  %v3470_v56 = vmul.f32 %v5117_v50, %v7343_v34  ;;  %v1969_v37 = vpop.f32.mrb[107].mxu1  ;;  %v2442_v22 = vpop.f32.mrb[187].mxu0  ;;  %4281 = vmatmul.mubr.msk.f32.gmra.mrb[212].mxu1 %vm87_vm0, %v6637_v55  ;;  %5249 = vmatmul.mubr.msk.f32.gmra.mrb[36].mxu0 %vm87_vm0, %v8196_v5 }
 0x251   :  { %v3469_v63 = vmul.f32 %v7325_v10, %v1969_v37  ;;  %2887 = vmatprep.mubr.f32.mxu1 %v8125_v11  ;;  %5251 = vmatprep.mubr.msk.f32.mxu0 %vm87_vm0, %v8197_v47  ;;  %v8199_v10 = vld [vmem:[#allocation14_spill] sm:$0xff] }
 0x252   :  { %v7483_v45 = vmul.f32 %v3470_v56, %v7349_v54  ;;  %v8200_v54 = vld [vmem:[#allocation23_spill] sm:$0xff] }
 0x253   :  { %v5120_v31 = vpop.f32.mrb[108].mxu1  ;;  %v2446_v34 = vpop.f32.mrb[188].mxu0  ;;  %v7486_v28 = vmul.f32 %v3469_v63, %v7331_v9 }
 0x254   :  { %8198 = vst [vmem:[#allocation21_spill] sm:$0xff] %v7483_v45  ;;  %v3472_v55 = vmul.f32 %v5120_v31, %v7381_v27  ;;  %v1979_v50 = vpop.f32.mrb[109].mxu1  ;;  %v2448_v2 = vpop.f32.mrb[189].mxu0  ;;  %4282 = vmatmul.mubr.msk.f32.gmra.mrb[214].mxu1 %vm87_vm0, %v6649_v15  ;;  %5252 = vmatmul.mubr.msk.f32.gmra.mrb[38].mxu0 %vm87_vm0, %v8199_v10 }
 0x255   :  { %v3471_v37 = vmul.f32 %v7362_v4, %v1979_v50  ;;  %2893 = vmatprep.mubr.f32.mxu1 %v8125_v11  ;;  %5254 = vmatprep.mubr.msk.f32.mxu0 %vm87_vm0, %v8200_v54  ;;  %v8202_v4 = vld [vmem:[#allocation15_spill] sm:$0xff] }
 0x256   :  { %v7498_v9 = vmul.f32 %v3472_v55, %v7387_v36  ;;  %v8203_v36 = vld [vmem:[#allocation7_spill] sm:$0xff] }
 0x257   :  { %v5123_v56 = vpop.f32.mrb[110].mxu1  ;;  %v2452_v27 = vpop.f32.mrb[190].mxu0  ;;  %v7501_v63 = vmul.f32 %v3471_v37, %v7368_v26 }
 0x258   :  { %8201 = vst [vmem:[#allocation27_spill] sm:$0xff] %v7498_v9  ;;  %v3474_v31 = vmul.f32 %v5123_v56, %v2422_v57  ;;  %v1989_v15 = vpop.f32.mrb[111].mxu1  ;;  %v2454_v45 = vpop.f32.mrb[191].mxu0  ;;  %4283 = vmatmul.mubr.msk.f32.gmra.mrb[216].mxu1 %vm87_vm0, %v6661_v51  ;;  %5255 = vmatmul.mubr.msk.f32.gmra.mrb[40].mxu0 %vm87_vm0, %v8202_v4 }
 0x259   :  { %v3473_v50 = vmul.f32 %v7400_v20, %v1989_v15  ;;  %2899 = vmatprep.mubr.f32.mxu1 %v8125_v11  ;;  %5257 = vmatprep.mubr.msk.f32.mxu0 %vm87_vm0, %v8203_v36  ;;  %v8206_v20 = vld [vmem:[#allocation16_spill] sm:$0xff] }
 0x25a   :  { %v7512_v55 = vmul.f32 %v3474_v31, %v7423_v60  ;;  %v8207_v60 = vld [vmem:[#allocation24_spill] sm:$0xff] }
 0x25b   :  { %v5126_v26 = vpop.f32.mrb[112].mxu1  ;;  %v2458_v57 = vpop.f32.mrb[192].mxu0  ;;  %v7515_v37 = vmul.f32 %v3473_v50, %v7406_v46 }
 0x25c   :  { %8204 = vst [vmem:[#allocation11_spill] sm:$0xff] %v7512_v55  ;;  %v3476_v56 = vmul.f32 %v5126_v26, %v2434_v58  ;;  %v1999_v51 = vpop.f32.mrb[113].mxu1  ;;  %v2460_v9 = vpop.f32.mrb[193].mxu0  ;;  %4284 = vmatmul.mubr.msk.f32.gmra.mrb[218].mxu1 %vm87_vm0, %v6673_v43  ;;  %5258 = vmatmul.mubr.msk.f32.gmra.mrb[42].mxu0 %vm87_vm0, %v8206_v20 }
 0x25d   :  { %8205 = vst [vmem:[#allocation5_spill] sm:$0xff] %v7515_v37  ;;  %v3475_v15 = vmul.f32 %v7436_v41, %v1999_v51  ;;  %2905 = vmatprep.mubr.f32.mxu1 %v8125_v11  ;;  %5260 = vmatprep.mubr.msk.f32.mxu0 %vm87_vm0, %v8207_v60  ;;  %v8209_v37 = vld [vmem:[#allocation17_spill] sm:$0xff]  ;;  %v8210_v51 = vld [vmem:[#allocation8_spill] sm:$0xff] }
 0x25e   :  { %v7525_v31 = vmul.f32 %v3476_v56, %v2436_v16 }
 0x25f   :  { %v5129_v46 = vpop.f32.mrb[114].mxu1  ;;  %v2464_v50 = vpop.f32.mrb[194].mxu0  ;;  %v7528_v58 = vmul.f32 %v3475_v15, %v7442_v44 }
 0x260   :  { %8208 = vst [vmem:[#allocation12_spill] sm:$0xff] %v7525_v31  ;;  %v3478_v26 = vmul.f32 %v5129_v46, %v2446_v34  ;;  %v2009_v55 = vpop.f32.mrb[115].mxu1  ;;  %v2466_v43 = vpop.f32.mrb[195].mxu0  ;;  %4285 = vmatmul.mubr.msk.f32.gmra.mrb[220].mxu1 %vm87_vm0, %v6685_v24  ;;  %5261 = vmatmul.mubr.msk.f32.gmra.mrb[44].mxu0 %vm87_vm0, %v8209_v37  ;;  %v8212_v24 = vld [vmem:[#allocation18_spill] sm:$0xff] }
 0x261   :  { %v3477_v41 = vmul.f32 %v2440_v61, %v2009_v55  ;;  %2911 = vmatprep.mubr.f32.mxu1 %v8125_v11  ;;  %5263 = vmatprep.mubr.msk.f32.mxu0 %vm87_vm0, %v8210_v51  ;;  %v8213_v55 = vld [vmem:[#allocation25_spill] sm:$0xff] }
 0x262   :  { %v7537_v16 = vmul.f32 %v3478_v26, %v2448_v2 }
 0x263   :  { %v5132_v56 = vpop.f32.mrb[116].mxu1  ;;  %v2470_v44 = vpop.f32.mrb[196].mxu0  ;;  %v7539_v15 = vmul.f32 %v3477_v41, %v2442_v22 }
 0x264   :  { %8211 = vst [vmem:[#allocation22_spill] sm:$0xff] %v7537_v16  ;;  %v3480_v34 = vmul.f32 %v5132_v56, %v2458_v57  ;;  %v2019_v46 = vpop.f32.mrb[117].mxu1  ;;  %v2472_v31 = vpop.f32.mrb[197].mxu0  ;;  %4286 = vmatmul.mubr.msk.f32.gmra.mrb[222].mxu1 %vm87_vm0, %v6697_v62  ;;  %5264 = vmatmul.mubr.msk.f32.gmra.mrb[46].mxu0 %vm87_vm0, %v8212_v24  ;;  %v8214_v62 = vld [vmem:[#allocation19_spill] sm:$0xff] }
 0x265   :  { %v3479_v61 = vmul.f32 %v2452_v27, %v2019_v46  ;;  %2917 = vmatprep.mubr.f32.mxu1 %v8125_v11  ;;  %5266 = vmatprep.mubr.msk.f32.mxu0 %vm87_vm0, %v8213_v55 }
 0x266   :  { %v7548_v2 = vmul.f32 %v3480_v34, %v2460_v9 }
 0x267   :  { %v5135_v26 = vpop.f32.mrb[118].mxu1  ;;  %v2476_v22 = vpop.f32.mrb[198].mxu0  ;;  %v7550_v41 = vmul.f32 %v3479_v61, %v2454_v45 }
 0x268   :  { %v3482_v57 = vmul.f32 %v5135_v26, %v2470_v44  ;;  %v2029_v56 = vpop.f32.mrb[119].mxu1  ;;  %v2478_v16 = vpop.f32.mrb[199].mxu0  ;;  %4287 = vmatmul.mubr.msk.f32.gmra.mrb[224].mxu1 %vm87_vm0, %v6709_v35  ;;  %5267 = vmatmul.mubr.msk.f32.gmra.mrb[48].mxu0 %vm87_vm0, %v8214_v62 }
 0x269   :  { %v3481_v27 = vmul.f32 %v2464_v50, %v2029_v56  ;;  %2923 = vmatprep.mubr.f32.mxu1 %v8125_v11 }
 0x26a   :  { %v7557_v46 = vmul.f32 %v3482_v57, %v2472_v31 }
 0x26b   :  { %v5138_v9 = vpop.f32.mrb[120].mxu1  ;;  %v2482_v34 = vpop.f32.mrb[200].mxu0  ;;  %v7559_v55 = vmul.f32 %v3481_v27, %v2466_v43 }
 0x26c   :  { %v3484_v45 = vmul.f32 %v5138_v9, %v2482_v34  ;;  %v2039_v61 = vpop.f32.mrb[121].mxu1  ;;  %v2484_v44 = vpop.f32.mrb[201].mxu0  ;;  %4288 = vmatmul.mubr.msk.f32.gmra.mrb[226].mxu1 %vm87_vm0, %v6721_v0 }
 0x26d   :  { %v3483_v26 = vmul.f32 %v2476_v22, %v2039_v61  ;;  %2929 = vmatprep.mubr.f32.mxu1 %v8125_v11 }
 0x26e   :  { %v7564_v35 = vmul.f32 %v3484_v45, %v2484_v44 }
 0x26f   :  { %v5141_v50 = vpop.f32.mrb[122].mxu1  ;;  %v2488_v56 = vpop.f32.mrb[202].mxu0  ;;  %v7566_v62 = vmul.f32 %v3483_v26, %v2478_v16 }
 0x270   :  { %v2049_v31 = vpop.f32.mrb[123].mxu1  ;;  %v2490_v57 = vpop.f32.mrb[203].mxu0  ;;  %4289 = vmatmul.mubr.msk.f32.gmra.mrb[228].mxu1 %vm87_vm0, %v6733_v8 }
 0x271   :  { %v3485_v43 = vmul.f32 %v2488_v56, %v2049_v31  ;;  %2935 = vmatprep.mubr.f32.mxu1 %v8125_v11 }
 0x273   :  { %v7571_v27 = vmul.f32 %v3485_v43, %v2490_v57  ;;  %v5144_v0 = vpop.f32.mrb[124].mxu1  ;;  %v2494_v22 = vpop.f32.mrb[204].mxu0 }
 0x274   :  { %v3486_v9 = vmul.f32 %v5141_v50, %v2494_v22  ;;  %v2059_v34 = vpop.f32.mrb[125].mxu1  ;;  %v2496_v45 = vpop.f32.mrb[205].mxu0  ;;  %4290 = vmatmul.mubr.msk.f32.gmra.mrb[230].mxu1 %vm87_vm0, %v6745_v40 }
 0x275   :  { %2941 = vmatprep.mubr.f32.mxu1 %v8125_v11 }
 0x276   :  { %v7576_v16 = vmul.f32 %v3486_v9, %v2496_v45 }
 0x277   :  { %v5147_v61 = vpop.f32.mrb[126].mxu1  ;;  %v2500_v44 = vpop.f32.mrb[206].mxu0 }
 0x278   :  { %8215 = vst [vmem:[#allocation13_spill] sm:$0xff] %v7576_v16  ;;  %v3487_v8 = vmul.f32 %v2500_v44, %v2059_v34  ;;  %v2069_v26 = vpop.f32.mrb[127].mxu1  ;;  %v2502_v56 = vpop.f32.mrb[207].mxu0  ;;  %4291 = vmatmul.mubr.msk.f32.gmra.mrb[232].mxu1 %vm87_vm0, %v8185_v7 }
 0x279   :  { %2947 = vmatprep.mubr.f32.mxu1 %v8125_v11 }
 0x27a   :  { %v7581_v50 = vmul.f32 %v3487_v8, %v2502_v56 }
 0x27b   :  { %v5150_v31 = vpop.f32.mrb[128].mxu1  ;;  %v2506_v57 = vpop.f32.mrb[208].mxu0 }
 0x27c   :  { %8216 = vst [vmem:[#allocation6_spill] sm:$0xff] %v7581_v50  ;;  %v3488_v43 = vmul.f32 %v5144_v0, %v2506_v57  ;;  %v2079_v40 = vpop.f32.mrb[129].mxu1  ;;  %v2508_v22 = vpop.f32.mrb[209].mxu0  ;;  %4292 = vmatmul.mubr.msk.f32.gmra.mrb[234].mxu1 %vm87_vm0, %v8187_v48 }
 0x27d   :  { %2953 = vmatprep.mubr.f32.mxu1 %v8125_v11 }
 0x27e   :  { %v7586_v9 = vmul.f32 %v3488_v43, %v2508_v22 }
 0x27f   :  { %v5153_v34 = vpop.f32.mrb[130].mxu1  ;;  %v2512_v45 = vpop.f32.mrb[210].mxu0 }
 0x280   :  { %8217 = vst [vmem:[#allocation14_spill] sm:$0xff] %v7586_v9  ;;  %v3489_v44 = vmul.f32 %v2512_v45, %v2069_v26  ;;  %v2089_v7 = vpop.f32.mrb[131].mxu1  ;;  %v2514_v16 = vpop.f32.mrb[211].mxu0  ;;  %4293 = vmatmul.mubr.msk.f32.gmra.mrb[236].mxu1 %vm87_vm0, %v8190_v53 }
 0x281   :  { %2959 = vmatprep.mubr.f32.mxu1 %v8125_v11 }
 0x282   :  { %v7591_v0 = vmul.f32 %v3489_v44, %v2514_v16 }
 0x283   :  { %v5156_v8 = vpop.f32.mrb[132].mxu1  ;;  %v2518_v56 = vpop.f32.mrb[212].mxu0 }
 0x284   :  { %8218 = vst [vmem:[#allocation23_spill] sm:$0xff] %v7591_v0  ;;  %v3490_v57 = vmul.f32 %v5147_v61, %v2518_v56  ;;  %v2099_v48 = vpop.f32.mrb[133].mxu1  ;;  %v2520_v50 = vpop.f32.mrb[213].mxu0  ;;  %4294 = vmatmul.mubr.msk.f32.gmra.mrb[238].mxu1 %vm87_vm0, %v8191_v30 }
 0x285   :  { %2965 = vmatprep.mubr.f32.mxu1 %v8125_v11 }
 0x286   :  { %v7596_v26 = vmul.f32 %v3490_v57, %v2520_v50 }
 0x287   :  { %v7598_v43 = vpop.f32.mrb[134].mxu1  ;;  %v2524_v22 = vpop.f32.mrb[214].mxu0 }
 0x288   :  { %8219 = vst [vmem:[#allocation15_spill] sm:$0xff] %v7596_v26  ;;  %v3491_v53 = vmul.f32 %v2524_v22, %v2079_v40  ;;  %v2109_v45 = vpop.f32.mrb[135].mxu1  ;;  %v2526_v9 = vpop.f32.mrb[215].mxu0  ;;  %4295 = vmatmul.mubr.msk.f32.gmra.mrb[240].mxu1 %vm87_vm0, %v8193_v19 }
 0x289   :  { %2971 = vmatprep.mubr.f32.mxu1 %v8125_v11 }
 0x28a   :  { %v7603_v16 = vmul.f32 %v3491_v53, %v2526_v9 }
 0x28b   :  { %v7605_v61 = vpop.f32.mrb[136].mxu1  ;;  %v2530_v30 = vpop.f32.mrb[216].mxu0 }
 0x28c   :  { %8220 = vst [vmem:[#allocation7_spill] sm:$0xff] %v7603_v16  ;;  %v3492_v44 = vmul.f32 %v5150_v31, %v2530_v30  ;;  %v7607_v56 = vpop.f32.mrb[137].mxu1  ;;  %v2532_v50 = vpop.f32.mrb[217].mxu0  ;;  %4296 = vmatmul.mubr.msk.f32.gmra.mrb[242].mxu1 %vm87_vm0, %v8194_v21 }
 0x28d   :  { %2977 = vmatprep.mubr.f32.mxu1 %v8125_v11 }
 0x28e   :  { %v7612_v40 = vmul.f32 %v3492_v44, %v2532_v50 }
 0x28f   :  { %v7614_v57 = vpop.f32.mrb[138].mxu1  ;;  %v2536_v19 = vpop.f32.mrb[218].mxu0 }
 0x290   :  { %8221 = vst [vmem:[#allocation16_spill] sm:$0xff] %v7612_v40  ;;  %v3493_v22 = vmul.f32 %v2536_v19, %v2089_v7  ;;  %v7616_v9 = vpop.f32.mrb[139].mxu1  ;;  %v2538_v53 = vpop.f32.mrb[219].mxu0  ;;  %4297 = vmatmul.mubr.msk.f32.gmra.mrb[244].mxu1 %vm87_vm0, %v8196_v5 }
 0x291   :  { %2983 = vmatprep.mubr.f32.mxu1 %v8125_v11 }
 0x292   :  { %v7621_v31 = vmul.f32 %v3493_v22, %v2538_v53 }
 0x293   :  { %v7623_v30 = vpop.f32.mrb[140].mxu1  ;;  %v2542_v21 = vpop.f32.mrb[220].mxu0 }
 0x294   :  { %8222 = vst [vmem:[#allocation24_spill] sm:$0xff] %v7621_v31  ;;  %v3494_v16 = vmul.f32 %v5153_v34, %v2542_v21  ;;  %v7625_v44 = vpop.f32.mrb[141].mxu1  ;;  %v2544_v50 = vpop.f32.mrb[221].mxu0  ;;  %4298 = vmatmul.mubr.msk.f32.gmra.mrb[246].mxu1 %vm87_vm0, %v8197_v47 }
 0x295   :  { %2989 = vmatprep.mubr.f32.mxu1 %v8125_v11 }
 0x296   :  { %v7630_v7 = vmul.f32 %v3494_v16, %v2544_v50  ;;  %v8224_v50 = vld [vmem:[#allocation28_spill] sm:$0xff] }
 0x297   :  { %v2548_v19 = vpop.f32.mrb[222].mxu0  ;;  %v2673_v5 = vpop.f32.mrb[142].mxu1 }
 0x298   :  { %8223 = vst [vmem:[#allocation17_spill] sm:$0xff] %v7630_v7  ;;  %v3495_v40 = vmul.f32 %v2548_v19, %v2099_v48  ;;  %v3569_v22 = vmul.f32 %v7197_v14, %v2673_v5  ;;  %v2550_v53 = vpop.f32.mrb[223].mxu0  ;;  %v2675_v31 = vpop.f32.mrb[143].mxu1  ;;  %4299 = vmatmul.mubr.msk.f32.gmra.mrb[248].mxu1 %vm87_vm0, %v8199_v10 }
 0x299   :  { %2995 = vmatprep.mubr.f32.mxu1 %v8125_v11 }
 0x29a   :  { %v7636_v34 = vmul.f32 %v3495_v40, %v2550_v53  ;;  %v7638_v21 = vmul.f32 %v3569_v22, %v2675_v31 }
 0x29b   :  { %v2554_v47 = vpop.f32.mrb[224].mxu0  ;;  %v2679_v26 = vpop.f32.mrb[144].mxu1 }
 0x29c   :  { %v3496_v16 = vmul.f32 %v5156_v8, %v2554_v47  ;;  %v3570_v7 = vmul.f32 %v8224_v50, %v2679_v26  ;;  %v2556_v0 = vpop.f32.mrb[225].mxu0  ;;  %v2681_v48 = vpop.f32.mrb[145].mxu1  ;;  %4300 = vmatmul.mubr.msk.f32.gmra.mrb[250].mxu1 %vm87_vm0, %v8200_v54  ;;  %v8225_v47 = vld [vmem:[#allocation29_spill] sm:$0xff] }
 0x29d   :  { %3001 = vmatprep.mubr.f32.mxu1 %v8125_v11 }
 0x29e   :  { %v7644_v14 = vmul.f32 %v3496_v16, %v2556_v0  ;;  %v7646_v10 = vmul.f32 %v3570_v7, %v2681_v48 }
 0x29f   :  { %v2560_v40 = vpop.f32.mrb[226].mxu0  ;;  %v2685_v19 = vpop.f32.mrb[146].mxu1 }
 0x2a0   :  { %v3497_v31 = vmul.f32 %v2560_v40, %v2109_v45  ;;  %v3571_v5 = vmul.f32 %v7219_v42, %v2685_v19  ;;  %v2562_v22 = vpop.f32.mrb[227].mxu0  ;;  %v2687_v8 = vpop.f32.mrb[147].mxu1  ;;  %4301 = vmatmul.mubr.msk.f32.gmra.mrb[252].mxu1 %vm87_vm0, %v8202_v4 }
 0x2a1   :  { %3007 = vmatprep.mubr.f32.mxu1 %v8125_v11 }
 0x2a2   :  { %v7652_v26 = vmul.f32 %v3497_v31, %v2562_v22  ;;  %v7654_v54 = vmul.f32 %v3571_v5, %v2687_v8 }
 0x2a3   :  { %v2566_v0 = vpop.f32.mrb[228].mxu0  ;;  %v2691_v53 = vpop.f32.mrb[148].mxu1 }
 0x2a4   :  { %v3498_v7 = vmul.f32 %v7598_v43, %v2566_v0  ;;  %v3572_v16 = vmul.f32 %v8225_v47, %v2691_v53  ;;  %v2568_v45 = vpop.f32.mrb[229].mxu0  ;;  %v2693_v50 = vpop.f32.mrb[149].mxu1  ;;  %4302 = vmatmul.mubr.msk.f32.gmra.mrb[254].mxu1 %vm87_vm0, %v8203_v36 }
 0x2a5   :  { %3013 = vmatprep.mubr.f32.mxu1 %v8125_v11 }
 0x2a6   :  { %v7661_v42 = vmul.f32 %v3498_v7, %v2568_v45  ;;  %v7663_v4 = vmul.f32 %v3572_v16, %v2693_v50  ;;  %v8226_v7 = vld [vmem:[#allocation30_spill] sm:$0xff] }
 0x2a7   :  { %v2572_v48 = vpop.f32.mrb[230].mxu0  ;;  %v2697_v40 = vpop.f32.mrb[150].mxu1 }
 0x2a8   :  { %v3499_v19 = vmul.f32 %v2572_v48, %v7607_v56  ;;  %v3573_v31 = vmul.f32 %v7244_v33, %v2697_v40  ;;  %v2574_v43 = vpop.f32.mrb[231].mxu0  ;;  %v2699_v5 = vpop.f32.mrb[151].mxu1  ;;  %4303 = vmatmul.mubr.msk.f32.gmra.mrb[0].mxu1 %vm87_vm0, %v8206_v20 }
 0x2a9   :  { %3019 = vmatprep.mubr.f32.mxu1 %v8125_v11 }
 0x2aa   :  { %v7670_v36 = vmul.f32 %v3499_v19, %v2574_v43  ;;  %v7672_v22 = vmul.f32 %v3573_v31, %v2699_v5 }
 0x2ab   :  { %v2578_v8 = vpop.f32.mrb[232].mxu0  ;;  %v2703_v0 = vpop.f32.mrb[152].mxu1 }
 0x2ac   :  { %v3500_v53 = vmul.f32 %v7605_v61, %v2578_v8  ;;  %v3574_v47 = vmul.f32 %v8226_v7, %v2703_v0  ;;  %v2580_v56 = vpop.f32.mrb[233].mxu0  ;;  %v2705_v16 = vpop.f32.mrb[153].mxu1  ;;  %4304 = vmatmul.mubr.msk.f32.gmra.mrb[2].mxu1 %vm87_vm0, %v8207_v60  ;;  %v8227_v0 = vld [vmem:[#allocation31_spill] sm:$0xff] }
 0x2ad   :  { %3025 = vmatprep.mubr.f32.mxu1 %v8125_v11 }
 0x2ae   :  { %v7679_v33 = vmul.f32 %v3500_v53, %v2580_v56  ;;  %v7681_v20 = vmul.f32 %v3574_v47, %v2705_v16 }
 0x2af   :  { %v2584_v45 = vpop.f32.mrb[234].mxu0  ;;  %v2709_v50 = vpop.f32.mrb[154].mxu1 }
 0x2b0   :  { %v3501_v48 = vmul.f32 %v2584_v45, %v7616_v9  ;;  %v3575_v40 = vmul.f32 %v7272_v25, %v2709_v50  ;;  %v2586_v61 = vpop.f32.mrb[235].mxu0  ;;  %v2711_v19 = vpop.f32.mrb[155].mxu1  ;;  %4305 = vmatmul.mubr.msk.f32.gmra.mrb[4].mxu1 %vm87_vm0, %v8209_v37 }
 0x2b1   :  { %3031 = vmatprep.mubr.f32.mxu1 %v8125_v11 }
 0x2b2   :  { %v7688_v60 = vmul.f32 %v3501_v48, %v2586_v61  ;;  %v7690_v31 = vmul.f32 %v3575_v40, %v2711_v19 }
 0x2b3   :  { %v2590_v43 = vpop.f32.mrb[236].mxu0  ;;  %v2715_v5 = vpop.f32.mrb[156].mxu1 }
 0x2b4   :  { %v3502_v8 = vmul.f32 %v7614_v57, %v2590_v43  ;;  %v3576_v53 = vmul.f32 %v8227_v0, %v2715_v5  ;;  %v2592_v9 = vpop.f32.mrb[237].mxu0  ;;  %v2717_v7 = vpop.f32.mrb[157].mxu1  ;;  %4306 = vmatmul.mubr.msk.f32.gmra.mrb[6].mxu1 %vm87_vm0, %v8210_v51  ;;  %v8228_v43 = vld [vmem:[#allocation32_spill] sm:$0xff] }
 0x2b5   :  { %3037 = vmatprep.mubr.f32.mxu1 %v8125_v11 }
 0x2b6   :  { %v7697_v25 = vmul.f32 %v3502_v8, %v2592_v9  ;;  %v3640_v37 = vmul.f32 %v3576_v53, %v2717_v7 }
 0x2b7   :  { %v2596_v47 = vpop.f32.mrb[238].mxu0  ;;  %v2721_v56 = vpop.f32.mrb[158].mxu1 }
 0x2b8   :  { %v3503_v16 = vmul.f32 %v2596_v47, %v7625_v44  ;;  %v3577_v45 = vmul.f32 %v7300_v49, %v2721_v56  ;;  %v2598_v50 = vpop.f32.mrb[239].mxu0  ;;  %v2723_v57 = vpop.f32.mrb[159].mxu1  ;;  %4307 = vmatmul.mubr.msk.f32.gmra.mrb[8].mxu1 %vm87_vm0, %v8212_v24  ;;  %v5425_v49 = vld [vmem:[%s8038_s0 + $0x1f0] sm:$0xff]  ;;  %v5426_v56 = vld [vmem:[%s8038_s0 + $0x1f8] sm:$0xff] }
 0x2b9   :  { %3043 = vmatprep.mubr.f32.mxu1 %v8125_v11 }
 0x2ba   :  { %v7704_v48 = vmul.f32 %v3503_v16, %v2598_v50  ;;  %v3641_v51 = vmul.f32 %v3577_v45, %v2723_v57 }
 0x2bb   :  { %v2602_v40 = vpop.f32.mrb[240].mxu0  ;;  %v2727_v61 = vpop.f32.mrb[160].mxu1 }
 0x2bc   :  { %v3504_v19 = vmul.f32 %v7623_v30, %v2602_v40  ;;  %v3578_v5 = vmul.f32 %v8228_v43, %v2727_v61  ;;  %v2604_v8 = vpop.f32.mrb[241].mxu0  ;;  %v2729_v44 = vpop.f32.mrb[161].mxu1  ;;  %4308 = vmatmul.mubr.msk.f32.gmra.mrb[10].mxu1 %vm87_vm0, %v5425_v49 }
 0x2bd   :  { %3049 = vmatprep.mubr.f32.mxu1 %v8125_v11 }
 0x2be   :  { %v7713_v24 = vmul.f32 %v3504_v19, %v2604_v8  ;;  %v3642_v0 = vmul.f32 %v3578_v5, %v2729_v44 }
 0x2bf   :  { %v2733_v53 = vpop.f32.mrb[162].mxu1  ;;  %v5175_v9 = vpop.f32.mrb[242].mxu0 }
 0x2c0   :  { %v3579_v7 = vmul.f32 %v7328_v6, %v2733_v53  ;;  %v7717_v30 = vmul.f32 %v5175_v9, %v7646_v10  ;;  %v2735_v47 = vpop.f32.mrb[163].mxu1  ;;  %4309 = vmatmul.mubr.msk.f32.gmra.mrb[12].mxu1 %vm87_vm0, %v5426_v56  ;;  %v3122_v16 = vpop.f32.mrb[243].mxu0 }
 0x2c1   :  { %v7724_v11 = vmul.f32 %v7638_v21, %v3122_v16 }
 0x2c2   :  { %v3643_v45 = vmul.f32 %v3579_v7, %v2735_v47 }
 0x2c3   :  { %v5295_v50 = vpack.c.bf16 %v7717_v30, %v7724_v11  ;;  %v2739_v57 = vpop.f32.mrb[164].mxu1  ;;  %v5178_v6 = vpop.f32.mrb[244].mxu0 }
 0x2c4   :  { %v3580_v10 = vmul.f32 %v7323_v29, %v2739_v57  ;;  %v7730_v40 = vmul.f32 %v5178_v6, %v7663_v4  ;;  %v2741_v61 = vpop.f32.mrb[165].mxu1  ;;  %v3132_v19 = vpop.f32.mrb[245].mxu0 }
 0x2c5   :  { %v7733_v43 = vmul.f32 %v7654_v54, %v3132_v19 }
 0x2c6   :  { %v3644_v5 = vmul.f32 %v3580_v10, %v2741_v61 }
 0x2c7   :  { %v5299_v21 = vpack.c.bf16 %v7730_v40, %v7733_v43  ;;  %v2745_v8 = vpop.f32.mrb[166].mxu1  ;;  %v5181_v44 = vpop.f32.mrb[246].mxu0 }
 0x2c8   :  { %v3581_v49 = vmul.f32 %v7346_v39, %v2745_v8  ;;  %v7739_v53 = vmul.f32 %v5181_v44, %v7681_v20  ;;  %v2747_v29 = vpop.f32.mrb[167].mxu1  ;;  %v3142_v9 = vpop.f32.mrb[247].mxu0 }
 0x2c9   :  { %v7742_v4 = vmul.f32 %v7672_v22, %v3142_v9 }
 0x2ca   :  { %v3645_v7 = vmul.f32 %v3581_v49, %v2747_v29 }
 0x2cb   :  { %v2751_v47 = vpop.f32.mrb[168].mxu1  ;;  %v5184_v56 = vpop.f32.mrb[248].mxu0  ;;  %v8231_v40 = vpack.c.bf16 %v7739_v53, %v7742_v4 }
 0x2cc   :  { %v3582_v16 = vmul.f32 %v7341_v3, %v2751_v47  ;;  %v7747_v57 = vmul.f32 %v5184_v56, %v3640_v37  ;;  %v2753_v6 = vpop.f32.mrb[169].mxu1  ;;  %v3152_v39 = vpop.f32.mrb[249].mxu0 }
 0x2cd   :  { %v7750_v20 = vmul.f32 %v7690_v31, %v3152_v39 }
 0x2ce   :  { %v3646_v10 = vmul.f32 %v3582_v16, %v2753_v6 }
 0x2cf   :  { %v2757_v61 = vpop.f32.mrb[170].mxu1  ;;  %v5187_v19 = vpop.f32.mrb[250].mxu0  ;;  %v8233_v53 = vpack.c.bf16 %v7747_v57, %v7750_v20 }
 0x2d0   :  { %v3583_v8 = vmul.f32 %v7365_v1, %v2757_v61  ;;  %v7755_v44 = vmul.f32 %v5187_v19, %v3642_v0  ;;  %v2759_v49 = vpop.f32.mrb[171].mxu1  ;;  %v3162_v29 = vpop.f32.mrb[251].mxu0 }
 0x2d1   :  { %v7757_v3 = vmul.f32 %v3641_v51, %v3162_v29 }
 0x2d2   :  { %v3647_v37 = vmul.f32 %v3583_v8, %v2759_v49 }
 0x2d3   :  { %v2763_v31 = vpop.f32.mrb[172].mxu1  ;;  %v5190_v47 = vpop.f32.mrb[252].mxu0 }
 0x2d4   :  { %v3584_v56 = vmul.f32 %v7360_v59, %v2763_v31  ;;  %v7762_v16 = vmul.f32 %v5190_v47, %v3644_v5  ;;  %v2765_v6 = vpop.f32.mrb[173].mxu1  ;;  %v3172_v39 = vpop.f32.mrb[253].mxu0 }
 0x2d5   :  { %v7764_v22 = vmul.f32 %v3643_v45, %v3172_v39 }
 0x2d6   :  { %v3648_v1 = vmul.f32 %v3584_v56, %v2765_v6 }
 0x2d7   :  { %v2769_v51 = vpop.f32.mrb[174].mxu1  ;;  %v5193_v61 = vpop.f32.mrb[254].mxu0 }
 0x2d8   :  { %v3585_v19 = vmul.f32 %v7384_v17, %v2769_v51  ;;  %v7769_v8 = vmul.f32 %v5193_v61, %v3646_v10  ;;  %v2771_v49 = vpop.f32.mrb[175].mxu1  ;;  %v3182_v29 = vpop.f32.mrb[255].mxu0 }
 0x2d9   :  { %v7771_v9 = vmul.f32 %v3645_v7, %v3182_v29 }
 0x2da   :  { %v3649_v59 = vmul.f32 %v3585_v19, %v2771_v49 }
 0x2db   :  { %v2775_v45 = vpop.f32.mrb[176].mxu1  ;;  %v5196_v31 = vpop.f32.mrb[0].mxu0 }
 0x2dc   :  { %v3586_v47 = vmul.f32 %v7379_v52, %v2775_v45  ;;  %v7776_v56 = vmul.f32 %v5196_v31, %v3648_v1  ;;  %v2777_v6 = vpop.f32.mrb[177].mxu1  ;;  %v3192_v39 = vpop.f32.mrb[1].mxu0  ;;  %v7786_v52 = vld [vmem:[%s8042_s4] sm:$0xff]  ;;  %s5452_s4 = smov [#allocation2]  }
 0x2dd   :  { %v7778_v0 = vmul.f32 %v3647_v37, %v3192_v39  ;;  %4735 = vmatprep.mubr.f32.mxu1 %v7786_v52  ;;  %s3914_s18 = sshll.u32 %s5452_s4, 4  ;;  %s3915_s18 = int_to_ptr.vmem [resolvable:$true] %s3914_s18 }
 0x2de   :  { %v3650_v17 = vmul.f32 %v3586_v47, %v2777_v6  ;;  %s5427_s19 = scalar_lea.vmem %s3915_s18, 512  ;;  %p5432_p1 = scmp.lt.s32.totalorder %s3915_s18, %s3915_s18 }
 0x2df   :  { %v2781_v7 = vpop.f32.mrb[178].mxu1  ;;  %v5199_v51 = vpop.f32.mrb[2].mxu0  ;;  %p5428_p0 = scmp.ne.s32.totalorder %s3915_s18, %s5427_s19  ;;  %p5433_p2 = scmp.lt.s32.totalorder %s5427_s19, %s5427_s19 }
 0x2e0   :  { %v3587_v61 = vmul.f32 %v7403_v38, %v2781_v7  ;;  %v3714_v19 = vmul.f32 %v5199_v51, %v3650_v17  ;;  %v3202_v49 = vpop.f32.mrb[3].mxu0  ;;  %v2783_v29 = vpop.f32.mrb[179].mxu1 }
 0x2e1   :  { %v3713_v5 = vmul.f32 %v3649_v59, %v3202_v49  ;;  %p5434_p3 = por %p5433_p2, %p5432_p1 }
 0x2e2   :  { %v3651_v54 = vmul.f32 %v3587_v61, %v2783_v29 }
 0x2e3   :  { %v5293_v37 = vpack.c.bf16 %v3714_v19, %v3713_v5  ;;  %v2787_v1 = vpop.f32.mrb[180].mxu1  ;;  %v5202_v45 = vpop.f32.mrb[4].mxu0  ;;  %p5435_p4 = pnand %p5434_p3, %p5428_p0 }
 0x2e4   :  { %v3588_v31 = vmul.f32 %v7398_v23, %v2787_v1  ;;  %v3212_v47 = vpop.f32.mrb[5].mxu0  ;;  %v2789_v6 = vpop.f32.mrb[181].mxu1  ;;  %v8229_v1 = vld [vmem:[#allocation9_spill] sm:$0xff] }
 0x2e5   :  { %v3715_v38 = vmul.f32 %v3651_v54, %v3212_v47  ;;  %5294 = vmatprep.subr.bf16.mxu1 %v5293_v37 }
 0x2e6   :  { %v3652_v39 = vmul.f32 %v3588_v31, %v2789_v6  ;;  %5296 = vmatpush3.bf16.xpose.msra.mxu1 %v5295_v50 }
 0x2e7   :  { %v2793_v59 = vpop.f32.mrb[182].mxu1  ;;  %v5205_v17 = vpop.f32.mrb[6].mxu0 }
 0x2e8   :  { %v3716_v7 = vmul.f32 %v5202_v45, %v3652_v39  ;;  %v3589_v5 = vmul.f32 %v7420_v18, %v2793_v59  ;;  %v2795_v51 = vpop.f32.mrb[183].mxu1  ;;  %v3222_v61 = vpop.f32.mrb[7].mxu0 }
 0x2ea   :  { %v3653_v19 = vmul.f32 %v3589_v5, %v2795_v51  ;;  %v5297_v49 = vpack.c.bf16 %v3716_v7, %v3715_v38  ;;  %v8230_v5 = vld [vmem:[#allocation26_spill] sm:$0xff] }
 0x2eb   :  { %v2799_v29 = vpop.f32.mrb[184].mxu1  ;;  %v5208_v23 = vpop.f32.mrb[8].mxu0 }
 0x2ec   :  { %v3590_v10 = vmul.f32 %v8229_v1, %v2799_v29  ;;  %v3717_v54 = vmul.f32 %v3653_v19, %v3222_v61  ;;  %5298 = vmatprep.subr.bf16.mxu1 %v5297_v49  ;;  %v2801_v37 = vpop.f32.mrb[185].mxu1  ;;  %v3232_v31 = vpop.f32.mrb[9].mxu0 }
 0x2ee   :  { %v3654_v47 = vmul.f32 %v3590_v10, %v2801_v37  ;;  %5300 = vmatpush3.bf16.xpose.msra.mxu1 %v5299_v21 }
 0x2ef   :  { %v2805_v30 = vpop.f32.mrb[186].mxu1  ;;  %v5211_v11 = vpop.f32.mrb[10].mxu0 }
 0x2f0   :  { %v3718_v18 = vmul.f32 %v5205_v17, %v3654_v47  ;;  %v3591_v50 = vmul.f32 %v7439_v32, %v2805_v30  ;;  %v2807_v45 = vpop.f32.mrb[187].mxu1  ;;  %v3242_v6 = vpop.f32.mrb[11].mxu0 }
 0x2f2   :  { %v3655_v38 = vmul.f32 %v3591_v50, %v2807_v45  ;;  %v5301_v39 = vpack.c.bf16 %v3718_v18, %v3717_v54 }
 0x2f3   :  { %v2811_v59 = vpop.f32.mrb[188].mxu1  ;;  %v5214_v7 = vpop.f32.mrb[12].mxu0 }
 0x2f4   :  { %v3592_v51 = vmul.f32 %v8230_v5, %v2811_v59  ;;  %v3719_v61 = vmul.f32 %v3655_v38, %v3232_v31  ;;  %5302 = vmatprep.subr.bf16.mxu1 %v5301_v39  ;;  %v2813_v10 = vpop.f32.mrb[189].mxu1  ;;  %v3252_v19 = vpop.f32.mrb[13].mxu0  ;;  %v8232_v31 = vld [vmem:[#allocation10_spill] sm:$0xff] }
 0x2f6   :  { %v3656_v49 = vmul.f32 %v3592_v51, %v2813_v10  ;;  %5304 = vmatpush3.bf16.xpose.msra.mxu1 %v8231_v40  ;;  %v8234_v40 = vld [vmem:[#allocation20_spill] sm:$0xff] }
 0x2f7   :  { %v2817_v43 = vpop.f32.mrb[190].mxu1  ;;  %v5217_v21 = vpop.f32.mrb[14].mxu0 }
 0x2f8   :  { %v3720_v32 = vmul.f32 %v5208_v23, %v3656_v49  ;;  %v3593_v17 = vmul.f32 %v7456_v13, %v2817_v43  ;;  %v2819_v29 = vpop.f32.mrb[191].mxu1  ;;  %v3262_v1 = vpop.f32.mrb[15].mxu0 }
 0x2fa   :  { %v3657_v54 = vmul.f32 %v3593_v17, %v2819_v29  ;;  %v5305_v37 = vpack.c.bf16 %v3720_v32, %v3719_v61 }
 0x2fb   :  { %v2823_v47 = vpop.f32.mrb[192].mxu1  ;;  %v5220_v30 = vpop.f32.mrb[16].mxu0 }
 0x2fc   :  { %v3594_v18 = vmul.f32 %v8232_v31, %v2823_v47  ;;  %v3721_v50 = vmul.f32 %v3657_v54, %v3242_v6  ;;  %5306 = vmatprep.subr.bf16.mxu1 %v5305_v37  ;;  %v2825_v45 = vpop.f32.mrb[193].mxu1  ;;  %v3272_v38 = vpop.f32.mrb[17].mxu0 }
 0x2fe   :  { %v3658_v39 = vmul.f32 %v3594_v18, %v2825_v45  ;;  %5308 = vmatpush3.bf16.xpose.msra.mxu1 %v8233_v53 }
 0x2ff   :  { %v2829_v4 = vpop.f32.mrb[194].mxu1  ;;  %v7808_v23 = vpop.f32.mrb[18].mxu0 }
 0x300   :  { %v3722_v13 = vmul.f32 %v5211_v11, %v3658_v39  ;;  %v3595_v59 = vmul.f32 %v7471_v12, %v2829_v4  ;;  %v2831_v5 = vpop.f32.mrb[195].mxu1  ;;  %v3282_v51 = vpop.f32.mrb[19].mxu0  ;;  %v8235_v11 = vpack.c.bf16 %v7755_v44, %v7757_v3  ;;  %v8236_v39 = vld [vmem:[#allocation21_spill] sm:$0xff] }
 0x302   :  { %v3659_v61 = vmul.f32 %v3595_v59, %v2831_v5  ;;  %v5309_v10 = vpack.c.bf16 %v3722_v13, %v3721_v50 }
 0x303   :  { %v2835_v49 = vpop.f32.mrb[196].mxu1  ;;  %v7811_v6 = vpop.f32.mrb[20].mxu0 }
 0x304   :  { %v3596_v43 = vmul.f32 %v8234_v40, %v2835_v49  ;;  %v3723_v32 = vmul.f32 %v3659_v61, %v3252_v19  ;;  %5310 = vmatprep.subr.bf16.mxu1 %v5309_v10  ;;  %v2837_v17 = vpop.f32.mrb[197].mxu1  ;;  %v7814_v57 = vpop.f32.mrb[21].mxu0 }
 0x306   :  { %v3660_v20 = vmul.f32 %v3596_v43, %v2837_v17  ;;  %5312 = vmatpush3.bf16.xpose.msra.mxu1 %v8235_v11  ;;  %v8238_v17 = vld [vmem:[#allocation27_spill] sm:$0xff] }
 0x307   :  { %v2841_v12 = vpop.f32.mrb[198].mxu1  ;;  %v7819_v29 = vpop.f32.mrb[22].mxu0 }
 0x308   :  { %v3724_v54 = vmul.f32 %v5214_v7, %v3660_v20  ;;  %v3597_v37 = vmul.f32 %v7486_v28, %v2841_v12  ;;  %v2843_v47 = vpop.f32.mrb[199].mxu1  ;;  %v7822_v31 = vpop.f32.mrb[23].mxu0  ;;  %v8237_v7 = vpack.c.bf16 %v7762_v16, %v7764_v22 }
 0x30a   :  { %v3661_v18 = vmul.f32 %v3597_v37, %v2843_v47  ;;  %v5313_v19 = vpack.c.bf16 %v3724_v54, %v3723_v32  ;;  %v8240_v47 = vld [vmem:[#allocation5_spill] sm:$0xff] }
 0x30b   :  { %v2847_v50 = vpop.f32.mrb[200].mxu1  ;;  %v7824_v45 = vpop.f32.mrb[24].mxu0 }
 0x30c   :  { %v3598_v53 = vmul.f32 %v8236_v39, %v2847_v50  ;;  %v3725_v4 = vmul.f32 %v3661_v18, %v3262_v1  ;;  %5314 = vmatprep.subr.bf16.mxu1 %v5313_v19  ;;  %v2849_v44 = vpop.f32.mrb[201].mxu1  ;;  %v7827_v3 = vpop.f32.mrb[25].mxu0 }
 0x30e   :  { %v3662_v13 = vmul.f32 %v3598_v53, %v2849_v44  ;;  %5316 = vmatpush3.bf16.xpose.msra.mxu1 %v8237_v7  ;;  %v8241_v44 = vld [vmem:[#allocation11_spill] sm:$0xff] }
 0x30f   :  { %v2853_v28 = vpop.f32.mrb[202].mxu1  ;;  %v7832_v59 = vpop.f32.mrb[26].mxu0 }
 0x310   :  { %v3726_v5 = vmul.f32 %v5217_v21, %v3662_v13  ;;  %v3599_v61 = vmul.f32 %v7501_v63, %v2853_v28  ;;  %v2855_v10 = vpop.f32.mrb[203].mxu1  ;;  %v7835_v49 = vpop.f32.mrb[27].mxu0  ;;  %v8239_v21 = vpack.c.bf16 %v7769_v8, %v7771_v9 }
 0x312   :  { %v3663_v40 = vmul.f32 %v3599_v61, %v2855_v10  ;;  %v5317_v1 = vpack.c.bf16 %v3726_v5, %v3725_v4 }
 0x313   :  { %v2859_v43 = vpop.f32.mrb[204].mxu1  ;;  %v7837_v32 = vpop.f32.mrb[28].mxu0 }
 0x314   :  { %v3600_v20 = vmul.f32 %v8238_v17, %v2859_v43  ;;  %v3727_v11 = vmul.f32 %v3663_v40, %v3272_v38  ;;  %5318 = vmatprep.subr.bf16.mxu1 %v5317_v1  ;;  %v2861_v22 = vpop.f32.mrb[205].mxu1  ;;  %v7840_v16 = vpop.f32.mrb[29].mxu0 }
 0x316   :  { %v3664_v12 = vmul.f32 %v3600_v20, %v2861_v22  ;;  %5320 = vmatpush3.bf16.xpose.msra.mxu1 %v8239_v21 }
 0x317   :  { %v2865_v63 = vpop.f32.mrb[206].mxu1  ;;  %v7845_v54 = vpop.f32.mrb[30].mxu0 }
 0x318   :  { %v3728_v37 = vmul.f32 %v5220_v30, %v3664_v12  ;;  %v3601_v18 = vmul.f32 %v8240_v47, %v2865_v63  ;;  %v2867_v19 = vpop.f32.mrb[207].mxu1  ;;  %v7848_v50 = vpop.f32.mrb[31].mxu0  ;;  %v8242_v30 = vpack.c.bf16 %v7776_v56, %v7778_v0  ;;  %v8243_v0 = vld [vmem:[#allocation12_spill] sm:$0xff] }
 0x31a   :  { %v3665_v39 = vmul.f32 %v3601_v18, %v2867_v19  ;;  %v5321_v38 = vpack.c.bf16 %v3728_v37, %v3727_v11 }
 0x31b   :  { %v2871_v53 = vpop.f32.mrb[208].mxu1  ;;  %v7850_v4 = vpop.f32.mrb[32].mxu0 }
 0x31c   :  { %v3602_v13 = vmul.f32 %v8241_v44, %v2871_v53  ;;  %v7853_v7 = vmul.f32 %v3665_v39, %v3282_v51  ;;  %5322 = vmatprep.subr.bf16.mxu1 %v5321_v38  ;;  %v2873_v9 = vpop.f32.mrb[209].mxu1  ;;  %v7855_v8 = vpop.f32.mrb[33].mxu0  ;;  %v8244_v44 = vld [vmem:[#allocation22_spill] sm:$0xff] }
 0x31e   :  { %v3666_v28 = vmul.f32 %v3602_v13, %v2873_v9  ;;  %5324 = vmatpush3.bf16.xpose.msra.mxu1 %v8242_v30 }
 0x31f   :  { %v2877_v5 = vpop.f32.mrb[210].mxu1  ;;  %v7860_v61 = vpop.f32.mrb[34].mxu0 }
 0x320   :  { %v7863_v10 = vmul.f32 %v7808_v23, %v3666_v28  ;;  %v3603_v40 = vmul.f32 %v7528_v58, %v2877_v5  ;;  %v2879_v1 = vpop.f32.mrb[211].mxu1  ;;  %v7866_v51 = vpop.f32.mrb[35].mxu0 }
 0x322   :  { %v5327_v43 = vpack.c.bf16 %v7863_v10, %v7853_v7  ;;  %v3667_v17 = vmul.f32 %v3603_v40, %v2879_v1 }
 0x323   :  { %v2883_v20 = vpop.f32.mrb[212].mxu1  ;;  %v7870_v11 = vpop.f32.mrb[36].mxu0 }
 0x324   :  { %v3604_v56 = vmul.f32 %v8243_v0, %v2883_v20  ;;  %v7874_v22 = vmul.f32 %v3667_v17, %v7814_v57  ;;  %v2885_v12 = vpop.f32.mrb[213].mxu1  ;;  %v7876_v23 = vpop.f32.mrb[37].mxu0  ;;  %v8251_v0 = vld [vmem:[#allocation16_spill] sm:$0xff] }
 0x325   :  { %4736 = vmatmul.mubr.f32.vlgmr.msra.gmra.mrb[14].mxu1 %v7786_v52 }
 0x326   :  { %v3668_v58 = vmul.f32 %v3604_v56, %v2885_v12  ;;  %4769 = vmatprep.mubr.f32.mxu1 %v7786_v52 }
 0x327   :  { %v2889_v21 = vpop.f32.mrb[214].mxu1  ;;  %v7880_v63 = vpop.f32.mrb[38].mxu0 }
 0x328   :  { %v7883_v37 = vmul.f32 %v7811_v6, %v3668_v58  ;;  %v3605_v47 = vmul.f32 %v7539_v15, %v2889_v21  ;;  %v2891_v18 = vpop.f32.mrb[215].mxu1  ;;  %v7886_v19 = vpop.f32.mrb[39].mxu0 }
 0x32a   :  { %v3669_v39 = vmul.f32 %v3605_v47, %v2891_v18  ;;  %v8254_v7 = vpack.c.bf16 %v7883_v37, %v7874_v22 }
 0x32b   :  { %v2895_v38 = vpop.f32.mrb[216].mxu1  ;;  %v7890_v53 = vpop.f32.mrb[40].mxu0 }
 0x32c   :  { %v3606_v13 = vmul.f32 %v8244_v44, %v2895_v38  ;;  %v7894_v9 = vmul.f32 %v3669_v39, %v7822_v31  ;;  %v2897_v28 = vpop.f32.mrb[217].mxu1  ;;  %v7896_v6 = vpop.f32.mrb[41].mxu0 }
 0x32e   :  { %v3670_v30 = vmul.f32 %v3606_v13, %v2897_v28 }
 0x32f   :  { %v2901_v15 = vpop.f32.mrb[218].mxu1  ;;  %v7898_v5 = vpop.f32.mrb[42].mxu0 }
 0x330   :  { %v7901_v40 = vmul.f32 %v7819_v29, %v3670_v30  ;;  %v3607_v1 = vmul.f32 %v7550_v41, %v2901_v15  ;;  %v2903_v17 = vpop.f32.mrb[219].mxu1  ;;  %v7904_v20 = vpop.f32.mrb[43].mxu0 }
 0x332   :  { %v3671_v31 = vmul.f32 %v3607_v1, %v2903_v17  ;;  %v8255_v22 = vpack.c.bf16 %v7901_v40, %v7894_v9 }
 0x333   :  { %v2907_v56 = vpop.f32.mrb[220].mxu1  ;;  %v7908_v12 = vpop.f32.mrb[44].mxu0 }
 0x334   :  { %v3608_v58 = vmul.f32 %v7548_v2, %v2907_v56  ;;  %v7912_v21 = vmul.f32 %v3671_v31, %v7827_v3  ;;  %v2909_v47 = vpop.f32.mrb[221].mxu1  ;;  %v7914_v29 = vpop.f32.mrb[45].mxu0 }
 0x336   :  { %v3672_v18 = vmul.f32 %v3608_v58, %v2909_v47 }
 0x337   :  { %v2913_v41 = vpop.f32.mrb[222].mxu1  ;;  %v7916_v39 = vpop.f32.mrb[46].mxu0 }
 0x338   :  { %v7919_v38 = vmul.f32 %v7824_v45, %v3672_v18  ;;  %v3609_v44 = vmul.f32 %v7559_v55, %v2913_v41  ;;  %v2915_v13 = vpop.f32.mrb[223].mxu1  ;;  %v7922_v28 = vpop.f32.mrb[47].mxu0 }
 0x33a   :  { %v3673_v3 = vmul.f32 %v3609_v44, %v2915_v13  ;;  %v8256_v9 = vpack.c.bf16 %v7919_v38, %v7912_v21 }
 0x33b   :  { %v2919_v30 = vpop.f32.mrb[224].mxu1  ;;  %v7926_v15 = vpop.f32.mrb[48].mxu0 }
 0x33c   :  { %v3610_v1 = vmul.f32 %v7557_v46, %v2919_v30  ;;  %v7930_v17 = vmul.f32 %v3673_v3, %v7835_v49  ;;  %v2921_v31 = vpop.f32.mrb[225].mxu1  ;;  %v7932_v45 = vpop.f32.mrb[49].mxu0 }
 0x33e   :  { %v3674_v56 = vmul.f32 %v3610_v1, %v2921_v31 }
 0x33f   :  { %v2925_v55 = vpop.f32.mrb[226].mxu1 }
 0x340   :  { %v7935_v58 = vmul.f32 %v7832_v59, %v3674_v56  ;;  %v3611_v47 = vmul.f32 %v7566_v62, %v2925_v55  ;;  %v2927_v18 = vpop.f32.mrb[227].mxu1 }
 0x342   :  { %v3675_v44 = vmul.f32 %v3611_v47, %v2927_v18  ;;  %v8245_v18 = vld [vmem:[#allocation13_spill] sm:$0xff]  ;;  %v8257_v21 = vpack.c.bf16 %v7935_v58, %v7930_v17 }
 0x343   :  { %v2931_v13 = vpop.f32.mrb[228].mxu1 }
 0x344   :  { %v3612_v46 = vmul.f32 %v7564_v35, %v2931_v13  ;;  %v7942_v49 = vmul.f32 %v3675_v44, %v7840_v16  ;;  %v2933_v3 = vpop.f32.mrb[229].mxu1 }
 0x346   :  { %v3676_v30 = vmul.f32 %v3612_v46, %v2933_v3 }
 0x347   :  { %v2937_v1 = vpop.f32.mrb[230].mxu1 }
 0x348   :  { %v7945_v31 = vmul.f32 %v7837_v32, %v3676_v30  ;;  %v3613_v59 = vmul.f32 %v7571_v27, %v2937_v1  ;;  %v2939_v62 = vpop.f32.mrb[231].mxu1  ;;  %v8246_v32 = vld [vmem:[#allocation6_spill] sm:$0xff] }
 0x34a   :  { %v3677_v55 = vmul.f32 %v3613_v59, %v2939_v62  ;;  %v8247_v62 = vld [vmem:[#allocation14_spill] sm:$0xff]  ;;  %v8258_v17 = vpack.c.bf16 %v7945_v31, %v7942_v49 }
 0x34b   :  { %v2943_v47 = vpop.f32.mrb[232].mxu1 }
 0x34c   :  { %v3614_v41 = vmul.f32 %v8245_v18, %v2943_v47  ;;  %v7952_v35 = vmul.f32 %v3677_v55, %v7848_v50  ;;  %v2945_v16 = vpop.f32.mrb[233].mxu1 }
 0x34e   :  { %v3678_v44 = vmul.f32 %v3614_v41, %v2945_v16 }
 0x34f   :  { %v2949_v13 = vpop.f32.mrb[234].mxu1 }
 0x350   :  { %v7955_v46 = vmul.f32 %v7845_v54, %v3678_v44  ;;  %v3615_v3 = vmul.f32 %v8246_v32, %v2949_v13  ;;  %v2951_v27 = vpop.f32.mrb[235].mxu1  ;;  %v8248_v54 = vld [vmem:[#allocation23_spill] sm:$0xff] }
 0x352   :  { %v3679_v1 = vmul.f32 %v3615_v3, %v2951_v27  ;;  %v8249_v27 = vld [vmem:[#allocation15_spill] sm:$0xff]  ;;  %v8259_v49 = vpack.c.bf16 %v7955_v46, %v7952_v35 }
 0x353   :  { %v2955_v59 = vpop.f32.mrb[236].mxu1 }
 0x354   :  { %v3616_v56 = vmul.f32 %v8247_v62, %v2955_v59  ;;  %v7962_v47 = vmul.f32 %v3679_v1, %v7855_v8  ;;  %v2957_v50 = vpop.f32.mrb[237].mxu1 }
 0x356   :  { %v3680_v55 = vmul.f32 %v3616_v56, %v2957_v50  ;;  %v8250_v50 = vld [vmem:[#allocation7_spill] sm:$0xff] }
 0x357   :  { %v2961_v41 = vpop.f32.mrb[238].mxu1 }
 0x358   :  { %v7965_v18 = vmul.f32 %v7850_v4, %v3680_v55  ;;  %v3617_v16 = vmul.f32 %v8248_v54, %v2961_v41  ;;  %v2963_v44 = vpop.f32.mrb[239].mxu1 }
 0x35a   :  { %v5355_v13 = vpack.c.bf16 %v7965_v18, %v7962_v47  ;;  %v3681_v32 = vmul.f32 %v3617_v16, %v2963_v44 }
 0x35b   :  { %v2967_v3 = vpop.f32.mrb[240].mxu1 }
 0x35c   :  { %v3618_v30 = vmul.f32 %v8249_v27, %v2967_v3  ;;  %v3745_v59 = vmul.f32 %v3681_v32, %v7866_v51  ;;  %v2969_v8 = vpop.f32.mrb[241].mxu1  ;;  %v8252_v32 = vld [vmem:[#allocation24_spill] sm:$0xff] }
 0x35e   :  { %v3682_v1 = vmul.f32 %v3618_v30, %v2969_v8 }
 0x35f   :  { %v2973_v62 = vpop.f32.mrb[242].mxu1 }
 0x360   :  { %v3746_v56 = vmul.f32 %v7860_v61, %v3682_v1  ;;  %v3619_v4 = vmul.f32 %v8250_v50, %v2973_v62  ;;  %v2975_v55 = vpop.f32.mrb[243].mxu1  ;;  %v8253_v62 = vld [vmem:[#allocation17_spill] sm:$0xff] }
 0x362   :  { %v3683_v2 = vmul.f32 %v3619_v4, %v2975_v55  ;;  %v5325_v41 = vpack.c.bf16 %v3746_v56, %v3745_v59 }
 0x363   :  { %v2979_v54 = vpop.f32.mrb[244].mxu1 }
 0x364   :  { %v3620_v57 = vmul.f32 %v8251_v0, %v2979_v54  ;;  %v3747_v16 = vmul.f32 %v3683_v2, %v7876_v23  ;;  %5326 = vmatprep.subr.bf16.mxu1 %v5325_v41  ;;  %v2981_v44 = vpop.f32.mrb[245].mxu1 }
 0x365   :  { %5328 = vmatpush3.bf16.xpose.msra.mxu1 %v5327_v43 }
 0x366   :  { %v3684_v51 = vmul.f32 %v3620_v57, %v2981_v44 }
 0x367   :  { %v2985_v30 = vpop.f32.mrb[246].mxu1 }
 0x368   :  { %v3748_v61 = vmul.f32 %v7870_v11, %v3684_v51  ;;  %v3621_v3 = vmul.f32 %v8252_v32, %v2985_v30  ;;  %v2987_v27 = vpop.f32.mrb[247].mxu1 }
 0x36a   :  { %v3685_v8 = vmul.f32 %v3621_v3, %v2987_v27  ;;  %v5329_v59 = vpack.c.bf16 %v3748_v61, %v3747_v16 }
 0x36b   :  { %v2991_v1 = vpop.f32.mrb[248].mxu1 }
 0x36c   :  { %v3622_v0 = vmul.f32 %v8253_v62, %v2991_v1  ;;  %v3749_v23 = vmul.f32 %v3685_v8, %v7886_v19  ;;  %5330 = vmatprep.subr.bf16.mxu1 %v5329_v59  ;;  %v2993_v2 = vpop.f32.mrb[249].mxu1 }
 0x36d   :  { %5332 = vmatpush3.bf16.xpose.msra.mxu1 %v8254_v7 }
 0x36e   :  { %v3686_v10 = vmul.f32 %v3622_v0, %v2993_v2 }
 0x36f   :  { %v2997_v43 = vpop.f32.mrb[250].mxu1 }
 0x370   :  { %v3750_v11 = vmul.f32 %v7880_v63, %v3686_v10  ;;  %v3623_v57 = vmul.f32 %v7636_v34, %v2997_v43  ;;  %v2999_v56 = vpop.f32.mrb[251].mxu1 }
 0x372   :  { %v3687_v50 = vmul.f32 %v3623_v57, %v2999_v56  ;;  %v5333_v4 = vpack.c.bf16 %v3750_v11, %v3749_v23 }
 0x373   :  { %v3003_v55 = vpop.f32.mrb[252].mxu1 }
 0x374   :  { %v3624_v41 = vmul.f32 %v7644_v14, %v3003_v55  ;;  %v3751_v19 = vmul.f32 %v3687_v50, %v7896_v6  ;;  %5334 = vmatprep.subr.bf16.mxu1 %v5333_v4  ;;  %v3005_v54 = vpop.f32.mrb[253].mxu1 }
 0x375   :  { %5336 = vmatpush3.bf16.xpose.msra.mxu1 %v8255_v22 }
 0x376   :  { %v3688_v37 = vmul.f32 %v3624_v41, %v3005_v54 }
 0x377   :  { %v3009_v16 = vpop.f32.mrb[254].mxu1 }
 0x378   :  { %v3752_v63 = vmul.f32 %v7890_v53, %v3688_v37  ;;  %v3625_v34 = vmul.f32 %v7652_v26, %v3009_v16  ;;  %v3011_v44 = vpop.f32.mrb[255].mxu1 }
 0x37a   :  { %v3689_v51 = vmul.f32 %v3625_v34, %v3011_v44  ;;  %v5337_v30 = vpack.c.bf16 %v3752_v63, %v3751_v19 }
 0x37b   :  { %v3015_v61 = vpop.f32.mrb[0].mxu1 }
 0x37c   :  { %v3626_v14 = vmul.f32 %v7661_v42, %v3015_v61  ;;  %v3753_v6 = vmul.f32 %v3689_v51, %v7904_v20  ;;  %5338 = vmatprep.subr.bf16.mxu1 %v5337_v30  ;;  %v3017_v32 = vpop.f32.mrb[1].mxu1 }
 0x37d   :  { %5340 = vmatpush3.bf16.xpose.msra.mxu1 %v8256_v9 }
 0x37e   :  { %v3690_v40 = vmul.f32 %v3626_v14, %v3017_v32 }
 0x37f   :  { %v3021_v3 = vpop.f32.mrb[2].mxu1 }
 0x380   :  { %v3754_v53 = vmul.f32 %v7898_v5, %v3690_v40  ;;  %v3627_v26 = vmul.f32 %v7670_v36, %v3021_v3  ;;  %v3023_v27 = vpop.f32.mrb[3].mxu1 }
 0x382   :  { %v3691_v8 = vmul.f32 %v3627_v26, %v3023_v27  ;;  %v5341_v59 = vpack.c.bf16 %v3754_v53, %v3753_v6 }
 0x383   :  { %v3027_v1 = vpop.f32.mrb[4].mxu1 }
 0x384   :  { %v3628_v42 = vmul.f32 %v7679_v33, %v3027_v1  ;;  %v3755_v20 = vmul.f32 %v3691_v8, %v7914_v29  ;;  %5342 = vmatprep.subr.bf16.mxu1 %v5341_v59  ;;  %v3029_v62 = vpop.f32.mrb[5].mxu1 }
 0x385   :  { %5344 = vmatpush3.bf16.xpose.msra.mxu1 %v8257_v21 }
 0x386   :  { %v3692_v38 = vmul.f32 %v3628_v42, %v3029_v62 }
 0x387   :  { %v3033_v0 = vpop.f32.mrb[6].mxu1 }
 0x388   :  { %v3756_v5 = vmul.f32 %v7908_v12, %v3692_v38  ;;  %v3629_v36 = vmul.f32 %v7688_v60, %v3033_v0  ;;  %v3035_v23 = vpop.f32.mrb[7].mxu1 }
 0x38a   :  { %v3693_v2 = vmul.f32 %v3629_v36, %v3035_v23  ;;  %v5345_v7 = vpack.c.bf16 %v3756_v5, %v3755_v20 }
 0x38b   :  { %v3039_v10 = vpop.f32.mrb[8].mxu1 }
 0x38c   :  { %v3630_v33 = vmul.f32 %v7697_v25, %v3039_v10  ;;  %v3757_v29 = vmul.f32 %v3693_v2, %v7922_v28  ;;  %5346 = vmatprep.subr.bf16.mxu1 %v5345_v7  ;;  %v3041_v43 = vpop.f32.mrb[9].mxu1 }
 0x38d   :  { %5348 = vmatpush3.bf16.xpose.msra.mxu1 %v8258_v17 }
 0x38e   :  { %v3694_v58 = vmul.f32 %v3630_v33, %v3041_v43 }
 0x38f   :  { %v3045_v11 = vpop.f32.mrb[10].mxu1 }
 0x390   :  { %v3758_v12 = vmul.f32 %v7916_v39, %v3694_v58  ;;  %v3631_v60 = vmul.f32 %v7704_v48, %v3045_v11  ;;  %v3047_v57 = vpop.f32.mrb[11].mxu1 }
 0x392   :  { %v3695_v56 = vmul.f32 %v3631_v60, %v3047_v57  ;;  %v5349_v50 = vpack.c.bf16 %v3758_v12, %v3757_v29 }
 0x393   :  { %v3051_v4 = vpop.f32.mrb[12].mxu1 }
 0x394   :  { %v3632_v25 = vmul.f32 %v7713_v24, %v3051_v4  ;;  %v3759_v28 = vmul.f32 %v3695_v56, %v7932_v45  ;;  %5350 = vmatprep.subr.bf16.mxu1 %v5349_v50  ;;  %v3053_v55 = vpop.f32.mrb[13].mxu1 }
 0x395   :  { %5352 = vmatpush3.bf16.xpose.msra.mxu1 %v8259_v49 }
 0x396   :  { %v3696_v31 = vmul.f32 %v3632_v25, %v3053_v55 }
 0x398   :  { %v3760_v41 = vmul.f32 %v7926_v15, %v3696_v31 }
 0x39a   :  { %v5353_v39 = vpack.c.bf16 %v3760_v41, %v3759_v28 }
 0x39c   :  { %5354 = vmatprep.subr.bf16.mxu1 %v5353_v39 }
 0x39d   :  { %5356 = vmatpush3.bf16.xpose.msra.mxu1 %v5355_v13 }
 0x3a4   :  { %4770 = vmatmul.mubr.f32.vlgmr.msra.gmra.mrb[16].mxu1 %v7786_v52 }
 0x3f8   :  { %v3828_v48 = vpop.f32.mrb[14].mxu1 }
 0x3f9   :  { %3904 = vst [vmem:[#allocation2] sm:$0xff] %v3828_v48  ;;  %v3830_v24 = vpop.f32.mrb[15].mxu1 }
 0x3fa   :  { %3905 = vst [vmem:[#allocation2 + $0x8] sm:$0xff] %v3830_v24 }
 0x477   :  { %v3899_v45 = vpop.f32.mrb[16].mxu1 }
 0x478   :  { %3906 = vst [vmem:[#allocation2 + $0x10] sm:$0xff] %v3899_v45  ;;  %v3901_v35 = vpop.f32.mrb[17].mxu1 }
 0x479   :  { %3907 = vst [vmem:[#allocation2 + $0x18] sm:$0xff] %v3901_v35 }
 0x47a   :  { %5438 = shalt.err (!%p5435_p4)
}
 0x47b   :  { %s5439_s22 = scalar_lea.hbm %s8043_s5, 512 }
 0x47c   :  { %p5440_p5 = scmp.ne.s32.totalorder %s8043_s5, %s5439_s22  ;;  %p5443_p6 = scmp.lt.u32.totalorder %s5439_s22, %s8043_s5 }
 0x47e   :  { %p5445_p7 = pnand %p5443_p6, %p5440_p5 }
 0x480   :  { %5448 = shalt.err (!%p5445_p7)
}
 0x481   :  { %3917 = dma.vmem_to_hbm [thread:$0]  %s3915_s18, 512, %s8043_s5, [#allocation3]  }
 0x482   :  { %5449 = dma.done.wait [#allocation3], 512  }
 0x483   :  { %5450 = vsyncadd [#allocation3], 4294966784 }
 0x484   :  { %3921 = vsyncpa [#allocation3], 1 }

</bundles_post_ra>
